<compile_context>
chip_gen: v7x
topology: tpu7x:2x2x1
jax: 0.10.0
libtpu: 0.0.40
codegen_flags: <defaults>
</compile_context>

<pallas_src>
import functools
import math

import jax
import jax.numpy as jnp
from jax import lax
from jax.experimental import pallas as pl
from jax.experimental.pallas import tpu as pltpu


def fredf_kernel(x_ref, w1_ref, b1_ref, w2_ref, b2_ref,
                 wr_ref, wi_ref, cf_ref, sf_ref, cinv_ref, sinv_ref,
                 out_ref, h_ref, *, seq_len, pred_len, e_layers, bb, c):
    S = seq_len
    P = pred_len
    L = S + P
    t = L // 2 + 1
    n = bb * c                                       # folded (batch-chunk * channel) lanes
    f32 = jnp.float32

    x = x_ref[0]                                     # [S, n]

    # ---- instance normalisation over time (unbiased=False), rsqrt on EUP ----
    mean = jnp.mean(x, axis=0, keepdims=True)        # [1, n]
    xc = x - mean
    var_eps = jnp.mean(xc * xc, axis=0, keepdims=True) + 1e-5
    rstd = lax.rsqrt(var_eps)                        # [1, n]
    stdev = var_eps * rstd                           # sqrt(v) = v * rsqrt(v)
    xn = xc * rstd

    # ---- linear1 (mixes the time axis) + ReLU ----
    y = jnp.dot(w1_ref[...], xn, preferred_element_type=f32) + b1_ref[...]
    y = jnp.maximum(y, 0.0)                          # [S, n]

    # constants hoisted out of the layer loop
    wr = wr_ref[...]                                 # [t, C, C]  Re(complex Linear)
    wi = wi_ref[...]                                 # [t, C, C]  Im(complex Linear)
    cf = cf_ref[...]                                 # [t, L]     cos / sqrt(L)
    sf = sf_ref[...]                                 # [t, L]    -sin / sqrt(L)
    dn = (((2,), (2,)), ((0,), (0,)))                # batch over freq, contract channel

    def freq_mix(xr, xi, layer):
        # per-frequency complex Linear (block diagonal) as batched MXU matmuls
        xr3 = xr.reshape(t, bb, c)
        xi3 = xi.reshape(t, bb, c)
        yr = (lax.dot_general(xr3, wr, dn, preferred_element_type=f32)
              - lax.dot_general(xi3, wi, dn, preferred_element_type=f32)).reshape(t, n)
        yi = (lax.dot_general(xi3, wr, dn, preferred_element_type=f32)
              + lax.dot_general(xr3, wi, dn, preferred_element_type=f32)).reshape(t, n)
        # irfft('ortho') + learnable-coefficient concat folded into cinv/sinv
        return (jnp.dot(cinv_ref[layer], yr, preferred_element_type=f32)
                - jnp.dot(sinv_ref[layer], yi, preferred_element_type=f32))   # [L, n]

    # ---- layer 0: the pred_len pad rows are exactly zero, so the forward DFT
    #      contracts against y only (skips the known-zero rows) ----
    xr = jnp.dot(cf[:, :S], y, preferred_element_type=f32)       # [t, n]
    xi = jnp.dot(sf[:, :S], y, preferred_element_type=f32)
    contrib = freq_mix(xr, xi, 0)
    # residual add of the zero-padded y, written straight into the h scratch
    # (no jnp.concatenate / materialized zeros)
    h_ref[:S, :] = y + contrib[:S, :]
    h_ref[S:, :] = contrib[S:, :]
    h = h_ref[...]                                   # [L, n]

    # ---- layers 1 .. e_layers-1 ----
    for layer in range(1, e_layers):
        xr = jnp.dot(cf, h, preferred_element_type=f32)
        xi = jnp.dot(sf, h, preferred_element_type=f32)
        h = h + freq_mix(xr, xi, layer)

    # ---- last pred_len steps -> linear2 + ReLU ----
    dec = h[S:, :]                                   # [P, n]
    d2 = jnp.dot(w2_ref[...], dec, preferred_element_type=f32) + b2_ref[...]
    d2 = jnp.maximum(d2, 0.0)

    # ---- de-normalise; lane-dense store ----
    out_ref[0] = d2 * stdev + mean


def fredf_forward(x_enc, params, *, seq_len, pred_len, e_layers, grid_chunks=None):
    B, S, C = x_enc.shape
    assert S == seq_len and e_layers >= 1
    P = pred_len
    L = S + P
    t = L // 2 + 1
    (w1, b1, w2, b2, wr, wi, cf, sf, cinvl, sinvl) = params

    # Grid = batch chunks.  Keep >=128 lanes per chunk (lane-dense vregs / MXU)
    # while keeping 2 chunks when possible so v7x's two TensorCores both work.
    if grid_chunks is None:
        grid_chunks = 2 if (B % 2 == 0 and (B // 2) * C >= 128) else 1
    G = grid_chunks
    assert B % G == 0
    BB = B // G
    N = BB * C

    # fold batch into the lane axis: [B, S, C] -> [G, S, BB*C]
    x2 = (x_enc.astype(jnp.float32)
          .reshape(G, BB, S, C).transpose(0, 2, 1, 3).reshape(G, S, N))

    kernel = functools.partial(fredf_kernel, seq_len=S, pred_len=P,
                               e_layers=e_layers, bb=BB, c=C)

    def rep(shape):
        nd = len(shape)
        return pl.BlockSpec(shape, lambda g, _nd=nd: (0,) * _nd)

    # TODO(synk): at realistic FreDF sizes (large C), store the DFT/weight
    # constants in bf16 and tile the frequency axis of wr/wi with an
    # "arbitrary" grid dim so they fit v7x's 64 MiB VMEM; at these toy shapes
    # everything fits in f32.
    out2 = pl.pallas_call(
        kernel,
        out_shape=jax.ShapeDtypeStruct((G, P, N), jnp.float32),
        grid=(G,),
        in_specs=[
            pl.BlockSpec((1, S, N), lambda g: (g, 0, 0)),   # x (batch-folded)
            rep((S, S)), rep((S, 1)),                       # linear1 W, b
            rep((P, P)), rep((P, 1)),                       # linear2 W, b
            rep((t, C, C)), rep((t, C, C)),                 # complex Linear Re/Im
            rep((t, L)), rep((t, L)),                       # forward DFT cos / -sin
            rep((e_layers, L, t)), rep((e_layers, L, t)),   # inverse DFT (per layer)
        ],
        out_specs=pl.BlockSpec((1, P, N), lambda g: (g, 0, 0)),
        scratch_shapes=[pltpu.VMEM((L, N), jnp.float32)],   # padded activation h
        compiler_params=pltpu.CompilerParams(dimension_semantics=("parallel",)),
    )(x2, w1, b1, w2, b2, wr, wi, cf, sf, cinvl, sinvl)

    # back to [B, P, C]
    return out2.reshape(G, P, BB, C).transpose(0, 2, 1, 3).reshape(B, P, C)


# ----------------------- parameter setup (deterministic) -----------------------

def make_params(key, *, seq_len, pred_len, c):
    L = seq_len + pred_len
    t = L // 2 + 1
    ks = jax.random.split(key, 7)
    w1 = 0.2 * jax.random.normal(ks[0], (seq_len, seq_len), jnp.float32)
    b1 = 0.1 * jax.random.normal(ks[1], (seq_len,), jnp.float32)
    w2 = 0.2 * jax.random.normal(ks[2], (pred_len, pred_len), jnp.float32)
    b2 = 0.1 * jax.random.normal(ks[3], (pred_len,), jnp.float32)
    wr = 0.2 * jax.random.normal(ks[4], (t, c, c), jnp.float32)   # Re(complex64 W)
    wi = 0.2 * jax.random.normal(ks[5], (t, c, c), jnp.float32)   # Im(complex64 W)
    w0 = jax.random.normal(ks[6], (t,), jnp.float32)              # concat coefficients
    return w1, b1, w2, b2, wr, wi, w0


def build_kernel_inputs(w1, b1, w2, b2, wr, wi, w0, *, seq_len, pred_len, e_layers):
    L = seq_len + pred_len
    t = L // 2 + 1
    # The PyTorch module re-applies softmax to the same Parameter on every call,
    # so layer k of one forward uses softmax applied (k+1) times.
    ws, w = [], w0
    for _ in range(e_layers):
        w = jax.nn.softmax(w)
        ws.append(w)
    ws = jnp.stack(ws)                                            # [e_layers, t]
    idx = jnp.arange(t)
    is_dc = idx == 0
    is_nyq = (idx == t - 1) & (L % 2 == 0)       # last bin is Nyquist only for even L
    freq_fac = jnp.where(is_dc | is_nyq, 1.0, 2.0)
    alpha = ws * freq_fac[None, :] / math.sqrt(L)                 # [e_layers, t]

    n = jnp.arange(L, dtype=jnp.float32)
    i = jnp.arange(t, dtype=jnp.float32)
    theta = 2.0 * jnp.pi * i[:, None] * n[None, :] / L            # [t, L]
    cf = jnp.cos(theta) / math.sqrt(L)                            # rfft real part
    sf = -jnp.sin(theta) / math.sqrt(L)                           # rfft imag part
    cinvl = jnp.cos(theta).T[None, :, :] * alpha[:, None, :]      # [e_layers, L, t]
    sinvl = jnp.sin(theta).T[None, :, :] * alpha[:, None, :]
    return (w1, b1[:, None], w2, b2[:, None], wr, wi, cf, sf, cinvl, sinvl)


# ----------------------- pure-JAX reference (uses jnp.fft) -----------------------

def reference_forward(x_enc, w1, b1, w2, b2, wr, wi, w0, *, pred_len, e_layers):
    B, S, C = x_enc.shape
    P = pred_len
    L = S + P
    t = L // 2 + 1
    means = x_enc.mean(axis=1, keepdims=True)
    xc = x_enc - means
    stdev = jnp.sqrt(jnp.var(xc, axis=1, keepdims=True) + 1e-5)
    xn = xc / stdev
    y = jnp.maximum(jnp.einsum('ts,bsc->btc', w1, xn) + b1[None, :, None], 0.0)
    h = jnp.concatenate([y, jnp.zeros((B, P, C), x_enc.dtype)], axis=1)
    wcplx = wr + 1j * wi
    w = w0
    for _ in range(e_layers):
        w = jax.nn.softmax(w)
        xf = jnp.fft.rfft(h, axis=1, norm='ortho')                # [B, t, C]
        yf = jnp.einsum('tdc,btc->btd', wcplx, xf)
        fre = jnp.zeros((B, t, t, C), dtype=yf.dtype)
        idx = jnp.arange(t)
        fre = fre.at[:, idx, idx, :].set(yf)
        enc = jnp.fft.irfft(fre, n=L, axis=2, norm='ortho')       # [B, t, L, C]
        h = h + jnp.einsum('btlc,t->blc', enc, w)
    dec = h[:, -P:, :]
    d2 = jnp.maximum(jnp.einsum('pq,bqc->bpc', w2, dec) + b2[None, :, None], 0.0)
    return d2 * stdev + means


if __name__ == "__main__":
    import numpy as np

    seq_len, pred_len, c_out, e_layers, B = 12, 4, 128, 2, 4

    key = jax.random.PRNGKey(0)
    kx, kp = jax.random.split(key)
    x_enc = jax.random.normal(kx, (B, seq_len, c_out), jnp.float32)
    # time-mark / decoder inputs exist in the PyTorch signature but are only used
    # when is_embed=True; we implement the is_embed=False branch, so they are unused.
    x_mark_enc = jnp.zeros((B, seq_len, 4), jnp.float32)
    x_dec = jnp.zeros((B, pred_len, c_out), jnp.float32)
    x_mark_dec = jnp.zeros((B, pred_len, 4), jnp.float32)

    raw = make_params(kp, seq_len=seq_len, pred_len=pred_len, c=c_out)
    params = build_kernel_inputs(*raw, seq_len=seq_len, pred_len=pred_len,
                                 e_layers=e_layers)

    out = fredf_forward(x_enc, params, seq_len=seq_len, pred_len=pred_len,
                        e_layers=e_layers)
    out = jax.block_until_ready(out)

    ref = reference_forward(x_enc, *raw, pred_len=pred_len, e_layers=e_layers)
    ref = jax.block_until_ready(ref)

    assert out.shape == (B, pred_len, c_out)
    np.testing.assert_allclose(np.asarray(out), np.asarray(ref), rtol=2e-3, atol=2e-3)
    print("KERNEL_OK")
</pallas_src>

<mosaic_0001>
module attributes {stable_mosaic.version = 11 : i64} {
  func.func @fredf_kernel(%arg0: i32, %arg1: memref<1x12x256xf32, #tpu.memory_space<vmem>>, %arg2: memref<12x12xf32, #tpu.memory_space<vmem>>, %arg3: memref<12x1xf32, #tpu.memory_space<vmem>>, %arg4: memref<4x4xf32, #tpu.memory_space<vmem>>, %arg5: memref<4x1xf32, #tpu.memory_space<vmem>>, %arg6: memref<9x128x128xf32, #tpu.memory_space<vmem>>, %arg7: memref<9x128x128xf32, #tpu.memory_space<vmem>>, %arg8: memref<9x16xf32, #tpu.memory_space<vmem>>, %arg9: memref<9x16xf32, #tpu.memory_space<vmem>>, %arg10: memref<2x16x9xf32, #tpu.memory_space<vmem>>, %arg11: memref<2x16x9xf32, #tpu.memory_space<vmem>>, %arg12: memref<1x4x256xf32, #tpu.memory_space<vmem>>, %arg13: memref<16x256xf32, #tpu.memory_space<vmem>>) attributes {dimension_semantics = [#tpu.dimension_semantics<parallel>], iteration_bounds = array<i64: 2>, scalar_prefetch = 0 : i64, scratch_operands = 1 : i64, tpu.core_type = #tpu.core_type<tc>, window_params = [{transform_indices = @transform_0, window_bounds = array<i64: 1, 12, 256>}, {pipeline_mode = #tpu.pipeline_mode<synchronous>, transform_indices = @transform_1, window_bounds = array<i64: 12, 12>}, {pipeline_mode = #tpu.pipeline_mode<synchronous>, transform_indices = @transform_2, window_bounds = array<i64: 12, 1>}, {pipeline_mode = #tpu.pipeline_mode<synchronous>, transform_indices = @transform_3, window_bounds = array<i64: 4, 4>}, {pipeline_mode = #tpu.pipeline_mode<synchronous>, transform_indices = @transform_4, window_bounds = array<i64: 4, 1>}, {pipeline_mode = #tpu.pipeline_mode<synchronous>, transform_indices = @transform_5, window_bounds = array<i64: 9, 128, 128>}, {pipeline_mode = #tpu.pipeline_mode<synchronous>, transform_indices = @transform_6, window_bounds = array<i64: 9, 128, 128>}, {pipeline_mode = #tpu.pipeline_mode<synchronous>, transform_indices = @transform_7, window_bounds = array<i64: 9, 16>}, {pipeline_mode = #tpu.pipeline_mode<synchronous>, transform_indices = @transform_8, window_bounds = array<i64: 9, 16>}, {pipeline_mode = #tpu.pipeline_mode<synchronous>, transform_indices = @transform_9, window_bounds = array<i64: 2, 16, 9>}, {pipeline_mode = #tpu.pipeline_mode<synchronous>, transform_indices = @transform_10, window_bounds = array<i64: 2, 16, 9>}, {transform_indices = @transform_11, window_bounds = array<i64: 1, 4, 256>}]} {
    %c0 = arith.constant 0 : index
    %c0_0 = arith.constant 0 : index
    %c0_1 = arith.constant 0 : index
    %0 = vector.load %arg1[%c0, %c0_0, %c0_1] : memref<1x12x256xf32, #tpu.memory_space<vmem>>, vector<1x12x256xf32>
    %1 = vector.shape_cast %0 : vector<1x12x256xf32> to vector<12x256xf32>
    %cst = arith.constant dense<0.000000e+00> : vector<256xf32>
    %2 = vector.multi_reduction <add>, %1, %cst [0] : vector<12x256xf32> to vector<256xf32>
    %3 = vector.shape_cast %2 : vector<256xf32> to vector<1x256xf32>
    %cst_2 = arith.constant 1.200000e+01 : f32
    %4 = vector.broadcast %cst_2 : f32 to vector<1x256xf32>
    %5 = arith.divf %3, %4 : vector<1x256xf32>
    %6 = vector.broadcast %5 : vector<1x256xf32> to vector<12x256xf32>
    %7 = arith.subf %1, %6 : vector<12x256xf32>
    %8 = arith.mulf %7, %7 : vector<12x256xf32>
    %cst_3 = arith.constant dense<0.000000e+00> : vector<256xf32>
    %9 = vector.multi_reduction <add>, %8, %cst_3 [0] : vector<12x256xf32> to vector<256xf32>
    %10 = vector.shape_cast %9 : vector<256xf32> to vector<1x256xf32>
    %cst_4 = arith.constant 1.200000e+01 : f32
    %11 = vector.broadcast %cst_4 : f32 to vector<1x256xf32>
    %12 = arith.divf %10, %11 : vector<1x256xf32>
    %cst_5 = arith.constant 9.99999974E-6 : f32
    %13 = vector.broadcast %cst_5 : f32 to vector<1x256xf32>
    %14 = arith.addf %12, %13 : vector<1x256xf32>
    %15 = math.rsqrt %14 : vector<1x256xf32>
    %16 = arith.mulf %14, %15 : vector<1x256xf32>
    %17 = vector.broadcast %15 : vector<1x256xf32> to vector<12x256xf32>
    %18 = arith.mulf %7, %17 : vector<12x256xf32>
    %c0_6 = arith.constant 0 : index
    %c0_7 = arith.constant 0 : index
    %19 = vector.load %arg2[%c0_6, %c0_7] : memref<12x12xf32, #tpu.memory_space<vmem>>, vector<12x12xf32>
    %cst_8 = arith.constant dense<0.000000e+00> : vector<12x256xf32>
    %20 = tpu.matmul %19, %18, %cst_8 {dimension_numbers = #tpu.dot_dimension_numbers<[1], [0], [0], [1], [0, 0, 1, 1], [], []>} : vector<12x12xf32>, vector<12x256xf32>, vector<12x256xf32> -> vector<12x256xf32>
    %c0_9 = arith.constant 0 : index
    %c0_10 = arith.constant 0 : index
    %21 = vector.load %arg3[%c0_9, %c0_10] : memref<12x1xf32, #tpu.memory_space<vmem>>, vector<12x1xf32>
    %22 = vector.broadcast %21 : vector<12x1xf32> to vector<12x256xf32>
    %23 = arith.addf %20, %22 : vector<12x256xf32>
    %cst_11 = arith.constant 0.000000e+00 : f32
    %24 = vector.broadcast %cst_11 : f32 to vector<12x256xf32>
    %25 = arith.maximumf %23, %24 : vector<12x256xf32>
    %c0_12 = arith.constant 0 : index
    %c0_13 = arith.constant 0 : index
    %c0_14 = arith.constant 0 : index
    %26 = vector.load %arg6[%c0_12, %c0_13, %c0_14] : memref<9x128x128xf32, #tpu.memory_space<vmem>>, vector<9x128x128xf32>
    %c0_15 = arith.constant 0 : index
    %c0_16 = arith.constant 0 : index
    %c0_17 = arith.constant 0 : index
    %27 = vector.load %arg7[%c0_15, %c0_16, %c0_17] : memref<9x128x128xf32, #tpu.memory_space<vmem>>, vector<9x128x128xf32>
    %c0_18 = arith.constant 0 : index
    %c0_19 = arith.constant 0 : index
    %28 = vector.load %arg8[%c0_18, %c0_19] : memref<9x16xf32, #tpu.memory_space<vmem>>, vector<9x16xf32>
    %c0_20 = arith.constant 0 : index
    %c0_21 = arith.constant 0 : index
    %29 = vector.load %arg9[%c0_20, %c0_21] : memref<9x16xf32, #tpu.memory_space<vmem>>, vector<9x16xf32>
    %30 = vector.extract_strided_slice %28 {offsets = [0, 0], sizes = [9, 12], strides = [1, 1]} : vector<9x16xf32> to vector<9x12xf32>
    %cst_22 = arith.constant dense<0.000000e+00> : vector<9x256xf32>
    %31 = tpu.matmul %30, %25, %cst_22 {dimension_numbers = #tpu.dot_dimension_numbers<[1], [0], [0], [1], [0, 0, 1, 1], [], []>} : vector<9x12xf32>, vector<12x256xf32>, vector<9x256xf32> -> vector<9x256xf32>
    %32 = vector.extract_strided_slice %29 {offsets = [0, 0], sizes = [9, 12], strides = [1, 1]} : vector<9x16xf32> to vector<9x12xf32>
    %cst_23 = arith.constant dense<0.000000e+00> : vector<9x256xf32>
    %33 = tpu.matmul %32, %25, %cst_23 {dimension_numbers = #tpu.dot_dimension_numbers<[1], [0], [0], [1], [0, 0, 1, 1], [], []>} : vector<9x12xf32>, vector<12x256xf32>, vector<9x256xf32> -> vector<9x256xf32>
    %34 = vector.shape_cast %31 : vector<9x256xf32> to vector<9x2x128xf32>
    %35 = vector.shape_cast %33 : vector<9x256xf32> to vector<9x2x128xf32>
    %cst_24 = arith.constant dense<0.000000e+00> : vector<9x2x128xf32>
    %36 = tpu.matmul %34, %26, %cst_24 {dimension_numbers = #tpu.dot_dimension_numbers<[2], [2], [1], [1], [0, 0, 0, 1, 1, 1], [0], [0]>} : vector<9x2x128xf32>, vector<9x128x128xf32>, vector<9x2x128xf32> -> vector<9x2x128xf32>
    %cst_25 = arith.constant dense<0.000000e+00> : vector<9x2x128xf32>
    %37 = tpu.matmul %35, %27, %cst_25 {dimension_numbers = #tpu.dot_dimension_numbers<[2], [2], [1], [1], [0, 0, 0, 1, 1, 1], [0], [0]>} : vector<9x2x128xf32>, vector<9x128x128xf32>, vector<9x2x128xf32> -> vector<9x2x128xf32>
    %38 = arith.subf %36, %37 : vector<9x2x128xf32>
    %39 = vector.shape_cast %38 : vector<9x2x128xf32> to vector<9x256xf32>
    %cst_26 = arith.constant dense<0.000000e+00> : vector<9x2x128xf32>
    %40 = tpu.matmul %35, %26, %cst_26 {dimension_numbers = #tpu.dot_dimension_numbers<[2], [2], [1], [1], [0, 0, 0, 1, 1, 1], [0], [0]>} : vector<9x2x128xf32>, vector<9x128x128xf32>, vector<9x2x128xf32> -> vector<9x2x128xf32>
    %cst_27 = arith.constant dense<0.000000e+00> : vector<9x2x128xf32>
    %41 = tpu.matmul %34, %27, %cst_27 {dimension_numbers = #tpu.dot_dimension_numbers<[2], [2], [1], [1], [0, 0, 0, 1, 1, 1], [0], [0]>} : vector<9x2x128xf32>, vector<9x128x128xf32>, vector<9x2x128xf32> -> vector<9x2x128xf32>
    %42 = arith.addf %40, %41 : vector<9x2x128xf32>
    %43 = vector.shape_cast %42 : vector<9x2x128xf32> to vector<9x256xf32>
    %c0_28 = arith.constant 0 : index
    %c0_29 = arith.constant 0 : index
    %c0_30 = arith.constant 0 : index
    %44 = vector.load %arg10[%c0_28, %c0_29, %c0_30] : memref<2x16x9xf32, #tpu.memory_space<vmem>>, vector<1x16x9xf32>
    %45 = vector.shape_cast %44 : vector<1x16x9xf32> to vector<16x9xf32>
    %cst_31 = arith.constant dense<0.000000e+00> : vector<16x256xf32>
    %46 = tpu.matmul %45, %39, %cst_31 {dimension_numbers = #tpu.dot_dimension_numbers<[1], [0], [0], [1], [0, 0, 1, 1], [], []>} : vector<16x9xf32>, vector<9x256xf32>, vector<16x256xf32> -> vector<16x256xf32>
    %c0_32 = arith.constant 0 : index
    %c0_33 = arith.constant 0 : index
    %c0_34 = arith.constant 0 : index
    %47 = vector.load %arg11[%c0_32, %c0_33, %c0_34] : memref<2x16x9xf32, #tpu.memory_space<vmem>>, vector<1x16x9xf32>
    %48 = vector.shape_cast %47 : vector<1x16x9xf32> to vector<16x9xf32>
    %cst_35 = arith.constant dense<0.000000e+00> : vector<16x256xf32>
    %49 = tpu.matmul %48, %43, %cst_35 {dimension_numbers = #tpu.dot_dimension_numbers<[1], [0], [0], [1], [0, 0, 1, 1], [], []>} : vector<16x9xf32>, vector<9x256xf32>, vector<16x256xf32> -> vector<16x256xf32>
    %50 = arith.subf %46, %49 : vector<16x256xf32>
    %51 = vector.extract_strided_slice %50 {offsets = [0, 0], sizes = [12, 256], strides = [1, 1]} : vector<16x256xf32> to vector<12x256xf32>
    %52 = arith.addf %25, %51 : vector<12x256xf32>
    %c0_36 = arith.constant 0 : index
    %c0_37 = arith.constant 0 : index
    %53 = vector.load %arg13[%c0_36, %c0_37] : memref<16x256xf32, #tpu.memory_space<vmem>>, vector<12x256xf32>
    tpu.vector_store %arg13[%c0_36, %c0_37], %52 {strides = array<i32>} : memref<16x256xf32, #tpu.memory_space<vmem>>, vector<12x256xf32>,
    %54 = vector.extract_strided_slice %50 {offsets = [12, 0], sizes = [4, 256], strides = [1, 1]} : vector<16x256xf32> to vector<4x256xf32>
    %c12 = arith.constant 12 : index
    %c0_38 = arith.constant 0 : index
    %55 = vector.load %arg13[%c12, %c0_38] : memref<16x256xf32, #tpu.memory_space<vmem>>, vector<4x256xf32>
    tpu.vector_store %arg13[%c12, %c0_38], %54 {strides = array<i32>} : memref<16x256xf32, #tpu.memory_space<vmem>>, vector<4x256xf32>,
    %c0_39 = arith.constant 0 : index
    %c0_40 = arith.constant 0 : index
    %56 = vector.load %arg13[%c0_39, %c0_40] : memref<16x256xf32, #tpu.memory_space<vmem>>, vector<16x256xf32>
    %cst_41 = arith.constant dense<0.000000e+00> : vector<9x256xf32>
    %57 = tpu.matmul %28, %56, %cst_41 {dimension_numbers = #tpu.dot_dimension_numbers<[1], [0], [0], [1], [0, 0, 1, 1], [], []>} : vector<9x16xf32>, vector<16x256xf32>, vector<9x256xf32> -> vector<9x256xf32>
    %cst_42 = arith.constant dense<0.000000e+00> : vector<9x256xf32>
    %58 = tpu.matmul %29, %56, %cst_42 {dimension_numbers = #tpu.dot_dimension_numbers<[1], [0], [0], [1], [0, 0, 1, 1], [], []>} : vector<9x16xf32>, vector<16x256xf32>, vector<9x256xf32> -> vector<9x256xf32>
    %59 = vector.shape_cast %57 : vector<9x256xf32> to vector<9x2x128xf32>
    %60 = vector.shape_cast %58 : vector<9x256xf32> to vector<9x2x128xf32>
    %cst_43 = arith.constant dense<0.000000e+00> : vector<9x2x128xf32>
    %61 = tpu.matmul %59, %26, %cst_43 {dimension_numbers = #tpu.dot_dimension_numbers<[2], [2], [1], [1], [0, 0, 0, 1, 1, 1], [0], [0]>} : vector<9x2x128xf32>, vector<9x128x128xf32>, vector<9x2x128xf32> -> vector<9x2x128xf32>
    %cst_44 = arith.constant dense<0.000000e+00> : vector<9x2x128xf32>
    %62 = tpu.matmul %60, %27, %cst_44 {dimension_numbers = #tpu.dot_dimension_numbers<[2], [2], [1], [1], [0, 0, 0, 1, 1, 1], [0], [0]>} : vector<9x2x128xf32>, vector<9x128x128xf32>, vector<9x2x128xf32> -> vector<9x2x128xf32>
    %63 = arith.subf %61, %62 : vector<9x2x128xf32>
    %64 = vector.shape_cast %63 : vector<9x2x128xf32> to vector<9x256xf32>
    %cst_45 = arith.constant dense<0.000000e+00> : vector<9x2x128xf32>
    %65 = tpu.matmul %60, %26, %cst_45 {dimension_numbers = #tpu.dot_dimension_numbers<[2], [2], [1], [1], [0, 0, 0, 1, 1, 1], [0], [0]>} : vector<9x2x128xf32>, vector<9x128x128xf32>, vector<9x2x128xf32> -> vector<9x2x128xf32>
    %cst_46 = arith.constant dense<0.000000e+00> : vector<9x2x128xf32>
    %66 = tpu.matmul %59, %27, %cst_46 {dimension_numbers = #tpu.dot_dimension_numbers<[2], [2], [1], [1], [0, 0, 0, 1, 1, 1], [0], [0]>} : vector<9x2x128xf32>, vector<9x128x128xf32>, vector<9x2x128xf32> -> vector<9x2x128xf32>
    %67 = arith.addf %65, %66 : vector<9x2x128xf32>
    %68 = vector.shape_cast %67 : vector<9x2x128xf32> to vector<9x256xf32>
    %c1 = arith.constant 1 : index
    %c0_47 = arith.constant 0 : index
    %c0_48 = arith.constant 0 : index
    %69 = vector.load %arg10[%c1, %c0_47, %c0_48] : memref<2x16x9xf32, #tpu.memory_space<vmem>>, vector<1x16x9xf32>
    %70 = vector.shape_cast %69 : vector<1x16x9xf32> to vector<16x9xf32>
    %cst_49 = arith.constant dense<0.000000e+00> : vector<16x256xf32>
    %71 = tpu.matmul %70, %64, %cst_49 {dimension_numbers = #tpu.dot_dimension_numbers<[1], [0], [0], [1], [0, 0, 1, 1], [], []>} : vector<16x9xf32>, vector<9x256xf32>, vector<16x256xf32> -> vector<16x256xf32>
    %c1_50 = arith.constant 1 : index
    %c0_51 = arith.constant 0 : index
    %c0_52 = arith.constant 0 : index
    %72 = vector.load %arg11[%c1_50, %c0_51, %c0_52] : memref<2x16x9xf32, #tpu.memory_space<vmem>>, vector<1x16x9xf32>
    %73 = vector.shape_cast %72 : vector<1x16x9xf32> to vector<16x9xf32>
    %cst_53 = arith.constant dense<0.000000e+00> : vector<16x256xf32>
    %74 = tpu.matmul %73, %68, %cst_53 {dimension_numbers = #tpu.dot_dimension_numbers<[1], [0], [0], [1], [0, 0, 1, 1], [], []>} : vector<16x9xf32>, vector<9x256xf32>, vector<16x256xf32> -> vector<16x256xf32>
    %75 = arith.subf %71, %74 : vector<16x256xf32>
    %76 = arith.addf %56, %75 : vector<16x256xf32>
    %77 = vector.extract_strided_slice %76 {offsets = [12, 0], sizes = [4, 256], strides = [1, 1]} : vector<16x256xf32> to vector<4x256xf32>
    %c0_54 = arith.constant 0 : index
    %c0_55 = arith.constant 0 : index
    %78 = vector.load %arg4[%c0_54, %c0_55] : memref<4x4xf32, #tpu.memory_space<vmem>>, vector<4x4xf32>
    %cst_56 = arith.constant dense<0.000000e+00> : vector<4x256xf32>
    %79 = tpu.matmul %78, %77, %cst_56 {dimension_numbers = #tpu.dot_dimension_numbers<[1], [0], [0], [1], [0, 0, 1, 1], [], []>} : vector<4x4xf32>, vector<4x256xf32>, vector<4x256xf32> -> vector<4x256xf32>
    %c0_57 = arith.constant 0 : index
    %c0_58 = arith.constant 0 : index
    %80 = vector.load %arg5[%c0_57, %c0_58] : memref<4x1xf32, #tpu.memory_space<vmem>>, vector<4x1xf32>
    %81 = vector.broadcast %80 : vector<4x1xf32> to vector<4x256xf32>
    %82 = arith.addf %79, %81 : vector<4x256xf32>
    %cst_59 = arith.constant 0.000000e+00 : f32
    %83 = vector.broadcast %cst_59 : f32 to vector<4x256xf32>
    %84 = arith.maximumf %82, %83 : vector<4x256xf32>
    %85 = vector.broadcast %16 : vector<1x256xf32> to vector<4x256xf32>
    %86 = arith.mulf %84, %85 : vector<4x256xf32>
    %87 = vector.broadcast %5 : vector<1x256xf32> to vector<4x256xf32>
    %88 = arith.addf %86, %87 : vector<4x256xf32>
    %c0_60 = arith.constant 0 : index
    %c0_61 = arith.constant 0 : index
    %c0_62 = arith.constant 0 : index
    %89 = vector.load %arg12[%c0_60, %c0_61, %c0_62] : memref<1x4x256xf32, #tpu.memory_space<vmem>>, vector<1x4x256xf32>
    %90 = vector.shape_cast %89 : vector<1x4x256xf32> to vector<4x256xf32>
    %91 = vector.shape_cast %88 : vector<4x256xf32> to vector<1x4x256xf32>
    tpu.vector_store %arg12[%c0_60, %c0_61, %c0_62], %91 {strides = array<i32>} : memref<1x4x256xf32, #tpu.memory_space<vmem>>, vector<1x4x256xf32>,
    return
  }
  func.func @transform_0(%arg0: i32) -> (i32, i32, i32) {
    %c0_i32 = arith.constant 0 : i32
    %c0_i32_0 = arith.constant 0 : i32
    %c0_i32_1 = arith.constant 0 : i32
    return %arg0, %c0_i32, %c0_i32_0 : i32, i32, i32
  }
  func.func @transform_1(%arg0: i32) -> (i32, i32) {
    %c0_i32 = arith.constant 0 : i32
    %c0_i32_0 = arith.constant 0 : i32
    %c0_i32_1 = arith.constant 0 : i32
    return %c0_i32, %c0_i32_0 : i32, i32
  }
  func.func @transform_2(%arg0: i32) -> (i32, i32) {
    %c0_i32 = arith.constant 0 : i32
    %c0_i32_0 = arith.constant 0 : i32
    %c0_i32_1 = arith.constant 0 : i32
    return %c0_i32, %c0_i32_0 : i32, i32
  }
  func.func @transform_3(%arg0: i32) -> (i32, i32) {
    %c0_i32 = arith.constant 0 : i32
    %c0_i32_0 = arith.constant 0 : i32
    %c0_i32_1 = arith.constant 0 : i32
    return %c0_i32, %c0_i32_0 : i32, i32
  }
  func.func @transform_4(%arg0: i32) -> (i32, i32) {
    %c0_i32 = arith.constant 0 : i32
    %c0_i32_0 = arith.constant 0 : i32
    %c0_i32_1 = arith.constant 0 : i32
    return %c0_i32, %c0_i32_0 : i32, i32
  }
  func.func @transform_5(%arg0: i32) -> (i32, i32, i32) {
    %c0_i32 = arith.constant 0 : i32
    %c0_i32_0 = arith.constant 0 : i32
    %c0_i32_1 = arith.constant 0 : i32
    %c0_i32_2 = arith.constant 0 : i32
    return %c0_i32, %c0_i32_0, %c0_i32_1 : i32, i32, i32
  }
  func.func @transform_6(%arg0: i32) -> (i32, i32, i32) {
    %c0_i32 = arith.constant 0 : i32
    %c0_i32_0 = arith.constant 0 : i32
    %c0_i32_1 = arith.constant 0 : i32
    %c0_i32_2 = arith.constant 0 : i32
    return %c0_i32, %c0_i32_0, %c0_i32_1 : i32, i32, i32
  }
  func.func @transform_7(%arg0: i32) -> (i32, i32) {
    %c0_i32 = arith.constant 0 : i32
    %c0_i32_0 = arith.constant 0 : i32
    %c0_i32_1 = arith.constant 0 : i32
    return %c0_i32, %c0_i32_0 : i32, i32
  }
  func.func @transform_8(%arg0: i32) -> (i32, i32) {
    %c0_i32 = arith.constant 0 : i32
    %c0_i32_0 = arith.constant 0 : i32
    %c0_i32_1 = arith.constant 0 : i32
    return %c0_i32, %c0_i32_0 : i32, i32
  }
  func.func @transform_9(%arg0: i32) -> (i32, i32, i32) {
    %c0_i32 = arith.constant 0 : i32
    %c0_i32_0 = arith.constant 0 : i32
    %c0_i32_1 = arith.constant 0 : i32
    %c0_i32_2 = arith.constant 0 : i32
    return %c0_i32, %c0_i32_0, %c0_i32_1 : i32, i32, i32
  }
  func.func @transform_10(%arg0: i32) -> (i32, i32, i32) {
    %c0_i32 = arith.constant 0 : i32
    %c0_i32_0 = arith.constant 0 : i32
    %c0_i32_1 = arith.constant 0 : i32
    %c0_i32_2 = arith.constant 0 : i32
    return %c0_i32, %c0_i32_0, %c0_i32_1 : i32, i32, i32
  }
  func.func @transform_11(%arg0: i32) -> (i32, i32, i32) {
    %c0_i32 = arith.constant 0 : i32
    %c0_i32_0 = arith.constant 0 : i32
    %c0_i32_1 = arith.constant 0 : i32
    return %arg0, %c0_i32, %c0_i32_0 : i32, i32, i32
  }
}

</mosaic_0001>

<bundles_post_ra>
// kernel: tpu_custom_call.1
= control target key start
LH: loop header
LB: loop body
LE: loop exit
PB: predicated region body
PF: predicated region fallthrough
CT: control target
= control target key end

     0   :  { %16 = vsyncpa [#allocation4], 0  ;;  %s15689_s0 = inlined_call_operand.vmem [shape: f32[2,12,256], index: 0, kind: input, shape index: {}]   ;;  %s15690_s1 = inlined_call_operand.vmem [shape: f32[12,12], index: 1, kind: input, shape index: {}]   ;;  %s15691_s2 = inlined_call_operand.vmem [shape: f32[12,1], index: 2, kind: input, shape index: {}]   ;;  %s15692_s3 = inlined_call_operand.vmem [shape: f32[4,4], index: 3, kind: input, shape index: {}]   ;;  %s15693_s4 = inlined_call_operand.vmem [shape: f32[4,1], index: 4, kind: input, shape index: {}]   ;;  %s15694_s5 = inlined_call_operand.hbm [shape: f32[9,128,128], index: 5, kind: input, shape index: {}]   ;;  %s15695_s6 = inlined_call_operand.hbm [shape: f32[9,128,128], index: 6, kind: input, shape index: {}]   ;;  %s15696_s7 = inlined_call_operand.vmem [shape: f32[9,16], index: 7, kind: input, shape index: {}]   ;;  %s15697_s8 = inlined_call_operand.vmem [shape: f32[9,16], index: 8, kind: input, shape index: {}]   ;;  %s15698_s9 = inlined_call_operand.vmem [shape: f32[2,16,9], index: 9, kind: input, shape index: {}]   ;;  %s15699_s10 = inlined_call_operand.vmem [shape: f32[2,16,9], index: 10, kind: input, shape index: {}]   ;;  %s15700_s11 = inlined_call_operand.hbm [shape: f32[2,4,256], index: 11, kind: output, shape index: {}]  }
   0x1   :  { %17 = vsyncpa [#allocation7], 0 }
   0x2   :  { %18 = vsyncpa [#allocation5], 0 }
   0x3   :  { %20 = vsyncpa [#allocation5 + $0x1], 0  ;;  %s13275_s17 = smov 0   ;;  %s13277_s18 = smov 0  }
   0x4   :  { %s13279_s19 = smov 0   ;;  %s13281_s20 = smov 0  }
   0x5 LB: > { %16084 = sst [smem:[#allocation12_spill]] %s13189_s17  ;;  %s13296_s21 = sadd.s32 4294967295, %s13201_s20   ;;  %s13201_s20 = sphi %s13281_s20, %s16638_s20   ;;  %s13197_s19 = sphi %s13279_s19, %s16640_s19   ;;  %s13193_s18 = sphi %s13277_s18, %s16642_s18   ;;  %s13189_s17 = sphi %s13275_s17, %s16641_s17  }
   0x6   : > { %16085 = sst [smem:[#allocation13_spill]] %s13197_s19  ;;  %s7379_s22 = sadd.s32 4294967294, %s13201_s20  }
   0x7   : > { %s13300_s23 = sadd.s32 1, %s13201_s20   ;;  %s269_s24 = sadd.s32 1, %s13197_s19 }
   0x8   : > { %16086 = sst [smem:[#allocation14_spill]] %s13300_s23  ;;  %s266_s25 = ssub.s32 %s13201_s20, %s13300_s23 }
   0x9   : > { %p279_p0 = scmp.ne.s32.totalorder %s13197_s19, %s13193_s18  ;;  %p267_p1 = scmp.eq.s32.totalorder %s266_s25, 0 }
   0xa   : > { %p280_p2 = scmp.eq.s32.totalorder %s13296_s21, 1  ;;  %p285_p3 = scmp.ne.s32.totalorder %s13193_s18, %s13189_s17 }
   0xb   : > { %p286_p4 = scmp.eq.s32.totalorder %s7379_s22, 1  ;;  %p7380_p7 = scmp.ge.s32.totalorder %s13201_s20, 1 }
   0xc   : > { %s13311_s26 = scalar_select %p267_p1, %s13197_s19, %s269_s24  }
   0xd   : > { %p13313_p5 = por %p280_p2, %p279_p0  ;;  %p13317_p6 = por %p286_p4, %p285_p3 }
   0xe   : > { %16087 = sst [smem:[#allocation15_spill]] %s13311_s26  ;;  %p293_p8 = scmp.lt.s32.totalorder %s13201_s20, 3 }
   0xf   : > { %s16088_s27 = scalar_select %p13313_p5, 1, 0 }
  0x10   : > { %s16089_s28 = scalar_select %p13317_p6, 1, 0 }
  0x11   : > { %p15702_p9 = scmp.eq.s32.totalorder %s13296_s21, 0  ;;  %p13324_p10 = pnand %p7380_p7, %p293_p8 }
  0x12   : > { %16090 = sst [smem:[#allocation16_spill]] %s16089_s28  ;;  %s13203_s30 = smov [#allocation3]  }
  0x13   : > { %s16091_s29 = scalar_select %p13324_p10, 1, 0 }
  0x14   : > { %s317_s12 = sshll.u32 %s13203_s30, 4  ;;  %p13004_p11 = pneg %p13324_p10  ;;  %s318_s12 = int_to_ptr.vmem [resolvable:$true] %s317_s12 }
  0x15   : > { %s13204_s14 = smov [#allocation6]   ;;  %s13075_s24 = scalar_lea.hbm %s15694_s5, 18432 }
  0x16   : > { %p13332_p12 = pnand %p15702_p9, %p13004_p11  ;;  %s330_s15 = sshll.u32 %s13204_s14, 4  ;;  %s13336_s15 = int_to_ptr.vmem [resolvable:$true] %s330_s15 }
  0x17   : > { %p13076_p13 = scmp.ne.s32.totalorder %s15694_s5, %s13075_s24  ;;  %p13082_p3 = scmp.lt.u32.totalorder %s13075_s24, %s15694_s5 }
  0x18   : > { %p13077_p0 = pneg %p13332_p12 }
  0x1a   : > { %p13078_p1 = pnand %p13077_p0, %p13076_p13 }
  0x1c   : > { %p13079_p2 = pneg %p13078_p1 }
  0x1e   : > { %p13084_p4 = pnand %p13082_p3, %p13079_p2 }
  0x20   : > { %13087 = shalt.err (!%p13084_p4)
}
  0x21   : > { %s13088_s14 = scalar_lea.vmem %s318_s12, 18432  ;;  %p13096_p9 = scmp.lt.s32.totalorder %s318_s12, %s318_s12 }
  0x22   : > { %p13089_p7 = scmp.ne.s32.totalorder %s318_s12, %s13088_s14  ;;  %p13097_p6 = scmp.lt.s32.totalorder %s13088_s14, %s13088_s14 }
  0x24   : > { %p13091_p8 = pnand %p13089_p7, %p13077_p0  ;;  %p13098_p5 = por %p13097_p6, %p13096_p9 }
  0x26   : > { %p13092_p11 = pneg %p13091_p8 }
  0x28   : > { %p13099_p10 = pnand %p13098_p5, %p13092_p11 }
  0x2a   : > { %13102 = shalt.err (!%p13099_p10)
}
  0x2b   : > { %s13205_s16 = smov 128   ;;  %s13206_s22 = smov 8  }
  0x2c   : > { %13007 = dma.hbm_to_vmem [thread:$0]  (!%p13332_p12), %s15694_s5, 18432, %s318_s12, [#allocation4], %s13205_s16, %s13205_s16, %s13206_s22  }
  0x2d   : > { %s13103_s30 = scalar_lea.hbm %s15695_s6, 18432 }
  0x2e   : > { %p13104_p13 = scmp.ne.s32.totalorder %s15695_s6, %s13103_s30  ;;  %p13110_p9 = scmp.lt.u32.totalorder %s13103_s30, %s15695_s6 }
  0x30   : > { %p13106_p5 = pnand %p13104_p13, %p13077_p0 }
  0x32   : > { %p13107_p6 = pneg %p13106_p5 }
  0x34   : > { %p13112_p10 = pnand %p13110_p9, %p13107_p6 }
  0x36   : > { %13115 = shalt.err (!%p13112_p10)
}
  0x37   : > { %s13116_s12 = scalar_lea.vmem %s13336_s15, 18432  ;;  %p13124_p4 = scmp.lt.s32.totalorder %s13336_s15, %s13336_s15 }
  0x38   : > { %p13117_p1 = scmp.ne.s32.totalorder %s13336_s15, %s13116_s12  ;;  %p13125_p7 = scmp.lt.s32.totalorder %s13116_s12, %s13116_s12 }
  0x3a   : > { %p13119_p2 = pnand %p13117_p1, %p13077_p0  ;;  %p13126_p8 = por %p13125_p7, %p13124_p4 }
  0x3c   : > { %p13120_p3 = pneg %p13119_p2 }
  0x3e   : > { %p13127_p11 = pnand %p13126_p8, %p13120_p3 }
  0x40   : > { %13130 = shalt.err (!%p13127_p11)
}
  0x41   : > { %13010 = dma.hbm_to_vmem [thread:$0]  (!%p13332_p12), %s15695_s6, 18432, %s13336_s15, [#allocation7], %s13205_s16, %s13205_s16, %s13206_s22  }
  0x42   : > { %p16093_p13 = scmp.ne.s32.totalorder %s16091_s29, 0 }
  0x44   : > { %366 = sbr.rel (%p16093_p13) target bundleno = 4142 (0x102e), region = 64 }
  0x4b   : > { %p16094_p5 = scmp.eq.s32.totalorder %s13296_s21, 0 }
  0x4d   : > { %13176 = dma.done.wait (%p16094_p5), [#allocation4], 18432   ;;  %p16095_p0 = pmov %p16094_p5 }
  0x4f   : > { %13178 = vsyncadd (%p16095_p0), [#allocation4], 4294948864  ;;  %p16096_p6 = pmov %p16095_p0 }
  0x50   : > { %p16097_p9 = pmov %p16095_p0 }
  0x51   : > { %13180 = dma.done.wait (%p16096_p6), [#allocation7], 18432  }
  0x52   : > { %13182 = vsyncadd (%p16097_p9), [#allocation7], 4294948864  ;;  %p410_p10 = scmp.lt.s32.totalorder %s13296_s21, 1  ;;  %v15713_v0 = vmov 0.0   ;;  %v13208_v1 = vmov 0   ;;  %vm419_vm0 = vcmask 1043456  }
  0x53   : > { %566 = vmatprep.mubr.f32.mxu1 %v15713_v0  ;;  %13063 = vset.pattern.permute.xlu0 %v13208_v1  ;;  %v477_v9 = vld [vmem:[%s15691_s2] sm:$0xff]  ;;  %v478_v12 = vld [vmem:[%s15691_s2 + $0x8] sm:$0xf]  ;;  %vm13209_vm1 = vmmov 1   ;;  %vm489_vm3 = vcmask 97280   ;;  %v621_v58 = vld [vmem:[#allocation3 + $0x130] sm:$0xff] }
  0x54   : > { %s411_s28 = scalar_select %p410_p10, %s13296_s21, 1  ;;  %13064 = vset.pattern.permute.xlu1 %v13208_v1  ;;  %481 = vperm.xlu0 %13063, %v477_v9   ;;  %vm13433_vm2 = vmpackc.low %vm419_vm0, %vm13209_vm1  ;;  %v475_v63 = vld [vmem:[%s15690_s1] sm:$0xff]  ;;  %v476_v1 = vld [vmem:[%s15690_s1 + $0x8] sm:$0xf]  ;;  %vm13211_vm4 = vmmov 0   ;;  %vm3849_vm5 = vcmask 1040384  }
  0x55   : > { %v587_v9 = vld [vmem:[#allocation3 + $0x20] sm:$0xff]  ;;  %8692 = vmatprep.mubr.msk.f32.mxu0 %vm13211_vm4, %v15713_v0  ;;  %vm14658_vm6 = vmpackc.low %vm3849_vm5, %vm13209_vm1  ;;  %vm3842_vm7 = vcmask 72704   ;;  %vm4042_vm8 = vcmask 130048   ;;  %vm7193_vm9 = vcmask 31744   ;;  %s7435_s19 = sshll.u32 %s13296_s21, 7  ;;  %p16634_p1 = scmp.ne.s32.totalorder %s16088_s27, 0 }
  0x56   : > { %s7434_s29 = sshll.u32 %s411_s28, 5  ;;  %s15647_s14 = scalar_lea.hbm %s15700_s11, %s7435_s19 }
  0x57   : > { %s414_s16 = scalar_lea.vmem %s15689_s0, %s7434_s29  ;;  %s13214_s21 = smov [#allocation8]  }
  0x58   : > { %v416_v2 = vld [vmem:[%s414_s16 + $0x8] sm:$0xff]  ;;  %v418_v3 = vld [vmem:[%s414_s16 + $0x18] sm:$0xf]  ;;  %v415_v4 = vld [vmem:[%s414_s16] sm:$0xff]  ;;  %486 = vperm.xlu0 %13063, %v478_v12   ;;  %s13135_s23 = sshll.u32 %s13214_s21, 4  ;;  %s13136_s23 = int_to_ptr.vmem [resolvable:$false] %s13135_s23 }
  0x59   : > { %v428_v5 = vsel %vm419_vm0, %v418_v3, 0.0  ;;  %v417_v6 = vld [vmem:[%s414_s16 + $0x10] sm:$0xf]  ;;  %s407_s16 = sand.u32 1, %s13193_s18   ;;  %s13137_s28 = scalar_lea.vmem %s13136_s23, 256 }
  0x5a   : > { %v429_v7 = vadd.f32 %v428_v5, %v416_v2  ;;  %v420_v8 = vsel %vm419_vm0, %v417_v6, 0.0  ;;  %v589_v12 = vld [vmem:[#allocation3 + $0x30] sm:$0xff]  ;;  %s7387_s22 = sshll.u32 %s407_s16, 3  ;;  %s7284_s12 = scalar_lea.sflag [#allocation5], %s407_s16 }
  0x5b   : > { %v421_v10 = vadd.f32 %v420_v8, %v415_v4  ;;  %s409_s26 = scalar_lea.vmem [#allocation8], %s7387_s22 }
  0x5c   : > { %v430_v11 = vrot.slane %v429_v7, 4  ;;  %s7298_s24 = sshll.u32 %s409_s26, 4  ;;  %s15649_s24 = int_to_ptr.vmem [resolvable:$true] %s7298_s24 }
  0x5d   : > { %v422_v13 = vrot.slane %v421_v10, 4  ;;  %s13131_s17 = scalar_lea.vmem %s15649_s24, 128  ;;  %p13138_p4 = scmp.lt.s32.totalorder %s15649_s24, %s13136_s23 }
  0x5e   : > { %v431_v14 = vadd.f32 %v430_v11, %v429_v7  ;;  %v586_v7 = vld [vmem:[#allocation3 + $0x18] sm:$0xff]  ;;  %p13132_p12 = scmp.ne.s32.totalorder %s15649_s24, %s13131_s17  ;;  %p13139_p7 = scmp.lt.s32.totalorder %s13137_s28, %s13131_s17 }
  0x5f   : > { %v423_v15 = vadd.f32 %v422_v13, %v421_v10  ;;  %v588_v10 = vld [vmem:[#allocation3 + $0x28] sm:$0xff]  ;;  %v590_v13 = vld [vmem:[#allocation3 + $0x38] sm:$0xff] }
  0x60   : > { %v432_v16 = vrot.slane %v431_v14, 2  ;;  %v13462_v11 = vpack.c.bf16 %v588_v10, %v587_v9  ;;  %v597_v10 = vld [vmem:[#allocation3 + $0x70] sm:$0xff]  ;;  %p13133_p2 = pnand %p13132_p12, %p16634_p1  ;;  %p13140_p8 = por %p13139_p7, %p13138_p4 }
  0x61   : > { %v424_v17 = vrot.slane %v423_v15, 2 }
  0x62   : > { %v433_v18 = vadd.f32 %v432_v16, %v431_v14  ;;  %16108 = vst [vmem:[#allocation25_spill] sm:$0xff] %v13462_v11  ;;  %v13466_v14 = vpack.c.bf16 %v590_v13, %v589_v12  ;;  %v592_v16 = vld [vmem:[#allocation3 + $0x48] sm:$0xff]  ;;  %v598_v12 = vld [vmem:[#allocation3 + $0x78] sm:$0xff]  ;;  %v629_v13 = vld [vmem:[#allocation3 + $0x170] sm:$0xff]  ;;  %p13134_p3 = pneg %p13133_p2 }
  0x63   : > { %v425_v19 = vadd.f32 %v424_v17, %v423_v15  ;;  %v591_v15 = vld [vmem:[#allocation3 + $0x40] sm:$0xff] }
  0x64   : > { %v434_v20 = vrot.slane %v433_v18, 1  ;;  %16109 = vst [vmem:[#allocation26_spill] sm:$0xff] %v13466_v14  ;;  %v13470_v17 = vpack.c.bf16 %v592_v16, %v591_v15  ;;  %v13554_v15 = vpack.c.bf16 %v598_v12, %v597_v10  ;;  %v630_v16 = vld [vmem:[#allocation3 + $0x178] sm:$0xff]  ;;  %p13141_p11 = pnand %p13140_p8, %p13134_p3 }
  0x65   : > { %v426_v21 = vrot.slane %v425_v19, 1 }
  0x66   : > { %v435_v22 = vadd.f32 %v434_v20, %v433_v18  ;;  %16110 = vst [vmem:[#allocation27_spill] sm:$0xff] %v13470_v17  ;;  %v593_v18 = vld [vmem:[#allocation3 + $0x50] sm:$0xff]  ;;  %16124 = vst [vmem:[#allocation41_spill] sm:$0xff] %v13554_v15 }
  0x67   : > { %v427_v23 = vadd.f32 %v426_v21, %v425_v19  ;;  %v594_v19 = vld [vmem:[#allocation3 + $0x58] sm:$0xff]  ;;  %v595_v21 = vld [vmem:[#allocation3 + $0x60] sm:$0xff] }
  0x68   : > { %v13409_v24 = vmul.f32 0.083333336, %v435_v22  ;;  %v13474_v20 = vpack.c.bf16 %v594_v19, %v593_v18  ;;  %v596_v22 = vld [vmem:[#allocation3 + $0x68] sm:$0xff]  ;;  %v13556_v18 = vpack.c.bf16 %v630_v16, %v629_v13  ;;  %v601_v16 = vld [vmem:[#allocation3 + $0x90] sm:$0xff] }
  0x69   : > { %v13411_v25 = vmul.f32 0.083333336, %v427_v23  ;;  %v13478_v23 = vpack.c.bf16 %v596_v22, %v595_v21  ;;  %v874_v19 = vld [vmem:[%s15697_s8 + $0x8] sm:$0x1]  ;;  %v13212_v21 = vmov 1983009808  }
  0x6a   : > { %16098 = vst [vmem:[#allocation17_spill] sm:$0xff] %v13409_v24  ;;  %v440_v26 = vsub.f32 %v416_v2, %v13409_v24  ;;  %v442_v27 = vsub.f32 %v418_v3, %v13409_v24  ;;  %v16026_v2 = vmov 0.0|0.0   ;;  %v583_v3 = vld [vmem:[#allocation3] sm:$0xff]  ;;  %16111 = vst [vmem:[#allocation28_spill] sm:$0xff] %v13474_v20  ;;  %v1049_v22 = vunpack.c.l.s4 %v13212_v21  ;;  %v649_v21 = vld [vmem:[#allocation3 + $0x210] sm:$0xff] }
  0x6b   : > { %16099 = vst [vmem:[#allocation18_spill] sm:$0xff] %v13411_v25  ;;  %v439_v28 = vsub.f32 %v415_v4, %v13411_v25  ;;  %v441_v29 = vsub.f32 %v417_v6, %v13411_v25  ;;  %11198 = vmatprep.subr.bf16.mxu0 %v16026_v2  ;;  %v584_v4 = vld [vmem:[#allocation3 + $0x8] sm:$0xff]  ;;  %v585_v6 = vld [vmem:[#allocation3 + $0x10] sm:$0xff]  ;;  %16112 = vst [vmem:[#allocation29_spill] sm:$0xff] %v13478_v23 }
  0x6c   : > { %v444_v30 = vmul.f32 %v440_v26, %v440_v26  ;;  %v446_v31 = vmul.f32 %v442_v27, %v442_v27  ;;  %v13454_v5 = vpack.c.bf16 %v584_v4, %v583_v3  ;;  %v13458_v8 = vpack.c.bf16 %v586_v7, %v585_v6  ;;  %v626_v3 = vld [vmem:[#allocation3 + $0x158] sm:$0xff]  ;;  %v627_v6 = vld [vmem:[#allocation3 + $0x160] sm:$0xff]  ;;  %v628_v7 = vld [vmem:[#allocation3 + $0x168] sm:$0xff]  ;;  %16125 = vst [vmem:[#allocation42_spill] sm:$0xff] %v13556_v18 }
  0x6d   : > { %v443_v32 = vmul.f32 %v439_v28, %v439_v28  ;;  %v445_v33 = vmul.f32 %v441_v29, %v441_v29  ;;  %v13550_v9 = vpack.c.bf16 %v628_v7, %v627_v6 }
  0x6e   : > { %v455_v34 = vsel %vm419_vm0, %v446_v31, 0.0  ;;  %16106 = vst [vmem:[#allocation23_spill] sm:$0xff] %v13454_v5  ;;  %11200 = vmatpush3.bf16.xpose.msra.mxu0 %v13454_v5  ;;  %16107 = vst [vmem:[#allocation24_spill] sm:$0xff] %v13458_v8  ;;  %v815_v5 = vld [vmem:[#allocation6 + $0x2c0] sm:$0xff] }
  0x6f   : > { %v456_v35 = vadd.f32 %v455_v34, %v444_v30  ;;  %v447_v36 = vsel %vm419_vm0, %v445_v33, 0.0  ;;  %11201 = vmatprep.subr.bf16.mxu0 %v16026_v2  ;;  %16123 = vst [vmem:[#allocation40_spill] sm:$0xff] %v13550_v9 }
  0x70   : > { %v448_v37 = vadd.f32 %v447_v36, %v443_v32 }
  0x71   : > { %v457_v38 = vrot.slane %v456_v35, 4 }
  0x72   : > { %v449_v39 = vrot.slane %v448_v37, 4 }
  0x73   : > { %v458_v40 = vadd.f32 %v457_v38, %v456_v35 }
  0x74   : > { %v450_v41 = vadd.f32 %v449_v39, %v448_v37 }
  0x75   : > { %v459_v42 = vrot.slane %v458_v40, 2 }
  0x76   : > { %v451_v43 = vrot.slane %v450_v41, 2  ;;  %11203 = vmatpush3.bf16.xpose.msra.mxu0 %v13458_v8  ;;  %v768_v8 = vld [vmem:[#allocation6 + $0x148] sm:$0xff] }
  0x77   : > { %v460_v44 = vadd.f32 %v459_v42, %v458_v40  ;;  %11204 = vmatprep.subr.bf16.mxu0 %v16026_v2  ;;  %v871_v42 = vld [vmem:[%s15696_s7] sm:$0xff] }
  0x78   : > { %v452_v45 = vadd.f32 %v451_v43, %v450_v41  ;;  %v872_v43 = vld [vmem:[%s15696_s7 + $0x8] sm:$0x1] }
  0x79   : > { %v461_v46 = vrot.slane %v460_v44, 1 }
  0x7a   : > { %v453_v47 = vrot.slane %v452_v45, 1 }
  0x7b   : > { %v462_v48 = vadd.f32 %v461_v46, %v460_v44  ;;  %v615_v44 = vld [vmem:[#allocation3 + $0x100] sm:$0xff] }
  0x7c   : > { %v454_v49 = vadd.f32 %v453_v47, %v452_v45  ;;  %v616_v45 = vld [vmem:[#allocation3 + $0x108] sm:$0xff]  ;;  %v873_v46 = vld [vmem:[%s15697_s8] sm:$0xff] }
  0x7d   : > { %v464_v50 = vmul.f32 0.083333336, %v462_v48  ;;  %v13524_v47 = vpack.c.bf16 %v616_v45, %v615_v44  ;;  %v617_v48 = vld [vmem:[#allocation3 + $0x110] sm:$0xff]  ;;  %v599_v45 = vld [vmem:[#allocation3 + $0x80] sm:$0xff] }
  0x7e   : > { %v463_v51 = vmul.f32 0.083333336, %v454_v49  ;;  %11206 = vmatpush3.bf16.xpose.msra.mxu0 %v13462_v11  ;;  %v618_v49 = vld [vmem:[#allocation3 + $0x118] sm:$0xff]  ;;  %v767_v11 = vld [vmem:[#allocation6 + $0x140] sm:$0xff] }
  0x7f   : > { %v13419_v52 = vadd.f32 1e-05, %v464_v50  ;;  %11207 = vmatprep.subr.bf16.mxu0 %v16026_v2  ;;  %16117 = vst [vmem:[#allocation34_spill] sm:$0xff] %v13524_v47  ;;  %v13530_v50 = vpack.c.bf16 %v618_v49, %v617_v48 }
  0x80   : > { %v13421_v53 = vadd.f32 1e-05, %v463_v51  ;;  %v619_v51 = vld [vmem:[#allocation3 + $0x120] sm:$0xff] }
  0x81   : > { %16100 = vst [vmem:[#allocation19_spill] sm:$0xff] %v13419_v52  ;;  %13065 = vrsqrt.f32 %v13419_v52  ;;  %16118 = vst [vmem:[#allocation35_spill] sm:$0xff] %v13530_v50  ;;  %v636_v52 = vld [vmem:[#allocation3 + $0x1a8] sm:$0xff] }
  0x82   : > { %16101 = vst [vmem:[#allocation20_spill] sm:$0xff] %v13421_v53  ;;  %13067 = vrsqrt.f32 %v13421_v53  ;;  %v684_v53 = vld [vmem:[#allocation3 + $0x328] sm:$0xff] }
  0x86   : > { %11209 = vmatpush3.bf16.xpose.msra.mxu0 %v13466_v14 }
  0x87   : > { %11210 = vmatprep.subr.bf16.mxu0 %v16026_v2 }
  0x8b   : > { %v13425_v54 = vpop.eup %13065 }
  0x8c   : > { %16102 = vst [vmem:[#allocation21_spill] sm:$0xff] %v13425_v54  ;;  %v13427_v55 = vpop.eup %13067  ;;  %v472_v56 = vmul.f32 %v13425_v54, %v440_v26  ;;  %v474_v57 = vmul.f32 %v13425_v54, %v442_v27  ;;  %v635_v54 = vld [vmem:[#allocation3 + $0x1a0] sm:$0xff] }
  0x8d   : > { %16103 = vst [vmem:[#allocation22_spill] sm:$0xff] %v13427_v55  ;;  %v471_v59 = vmul.f32 %v13427_v55, %v439_v28  ;;  %v473_v60 = vmul.f32 %v13427_v55, %v441_v29  ;;  %v683_v55 = vld [vmem:[#allocation3 + $0x320] sm:$0xff] }
  0x8e   : > { %v11180_v61 = vpack.c.bf16 %v474_v57, %v472_v56  ;;  %11212 = vmatpush3.bf16.xpose.msra.mxu0 %v13470_v17  ;;  %v620_v56 = vld [vmem:[#allocation3 + $0x128] sm:$0xff] }
  0x8f   : > { %v11183_v62 = vpack.c.bf16 %v473_v60, %v471_v59  ;;  %11213 = vmatprep.subr.bf16.mxu0 %v16026_v2  ;;  %v13534_v57 = vpack.c.bf16 %v620_v56, %v619_v51  ;;  %v622_v59 = vld [vmem:[#allocation3 + $0x138] sm:$0xff]  ;;  %v600_v51 = vld [vmem:[#allocation3 + $0x88] sm:$0xff]  ;;  %v647_v56 = vld [vmem:[#allocation3 + $0x200] sm:$0xff] }
  0x90   : > { %11182 = vmatprep.subr.msk.bf16.mxu1 %vm13433_vm2, %v11180_v61  ;;  %v13538_v60 = vpack.c.bf16 %v622_v59, %v621_v58  ;;  %v623_v61 = vld [vmem:[#allocation3 + $0x140] sm:$0xff]  ;;  %v648_v58 = vld [vmem:[#allocation3 + $0x208] sm:$0xff] }
  0x91   : > { %11185 = vmatpush1.bf16.msk.msra.mxu1 %vm13433_vm2, %v11183_v62  ;;  %16119 = vst [vmem:[#allocation36_spill] sm:$0xff] %v13534_v57  ;;  %v624_v62 = vld [vmem:[#allocation3 + $0x148] sm:$0xff]  ;;  %v13586_v6 = vpack.c.bf16 %v648_v58, %v647_v56 }
  0x92   : > { %16120 = vst [vmem:[#allocation37_spill] sm:$0xff] %v13538_v60 }
  0x93   : > { %16127 = vst [vmem:[#allocation44_spill] sm:$0xff] %v13586_v6 }
  0x94   : > { %7392 = vmatmul.mubr.msk.f32.vlgmr.msra.gmra.mrb[0].mxu1 %vm489_vm3, %v475_v63  ;;  %v13542_v63 = vpack.c.bf16 %v624_v62, %v623_v61 }
  0x95   : > { %572 = vmatprep.mubr.f32.mxu1 %v15713_v0 }
  0x96   : > { %11215 = vmatpush3.bf16.xpose.msra.mxu0 %v13474_v20  ;;  %16121 = vst [vmem:[#allocation38_spill] sm:$0xff] %v13542_v63 }
  0x97   : > { %11216 = vmatprep.subr.bf16.mxu0 %v16026_v2 }
  0x98   : > { %7393 = vmatmul.mubr.msk.f32.gmra.mrb[2].mxu1 %vm489_vm3, %v476_v1  ;;  %v625_v1 = vld [vmem:[#allocation3 + $0x150] sm:$0xff] }
  0x99   : > { %951 = vmatprep.mubr.f32.mxu1 %v15713_v0  ;;  %v13546_v4 = vpack.c.bf16 %v626_v3, %v625_v1  ;;  %v13584_v3 = vpack.c.bf16 %v600_v51, %v599_v45  ;;  %v606_v45 = vld [vmem:[#allocation3 + $0xb8] sm:$0xff] }
  0x9b   : > { %16122 = vst [vmem:[#allocation39_spill] sm:$0xff] %v13546_v4  ;;  %16126 = vst [vmem:[#allocation43_spill] sm:$0xff] %v13584_v3 }
  0x9e   : > { %11218 = vmatpush3.bf16.xpose.msra.mxu0 %v13478_v23 }
  0x9f   : > { %11219 = vmatprep.subr.bf16.mxu0 %v16026_v2 }
  0xa6   : > { %11221 = vmatpush3.bf16.xpose.msra.mxu0 %v13554_v15  ;;  %v812_v15 = vld [vmem:[#allocation6 + $0x2a8] sm:$0xff] }
  0xa7   : > { %11222 = vmatprep.subr.bf16.mxu0 %v16026_v2 }
  0xd3   : > { %v482_v26 = vpop.permute.xlu0 %481 }
  0xd7   : > { %v487_v29 = vpop.permute.xlu0 %486 }
 0x167   : > { %v568_v27 = vpop.f32.mrb[0].mxu1 }
 0x168   : > { %v570_v28 = vpop.f32.mrb[1].mxu1  ;;  %v13484_v32 = vadd.f32 %v568_v27, %v482_v26  ;;  %v1050_v27 = vunpack.c.0.s8 %v1049_v22  ;;  %v650_v22 = vld [vmem:[#allocation3 + $0x218] sm:$0xff] }
 0x169   : > { %v13482_v30 = vadd.f32 %v570_v28, %v482_v26  ;;  %v1051_v26 = vlaneseq }
 0x16a   : > { %16114 = vst [vmem:[#allocation31_spill] sm:$0xff] %v13484_v32  ;;  %v15712_v39 = vmax.f32 %v13484_v32, 0.0 }
 0x16b   : > { %16113 = vst [vmem:[#allocation30_spill] sm:$0xff] %v13482_v30  ;;  %v574_v31 = vpop.f32.mrb[2].mxu1  ;;  %v15711_v37 = vmax.f32 %v13482_v30, 0.0  ;;  %v1052_v28 = vshrl.u32 %v1051_v26, 7  ;;  %v686_v30 = vld [vmem:[#allocation3 + $0x338] sm:$0xff] }
 0x16c   : > { %v13486_v33 = vadd.f32 %v574_v31, %v487_v29  ;;  %v576_v34 = vpop.f32.mrb[3].mxu1 }
 0x16d   : > { %v13488_v35 = vadd.f32 %v576_v34, %v487_v29  ;;  %v13213_v29 = vmov 1934713408   ;;  %v13570_v34 = vsub.s32 %v1050_v27, %v1052_v28  ;;  %v13610_v27 = vpack.c.bf16 %v650_v22, %v649_v21  ;;  %v607_v21 = vld [vmem:[#allocation3 + $0xc0] sm:$0xff] }
 0x16e   : > { %16115 = vst [vmem:[#allocation32_spill] sm:$0xff] %v13486_v33  ;;  %v15710_v36 = vmax.f32 %v13486_v33, 0.0  ;;  %v1080_v31 = vunpack.c.l.s4 %v13213_v29  ;;  %v604_v29 = vld [vmem:[#allocation3 + $0xa8] sm:$0xff]  ;;  %v13726_v33 = vpack.c.bf16 %v684_v53, %v683_v55  ;;  %v639_v55 = vld [vmem:[#allocation3 + $0x1c0] sm:$0xff] }
 0x16f   : > { %16116 = vst [vmem:[#allocation33_spill] sm:$0xff] %v13488_v35  ;;  %v15709_v38 = vmax.f32 %v13488_v35, 0.0  ;;  %16129 = vst [vmem:[#allocation46_spill] sm:$0xff] %v13610_v27  ;;  %v13724_v35 = vpack.c.bf16 %v636_v52, %v635_v54 }
 0x170   : > { %v11189_v41 = vpack.c.bf16 %v15710_v36, %v15712_v39  ;;  %v611_v39 = vld [vmem:[#allocation3 + $0xe0] sm:$0xff]  ;;  %16149 = vst [vmem:[#allocation64_spill] sm:$0xff] %v13726_v33 }
 0x171   : > { %v11186_v40 = vpack.c.bf16 %v15709_v38, %v15711_v37  ;;  %v610_v37 = vld [vmem:[#allocation3 + $0xd8] sm:$0xff]  ;;  %16148 = vst [vmem:[#allocation63_spill] sm:$0xff] %v13724_v35 }
 0x173   : > { %11188 = vmatprep.subr.msk.bf16.mxu1 %vm13433_vm2, %v11186_v40 }
 0x174   : > { %11191 = vmatpush1.bf16.msk.msra.mxu1 %vm13433_vm2, %v11189_v41 }
 0x175   : > { %11194 = vmatprep.subr.msk.bf16.mxu1 %vm13433_vm2, %v11186_v40  ;;  %v1081_v40 = vunpack.c.0.s8 %v1080_v31  ;;  %v651_v31 = vld [vmem:[#allocation3 + $0x220] sm:$0xff] }
 0x177   : > { %7396 = vmatmul.mubr.msk.f32.vlgmr.msra.gmra.mrb[4].mxu1 %vm489_vm3, %v871_v42  ;;  %v13576_v49 = vsub.s32 %v1081_v40, %v1052_v28  ;;  %v603_v28 = vld [vmem:[#allocation3 + $0xa0] sm:$0xff]  ;;  %v652_v40 = vld [vmem:[#allocation3 + $0x228] sm:$0xff] }
 0x178   : > { %11197 = vmatpush1.bf16.msk.msra.mxu1 %vm13433_vm2, %v11189_v41  ;;  %957 = vmatprep.mubr.f32.mxu1 %v15713_v0 }
 0x179   : > { %11246 = vmatprep.subr.bf16.mxu1 %v16026_v2 }
 0x17b   : > { %7397 = vmatmul.mubr.msk.f32.gmra.mrb[6].mxu1 %vm489_vm3, %v872_v43 }
 0x17c   : > { %1034 = vmatprep.mubr.f32.mxu1 %v15713_v0 }
 0x17f   : > { %7400 = vmatmul.mubr.msk.f32.vlgmr.msra.gmra.mrb[8].mxu1 %vm489_vm3, %v873_v46 }
 0x180   : > { %1040 = vmatprep.mubr.f32.mxu1 %v15713_v0 }
 0x181   : > { %11248 = vmatpush3.bf16.xpose.msra.mxu1 %v13524_v47 }
 0x182   : > { %11249 = vmatprep.subr.bf16.mxu1 %v16026_v2 }
 0x183   : > { %7401 = vmatmul.mubr.msk.f32.gmra.mrb[10].mxu1 %vm489_vm3, %v874_v19  ;;  %v602_v19 = vld [vmem:[#allocation3 + $0x98] sm:$0xff] }
 0x184   : > { %8762 = vmatprep.mubr.msk.f32.mxu1 %vm13211_vm4, %v15713_v0  ;;  %v13608_v26 = vpack.c.bf16 %v602_v19, %v601_v16 }
 0x186   : > { %16128 = vst [vmem:[#allocation45_spill] sm:$0xff] %v13608_v26 }
 0x189   : > { %11251 = vmatpush3.bf16.xpose.msra.mxu1 %v13530_v50 }
 0x18a   : > { %11252 = vmatprep.subr.bf16.mxu1 %v16026_v2 }
 0x191   : > { %11254 = vmatpush3.bf16.xpose.msra.mxu1 %v13534_v57 }
 0x192   : > { %11255 = vmatprep.subr.bf16.mxu1 %v16026_v2 }
 0x199   : > { %11257 = vmatpush3.bf16.xpose.msra.mxu1 %v13538_v60  ;;  %v783_v60 = vld [vmem:[#allocation6 + $0x1c0] sm:$0xff] }
 0x19a   : > { %11258 = vmatprep.subr.bf16.mxu1 %v16026_v2 }
 0x1a1   : > { %11260 = vmatpush3.bf16.xpose.msra.mxu1 %v13542_v63  ;;  %v735_v63 = vld [vmem:[#allocation6 + $0x40] sm:$0xff] }
 0x1a2   : > { %11261 = vmatprep.subr.bf16.mxu1 %v16026_v2 }
 0x1a9   : > { %11263 = vmatpush3.bf16.xpose.msra.mxu1 %v13546_v4 }
 0x1aa   : > { %11264 = vmatprep.subr.bf16.mxu1 %v16026_v2 }
 0x1b1   : > { %11266 = vmatpush3.bf16.xpose.msra.mxu1 %v13550_v9 }
 0x1b2   : > { %11267 = vmatprep.subr.bf16.mxu1 %v16026_v2 }
 0x1b9   : > { %11269 = vmatpush3.bf16.xpose.msra.mxu1 %v13556_v18  ;;  %v779_v18 = vld [vmem:[#allocation6 + $0x1a0] sm:$0xff] }
 0x1ba   : > { %11294 = vmatprep.subr.bf16.mxu1 %v16026_v2 }
 0x24a   : > { %v953_v41 = vpop.f32.mrb[4].mxu1 }
 0x24b   : > { %v1047_v42 = vcombine.high %v953_v41, %v15713_v0  ;;  %v1054_v43 = vrot.slane %v953_v41, %v13570_v34  ;;  %v955_v44 = vpop.f32.mrb[5].mxu1  ;;  %v13616_v41 = vpack.c.bf16 %v604_v29, %v603_v28  ;;  %v608_v28 = vld [vmem:[#allocation3 + $0xc8] sm:$0xff]  ;;  %v655_v29 = vld [vmem:[#allocation3 + $0x240] sm:$0xff] }
 0x24c   : > { %v1062_v46 = vcombine.high %v955_v44, %v15713_v0  ;;  %v1069_v48 = vrot.slane %v955_v44, %v13570_v34  ;;  %v13656_v38 = vpack.c.bf16 %v608_v28, %v607_v21  ;;  %v657_v21 = vld [vmem:[#allocation3 + $0x250] sm:$0xff]  ;;  %v658_v28 = vld [vmem:[#allocation3 + $0x258] sm:$0xff] }
 0x24d   : > { %v13579_v59 = vrot.slane %v1047_v42, %v13570_v34  ;;  %16130 = vst [vmem:[#allocation47_spill] sm:$0xff] %v13616_v41  ;;  %v13618_v42 = vpack.c.bf16 %v652_v40, %v651_v31  ;;  %v656_v31 = vld [vmem:[#allocation3 + $0x248] sm:$0xff] }
 0x24e   : > { %v13582_v61 = vrot.slane %v1062_v46, %v13570_v34  ;;  %v1077_v62 = vcombine.low %v1054_v43, %v1069_v48  ;;  %v1078_v1 = vcombine.high %v1054_v43, %v1069_v48  ;;  %v605_v43 = vld [vmem:[#allocation3 + $0xb0] sm:$0xff]  ;;  %v13622_v44 = vpop.f32.mrb[6].mxu1  ;;  %v654_v48 = vld [vmem:[#allocation3 + $0x238] sm:$0xff]  ;;  %16134 = vst [vmem:[#allocation51_spill] sm:$0xff] %v13656_v38  ;;  %v13658_v36 = vpack.c.bf16 %v656_v31, %v655_v29 }
 0x24f   : > { %16131 = vst [vmem:[#allocation48_spill] sm:$0xff] %v13618_v42  ;;  %v653_v46 = vld [vmem:[#allocation3 + $0x230] sm:$0xff]  ;;  %v13626_v51 = vpop.f32.mrb[7].mxu1  ;;  %v13670_v31 = vpack.c.bf16 %v658_v28, %v657_v21  ;;  %v662_v28 = vld [vmem:[#allocation3 + $0x278] sm:$0xff] }
 0x250   : > { %v13589_v7 = vrot.slane %v1078_v1, %v13576_v49  ;;  %v13596_v13 = vrot.slane %v1077_v62, %v13576_v49  ;;  %v13630_v62 = vpack.c.bf16 %v606_v45, %v605_v43  ;;  %v13632_v1 = vpack.c.bf16 %v654_v48, %v653_v46  ;;  %16135 = vst [vmem:[#allocation52_spill] sm:$0xff] %v13658_v36  ;;  %v661_v21 = vld [vmem:[#allocation3 + $0x270] sm:$0xff] }
 0x251   : > { %16137 = vst [vmem:[#allocation54_spill] sm:$0xff] %v13670_v31  ;;  %v13686_v10 = vpack.c.bf16 %v662_v28, %v661_v21  ;;  %v16145_v21 = vcombine.low %v13579_v59, %v13582_v61 }
 0x252   : > { %8693 = vmatmul.mubr.f32.vlgmr.msra.gmra.mrb[0].mxu0 %v13596_v13  ;;  %8763 = vmatmul.mubr.f32.vlgmr.msra.gmra.mrb[12].mxu1 %v13589_v7  ;;  %v1036_v58 = vpop.f32.mrb[8].mxu1  ;;  %16132 = vst [vmem:[#allocation49_spill] sm:$0xff] %v13630_v62  ;;  %16133 = vst [vmem:[#allocation50_spill] sm:$0xff] %v13632_v1 }
 0x253   : > { %11224 = vmatpush3.bf16.xpose.msra.mxu0 %v13584_v3  ;;  %11296 = vmatpush3.bf16.xpose.msra.mxu1 %v13586_v6  ;;  %v1121_v16 = vcombine.high %v1036_v58, %v15713_v0  ;;  %v13636_v19 = vrot.slane %v1036_v58, %v13570_v34  ;;  %v1038_v22 = vpop.f32.mrb[9].mxu1  ;;  %v660_v58 = vld [vmem:[#allocation3 + $0x268] sm:$0xff]  ;;  %16141 = vst [vmem:[#allocation58_spill] sm:$0xff] %v13686_v10 }
 0x254   : > { %11225 = vmatprep.subr.bf16.mxu0 %v16026_v2  ;;  %11297 = vmatprep.subr.bf16.mxu1 %v16026_v2  ;;  %v1136_v43 = vcombine.high %v1038_v22, %v15713_v0  ;;  %v13647_v45 = vrot.slane %v1038_v22, %v13570_v34  ;;  %v612_v22 = vld [vmem:[#allocation3 + $0xe8] sm:$0xff]  ;;  %v13704_v28 = vrot.slane %v16145_v21, %v13576_v49 }
 0x255   : > { %8727 = vmatprep.mubr.msk.f32.mxu0 %vm13211_vm4, %v15713_v0  ;;  %8832 = vmatprep.mubr.msk.f32.mxu1 %vm13211_vm4, %v15713_v0  ;;  %v13643_v40 = vrot.slane %v1121_v16, %v13570_v34  ;;  %v659_v16 = vld [vmem:[#allocation3 + $0x260] sm:$0xff]  ;;  %v13676_v48 = vpack.c.bf16 %v612_v22, %v611_v39  ;;  %v680_v22 = vld [vmem:[#allocation3 + $0x308] sm:$0xff] }
 0x256   : > { %v13650_v46 = vrot.slane %v1136_v43, %v13570_v34  ;;  %v609_v43 = vld [vmem:[#allocation3 + $0xd0] sm:$0xff]  ;;  %v13678_v56 = vpack.c.bf16 %v660_v58, %v659_v16  ;;  %v631_v39 = vld [vmem:[#allocation3 + $0x180] sm:$0xff]  ;;  %v632_v58 = vld [vmem:[#allocation3 + $0x188] sm:$0xff] }
 0x257   : > { %v13668_v29 = vpack.c.bf16 %v610_v37, %v609_v43  ;;  %16138 = vst [vmem:[#allocation55_spill] sm:$0xff] %v13676_v48  ;;  %v613_v37 = vld [vmem:[#allocation3 + $0xf0] sm:$0xff]  ;;  %v614_v43 = vld [vmem:[#allocation3 + $0xf8] sm:$0xff]  ;;  %v679_v16 = vld [vmem:[#allocation3 + $0x300] sm:$0xff]  ;;  %v13692_v0 = vpack.c.bf16 %v632_v58, %v631_v39 }
 0x258   : > { %16139 = vst [vmem:[#allocation56_spill] sm:$0xff] %v13678_v56  ;;  %v13684_v12 = vpack.c.bf16 %v614_v43, %v613_v37  ;;  %v13694_v24 = vpack.c.bf16 %v680_v22, %v679_v16  ;;  %v16144_v37 = vmov 0.0   ;;  %v633_v39 = vld [vmem:[#allocation3 + $0x190] sm:$0xff]  ;;  %v634_v58 = vld [vmem:[#allocation3 + $0x198] sm:$0xff] }
 0x259   : > { %16136 = vst [vmem:[#allocation53_spill] sm:$0xff] %v13668_v29  ;;  %16142 = vst [vmem:[#allocation59_spill] sm:$0xff] %v13692_v0  ;;  %v13698_v43 = vcombine.high %v13596_v13, %v16144_v37  ;;  %v681_v16 = vld [vmem:[#allocation3 + $0x310] sm:$0xff]  ;;  %v682_v22 = vld [vmem:[#allocation3 + $0x318] sm:$0xff]  ;;  %v13716_v21 = vpack.c.bf16 %v634_v58, %v633_v39  ;;  %v13730_v58 = vpop.f32.mrb[10].mxu1 }
 0x25a   : > { %16140 = vst [vmem:[#allocation57_spill] sm:$0xff] %v13684_v12  ;;  %16143 = vst [vmem:[#allocation60_spill] sm:$0xff] %v13694_v24  ;;  %v13718_v25 = vpack.c.bf16 %v682_v22, %v681_v16  ;;  %v637_v39 = vld [vmem:[#allocation3 + $0x1b0] sm:$0xff]  ;;  %v638_v16 = vld [vmem:[#allocation3 + $0x1b8] sm:$0xff]  ;;  %v13734_v32 = vpop.f32.mrb[11].mxu1 }
 0x25b   : > { %11227 = vmatpush3.bf16.xpose.msra.mxu0 %v13608_v26  ;;  %11299 = vmatpush3.bf16.xpose.msra.mxu1 %v13610_v27  ;;  %16146 = vst [vmem:[#allocation61_spill] sm:$0xff] %v13716_v21  ;;  %v685_v22 = vld [vmem:[#allocation3 + $0x330] sm:$0xff]  ;;  %v13738_v53 = vpack.c.bf16 %v638_v16, %v637_v39  ;;  %v642_v39 = vld [vmem:[#allocation3 + $0x1d8] sm:$0xff] }
 0x25c   : > { %11228 = vmatprep.subr.bf16.mxu0 %v16026_v2  ;;  %11300 = vmatprep.subr.bf16.mxu1 %v16026_v2  ;;  %16147 = vst [vmem:[#allocation62_spill] sm:$0xff] %v13718_v25  ;;  %v13740_v54 = vpack.c.bf16 %v686_v30, %v685_v22  ;;  %v641_v30 = vld [vmem:[#allocation3 + $0x1d0] sm:$0xff]  ;;  %v690_v22 = vld [vmem:[#allocation3 + $0x358] sm:$0xff] }
 0x25d   : > { %16150 = vst [vmem:[#allocation65_spill] sm:$0xff] %v13738_v53  ;;  %v689_v16 = vld [vmem:[#allocation3 + $0x350] sm:$0xff]  ;;  %v13754_v52 = vpack.c.bf16 %v642_v39, %v641_v30  ;;  %v646_v39 = vld [vmem:[#allocation3 + $0x1f8] sm:$0xff] }
 0x25e   : > { %16151 = vst [vmem:[#allocation66_spill] sm:$0xff] %v13740_v54  ;;  %v645_v30 = vld [vmem:[#allocation3 + $0x1f0] sm:$0xff] }
 0x25f   : > { %16154 = vst [vmem:[#allocation69_spill] sm:$0xff] %v13754_v52 }
 0x263   : > { %11230 = vmatpush3.bf16.xpose.msra.mxu0 %v13616_v41  ;;  %11302 = vmatpush3.bf16.xpose.msra.mxu1 %v13618_v42  ;;  %v752_v42 = vld [vmem:[#allocation6 + $0xc8] sm:$0xff] }
 0x264   : > { %11231 = vmatprep.subr.bf16.mxu0 %v16026_v2  ;;  %11303 = vmatprep.subr.bf16.mxu1 %v16026_v2 }
 0x26b   : > { %11233 = vmatpush3.bf16.xpose.msra.mxu0 %v13630_v62  ;;  %11305 = vmatpush3.bf16.xpose.msra.mxu1 %v13632_v1  ;;  %v704_v1 = vld [vmem:[#allocation3 + $0x3c8] sm:$0xff] }
 0x26c   : > { %11234 = vmatprep.subr.bf16.mxu0 %v16026_v2  ;;  %11306 = vmatprep.subr.bf16.mxu1 %v16026_v2  ;;  %v784_v62 = vld [vmem:[#allocation6 + $0x1c8] sm:$0xff] }
 0x273   : > { %11236 = vmatpush3.bf16.xpose.msra.mxu0 %v13656_v38  ;;  %11308 = vmatpush3.bf16.xpose.msra.mxu1 %v13658_v36  ;;  %v736_v38 = vld [vmem:[#allocation6 + $0x48] sm:$0xff] }
 0x274   : > { %11237 = vmatprep.subr.bf16.mxu0 %v16026_v2  ;;  %11309 = vmatprep.subr.bf16.mxu1 %v16026_v2  ;;  %v13998_v57 = vpack.c.bf16 %v736_v38, %v735_v63  ;;  %v739_v38 = vld [vmem:[#allocation6 + $0x60] sm:$0xff] }
 0x275   : > { %v787_v63 = vld [vmem:[#allocation6 + $0x1e0] sm:$0xff] }
 0x276   : > { %16210 = vst [vmem:[#allocation122_spill] sm:$0xff] %v13998_v57 }
 0x27b   : > { %11239 = vmatpush3.bf16.xpose.msra.mxu0 %v13668_v29  ;;  %11311 = vmatpush3.bf16.xpose.msra.mxu1 %v13670_v31 }
 0x27c   : > { %11240 = vmatprep.subr.bf16.mxu0 %v16026_v2  ;;  %11312 = vmatprep.subr.bf16.mxu1 %v16026_v2 }
 0x283   : > { %11242 = vmatpush3.bf16.xpose.msra.mxu0 %v13676_v48  ;;  %11314 = vmatpush3.bf16.xpose.msra.mxu1 %v13678_v56 }
 0x284   : > { %11243 = vmatprep.subr.bf16.mxu0 %v16026_v2  ;;  %11315 = vmatprep.subr.bf16.mxu1 %v16026_v2 }
 0x28b   : > { %11245 = vmatpush3.bf16.xpose.msra.mxu0 %v13684_v12  ;;  %11317 = vmatpush3.bf16.xpose.msra.mxu1 %v13686_v10  ;;  %v780_v12 = vld [vmem:[#allocation6 + $0x1a8] sm:$0xff] }
 0x28c   : > { %11270 = vmatprep.subr.bf16.mxu0 %v16026_v2  ;;  %11342 = vmatprep.subr.bf16.mxu1 %v16026_v2  ;;  %v13980_v48 = vpack.c.bf16 %v780_v12, %v779_v18 }
 0x28e   : > { %16207 = vst [vmem:[#allocation119_spill] sm:$0xff] %v13980_v48 }
 0x292   : > { %8728 = vmatmul.mubr.f32.vlgmr.msra.gmra.mrb[2].mxu0 %v13698_v43  ;;  %8833 = vmatmul.mubr.f32.vlgmr.msra.gmra.mrb[14].mxu1 %v13704_v28 }
 0x293   : > { %11272 = vmatpush3.bf16.xpose.msra.mxu0 %v13692_v0  ;;  %11344 = vmatpush3.bf16.xpose.msra.mxu1 %v13694_v24  ;;  %v688_v24 = vld [vmem:[#allocation3 + $0x348] sm:$0xff]  ;;  %v731_v0 = vld [vmem:[#allocation6 + $0x20] sm:$0xff] }
 0x294   : > { %11273 = vmatprep.subr.bf16.mxu0 %v16026_v2  ;;  %11345 = vmatprep.subr.bf16.mxu1 %v16026_v2 }
 0x295   : > { %8797 = vmatprep.mubr.msk.f32.mxu0 %vm13211_vm4, %v16144_v37  ;;  %8902 = vmatprep.mubr.msk.f32.mxu1 %vm13211_vm4, %v16144_v37 }
 0x29b   : > { %11275 = vmatpush3.bf16.xpose.msra.mxu0 %v13716_v21  ;;  %11347 = vmatpush3.bf16.xpose.msra.mxu1 %v13718_v25  ;;  %v687_v25 = vld [vmem:[#allocation3 + $0x340] sm:$0xff] }
 0x29c   : > { %11276 = vmatprep.subr.bf16.mxu0 %v16026_v2  ;;  %11348 = vmatprep.subr.bf16.mxu1 %v16026_v2  ;;  %v13748_v56 = vpack.c.bf16 %v688_v24, %v687_v25  ;;  %v643_v24 = vld [vmem:[#allocation3 + $0x1e0] sm:$0xff]  ;;  %v644_v25 = vld [vmem:[#allocation3 + $0x1e8] sm:$0xff] }
 0x29e   : > { %16153 = vst [vmem:[#allocation68_spill] sm:$0xff] %v13748_v56 }
 0x2a3   : > { %11278 = vmatpush3.bf16.xpose.msra.mxu0 %v13724_v35  ;;  %11350 = vmatpush3.bf16.xpose.msra.mxu1 %v13726_v33  ;;  %v640_v33 = vld [vmem:[#allocation3 + $0x1c8] sm:$0xff] }
 0x2a4   : > { %11279 = vmatprep.subr.bf16.mxu0 %v16026_v2  ;;  %11351 = vmatprep.subr.bf16.mxu1 %v16026_v2  ;;  %v13746_v10 = vpack.c.bf16 %v640_v33, %v639_v55  ;;  %v691_v33 = vld [vmem:[#allocation3 + $0x360] sm:$0xff]  ;;  %v692_v55 = vld [vmem:[#allocation3 + $0x368] sm:$0xff] }
 0x2a5   : > { %v13764_v31 = vpack.c.bf16 %v692_v55, %v691_v33  ;;  %v711_v33 = vld [vmem:[#allocation3 + $0x400] sm:$0xff]  ;;  %v712_v55 = vld [vmem:[#allocation3 + $0x408] sm:$0xff] }
 0x2a6   : > { %16152 = vst [vmem:[#allocation67_spill] sm:$0xff] %v13746_v10 }
 0x2a7   : > { %16157 = vst [vmem:[#allocation72_spill] sm:$0xff] %v13764_v31 }
 0x2ab   : > { %11281 = vmatpush3.bf16.xpose.msra.mxu0 %v13738_v53  ;;  %11353 = vmatpush3.bf16.xpose.msra.mxu1 %v13740_v54  ;;  %v13756_v54 = vpack.c.bf16 %v690_v22, %v689_v16  ;;  %v693_v16 = vld [vmem:[#allocation3 + $0x370] sm:$0xff]  ;;  %v694_v22 = vld [vmem:[#allocation3 + $0x378] sm:$0xff]  ;;  %v751_v53 = vld [vmem:[#allocation6 + $0xc0] sm:$0xff] }
 0x2ac   : > { %11282 = vmatprep.subr.bf16.mxu0 %v16026_v2  ;;  %11354 = vmatprep.subr.bf16.mxu1 %v16026_v2 }
 0x2ad   : > { %16155 = vst [vmem:[#allocation70_spill] sm:$0xff] %v13756_v54 }
 0x2b3   : > { %11284 = vmatpush3.bf16.xpose.msra.mxu0 %v13746_v10  ;;  %11356 = vmatpush3.bf16.xpose.msra.mxu1 %v13748_v56  ;;  %v13762_v56 = vpack.c.bf16 %v644_v25, %v643_v24  ;;  %v663_v24 = vld [vmem:[#allocation3 + $0x280] sm:$0xff]  ;;  %v664_v25 = vld [vmem:[#allocation3 + $0x288] sm:$0xff] }
 0x2b4   : > { %11285 = vmatprep.subr.bf16.mxu0 %v16026_v2  ;;  %11357 = vmatprep.subr.bf16.mxu1 %v16026_v2 }
 0x2b5   : > { %16156 = vst [vmem:[#allocation71_spill] sm:$0xff] %v13762_v56 }
 0x2bb   : > { %11287 = vmatpush3.bf16.xpose.msra.mxu0 %v13754_v52  ;;  %11359 = vmatpush3.bf16.xpose.msra.mxu1 %v13756_v54  ;;  %v13770_v54 = vpack.c.bf16 %v646_v39, %v645_v30  ;;  %v13772_v52 = vpack.c.bf16 %v694_v22, %v693_v16  ;;  %v13784_v30 = vcombine.high %v13589_v7, %v16144_v37  ;;  %v665_v22 = vld [vmem:[#allocation3 + $0x290] sm:$0xff] }
 0x2bc   : > { %11288 = vmatprep.subr.bf16.mxu0 %v16026_v2  ;;  %11360 = vmatprep.subr.bf16.mxu1 %v16026_v2  ;;  %v16163_v39 = vcombine.high %v13579_v59, %v13582_v61 }
 0x2bd   : > { %16158 = vst [vmem:[#allocation73_spill] sm:$0xff] %v13770_v54  ;;  %16159 = vst [vmem:[#allocation74_spill] sm:$0xff] %v13772_v52 }
 0x2be   : > { %16162 = vst [vmem:[#allocation77_spill] sm:$0xff] %v13784_v30  ;;  %v13790_v16 = vrot.slane %v16163_v39, %v13576_v49  ;;  %v668_v39 = vld [vmem:[#allocation3 + $0x2a8] sm:$0xff] }
 0x2c0   : > { %16164 = vst [vmem:[#allocation78_spill] sm:$0xff] %v13790_v16 }
 0x2c3   : > { %11290 = vmatpush3.bf16.xpose.msra.mxu0 %v13762_v56  ;;  %11362 = vmatpush3.bf16.xpose.msra.mxu1 %v13764_v31  ;;  %v13778_v31 = vpack.c.bf16 %v664_v25, %v663_v24  ;;  %v13780_v56 = vpack.c.bf16 %v712_v55, %v711_v33  ;;  %v666_v24 = vld [vmem:[#allocation3 + $0x298] sm:$0xff]  ;;  %v713_v25 = vld [vmem:[#allocation3 + $0x410] sm:$0xff]  ;;  %v667_v55 = vld [vmem:[#allocation3 + $0x2a0] sm:$0xff] }
 0x2c4   : > { %11291 = vmatprep.subr.bf16.mxu0 %v16026_v2  ;;  %11363 = vmatprep.subr.bf16.mxu1 %v16026_v2  ;;  %v714_v33 = vld [vmem:[#allocation3 + $0x418] sm:$0xff]  ;;  %v13802_v59 = vpack.c.bf16 %v666_v24, %v665_v22  ;;  %v669_v22 = vld [vmem:[#allocation3 + $0x2b0] sm:$0xff] }
 0x2c5   : > { %16160 = vst [vmem:[#allocation75_spill] sm:$0xff] %v13778_v31  ;;  %16161 = vst [vmem:[#allocation76_spill] sm:$0xff] %v13780_v56  ;;  %v13804_v61 = vpack.c.bf16 %v714_v33, %v713_v25  ;;  %v670_v24 = vld [vmem:[#allocation3 + $0x2b8] sm:$0xff]  ;;  %v717_v25 = vld [vmem:[#allocation3 + $0x430] sm:$0xff] }
 0x2c6   : > { %16165 = vst [vmem:[#allocation79_spill] sm:$0xff] %v13802_v59  ;;  %v718_v33 = vld [vmem:[#allocation3 + $0x438] sm:$0xff] }
 0x2c7   : > { %16166 = vst [vmem:[#allocation80_spill] sm:$0xff] %v13804_v61 }
 0x2cb   : > { %11293 = vmatpush3.bf16.xpose.msra.mxu0 %v13770_v54  ;;  %11365 = vmatpush3.bf16.xpose.msra.mxu1 %v13772_v52  ;;  %v716_v52 = vld [vmem:[#allocation3 + $0x428] sm:$0xff] }
 0x2cc   : > { %11318 = vmatprep.subr.bf16.mxu0 %v16026_v2  ;;  %11390 = vmatprep.subr.bf16.mxu1 %v16026_v2 }
 0x2d2   : > { %8798 = vmatmul.mubr.f32.vlgmr.msra.gmra.mrb[4].mxu0 %v13784_v30  ;;  %8903 = vmatmul.mubr.f32.vlgmr.msra.gmra.mrb[16].mxu1 %v13790_v16 }
 0x2d3   : > { %11320 = vmatpush3.bf16.xpose.msra.mxu0 %v13778_v31  ;;  %11392 = vmatpush3.bf16.xpose.msra.mxu1 %v13780_v56  ;;  %v715_v56 = vld [vmem:[#allocation3 + $0x420] sm:$0xff]  ;;  %v13810_v31 = vpack.c.bf16 %v668_v39, %v667_v55  ;;  %v720_v39 = vld [vmem:[#allocation3 + $0x448] sm:$0xff] }
 0x2d4   : > { %11321 = vmatprep.subr.bf16.mxu0 %v16026_v2  ;;  %11393 = vmatprep.subr.bf16.mxu1 %v16026_v2  ;;  %v13812_v54 = vpack.c.bf16 %v716_v52, %v715_v56  ;;  %v671_v56 = vld [vmem:[#allocation3 + $0x2c0] sm:$0xff]  ;;  %v672_v52 = vld [vmem:[#allocation3 + $0x2c8] sm:$0xff] }
 0x2d5   : > { %8867 = vmatprep.mubr.msk.f32.mxu0 %vm13211_vm4, %v16144_v37  ;;  %8972 = vmatprep.mubr.msk.f32.mxu1 %vm13211_vm4, %v16144_v37  ;;  %16167 = vst [vmem:[#allocation81_spill] sm:$0xff] %v13810_v31  ;;  %v719_v55 = vld [vmem:[#allocation3 + $0x440] sm:$0xff] }
 0x2d6   : > { %16168 = vst [vmem:[#allocation82_spill] sm:$0xff] %v13812_v54 }
 0x2db   : > { %11323 = vmatpush3.bf16.xpose.msra.mxu0 %v13802_v59  ;;  %11395 = vmatpush3.bf16.xpose.msra.mxu1 %v13804_v61  ;;  %v13818_v61 = vpack.c.bf16 %v670_v24, %v669_v22  ;;  %v13820_v59 = vpack.c.bf16 %v718_v33, %v717_v25  ;;  %v673_v22 = vld [vmem:[#allocation3 + $0x2d0] sm:$0xff]  ;;  %v674_v24 = vld [vmem:[#allocation3 + $0x2d8] sm:$0xff] }
 0x2dc   : > { %11324 = vmatprep.subr.bf16.mxu0 %v16026_v2  ;;  %11396 = vmatprep.subr.bf16.mxu1 %v16026_v2  ;;  %v721_v25 = vld [vmem:[#allocation3 + $0x450] sm:$0xff]  ;;  %v722_v33 = vld [vmem:[#allocation3 + $0x458] sm:$0xff] }
 0x2dd   : > { %16169 = vst [vmem:[#allocation83_spill] sm:$0xff] %v13818_v61  ;;  %16170 = vst [vmem:[#allocation84_spill] sm:$0xff] %v13820_v59 }
 0x2e3   : > { %11326 = vmatpush3.bf16.xpose.msra.mxu0 %v13810_v31  ;;  %11398 = vmatpush3.bf16.xpose.msra.mxu1 %v13812_v54  ;;  %v13826_v54 = vpack.c.bf16 %v672_v52, %v671_v56  ;;  %v13828_v31 = vpack.c.bf16 %v720_v39, %v719_v55  ;;  %v675_v56 = vld [vmem:[#allocation3 + $0x2e0] sm:$0xff]  ;;  %v676_v52 = vld [vmem:[#allocation3 + $0x2e8] sm:$0xff] }
 0x2e4   : > { %11327 = vmatprep.subr.bf16.mxu0 %v16026_v2  ;;  %11399 = vmatprep.subr.bf16.mxu1 %v16026_v2  ;;  %v723_v55 = vld [vmem:[#allocation3 + $0x460] sm:$0xff]  ;;  %v724_v39 = vld [vmem:[#allocation3 + $0x468] sm:$0xff] }
 0x2e5   : > { %16171 = vst [vmem:[#allocation85_spill] sm:$0xff] %v13826_v54  ;;  %16172 = vst [vmem:[#allocation86_spill] sm:$0xff] %v13828_v31 }
 0x2eb   : > { %11329 = vmatpush3.bf16.xpose.msra.mxu0 %v13818_v61  ;;  %11401 = vmatpush3.bf16.xpose.msra.mxu1 %v13820_v59  ;;  %v13834_v59 = vpack.c.bf16 %v674_v24, %v673_v22  ;;  %v13836_v61 = vpack.c.bf16 %v722_v33, %v721_v25  ;;  %v677_v22 = vld [vmem:[#allocation3 + $0x2f0] sm:$0xff]  ;;  %v678_v24 = vld [vmem:[#allocation3 + $0x2f8] sm:$0xff] }
 0x2ec   : > { %11330 = vmatprep.subr.bf16.mxu0 %v16026_v2  ;;  %11402 = vmatprep.subr.bf16.mxu1 %v16026_v2  ;;  %v725_v25 = vld [vmem:[#allocation3 + $0x470] sm:$0xff]  ;;  %v726_v33 = vld [vmem:[#allocation3 + $0x478] sm:$0xff] }
 0x2ed   : > { %16173 = vst [vmem:[#allocation87_spill] sm:$0xff] %v13834_v59  ;;  %16174 = vst [vmem:[#allocation88_spill] sm:$0xff] %v13836_v61 }
 0x2f3   : > { %11332 = vmatpush3.bf16.xpose.msra.mxu0 %v13826_v54  ;;  %11404 = vmatpush3.bf16.xpose.msra.mxu1 %v13828_v31  ;;  %v13842_v31 = vpack.c.bf16 %v676_v52, %v675_v56  ;;  %v13844_v54 = vpack.c.bf16 %v724_v39, %v723_v55  ;;  %v695_v56 = vld [vmem:[#allocation3 + $0x380] sm:$0xff]  ;;  %v696_v52 = vld [vmem:[#allocation3 + $0x388] sm:$0xff] }
 0x2f4   : > { %11333 = vmatprep.subr.bf16.mxu0 %v16026_v2  ;;  %11405 = vmatprep.subr.bf16.mxu1 %v16026_v2  ;;  %v743_v55 = vld [vmem:[#allocation6 + $0x80] sm:$0xff]  ;;  %v744_v39 = vld [vmem:[#allocation6 + $0x88] sm:$0xff] }
 0x2f5   : > { %16175 = vst [vmem:[#allocation89_spill] sm:$0xff] %v13842_v31  ;;  %16176 = vst [vmem:[#allocation90_spill] sm:$0xff] %v13844_v54 }
 0x2fb   : > { %11335 = vmatpush3.bf16.xpose.msra.mxu0 %v13834_v59  ;;  %11407 = vmatpush3.bf16.xpose.msra.mxu1 %v13836_v61  ;;  %v13850_v61 = vpack.c.bf16 %v678_v24, %v677_v22  ;;  %v13852_v59 = vpack.c.bf16 %v726_v33, %v725_v25  ;;  %v16181_v22 = vcombine.low %v13622_v44, %v13626_v51  ;;  %v697_v33 = vld [vmem:[#allocation3 + $0x390] sm:$0xff]  ;;  %v698_v44 = vld [vmem:[#allocation3 + $0x398] sm:$0xff] }
 0x2fc   : > { %11336 = vmatprep.subr.bf16.mxu0 %v16026_v2  ;;  %11408 = vmatprep.subr.bf16.mxu1 %v16026_v2  ;;  %v13870_v25 = vcombine.high %v13704_v28, %v16144_v37  ;;  %v745_v51 = vld [vmem:[#allocation6 + $0x90] sm:$0xff] }
 0x2fd   : > { %16177 = vst [vmem:[#allocation91_spill] sm:$0xff] %v13850_v61  ;;  %16178 = vst [vmem:[#allocation92_spill] sm:$0xff] %v13852_v59  ;;  %v13866_v24 = vrot.slane %v16181_v22, %v13576_v49  ;;  %v700_v22 = vld [vmem:[#allocation3 + $0x3a8] sm:$0xff] }
 0x2fe   : > { %16183 = vst [vmem:[#allocation96_spill] sm:$0xff] %v13870_v25 }
 0x2ff   : > { %16182 = vst [vmem:[#allocation95_spill] sm:$0xff] %v13866_v24 }
 0x303   : > { %11338 = vmatpush3.bf16.xpose.msra.mxu0 %v13842_v31  ;;  %11410 = vmatpush3.bf16.xpose.msra.mxu1 %v13844_v54  ;;  %v13858_v54 = vpack.c.bf16 %v696_v52, %v695_v56  ;;  %v13860_v31 = vpack.c.bf16 %v744_v39, %v743_v55  ;;  %v746_v56 = vld [vmem:[#allocation6 + $0x98] sm:$0xff]  ;;  %v13882_v52 = vpack.c.bf16 %v698_v44, %v697_v33  ;;  %v699_v39 = vld [vmem:[#allocation3 + $0x3a0] sm:$0xff]  ;;  %v701_v33 = vld [vmem:[#allocation3 + $0x3b0] sm:$0xff] }
 0x304   : > { %11339 = vmatprep.subr.bf16.mxu0 %v16026_v2  ;;  %11411 = vmatprep.subr.bf16.mxu1 %v16026_v2  ;;  %v13884_v55 = vpack.c.bf16 %v746_v56, %v745_v51  ;;  %v702_v44 = vld [vmem:[#allocation3 + $0x3b8] sm:$0xff]  ;;  %v749_v51 = vld [vmem:[#allocation6 + $0xb0] sm:$0xff] }
 0x305   : > { %16179 = vst [vmem:[#allocation93_spill] sm:$0xff] %v13858_v54  ;;  %16180 = vst [vmem:[#allocation94_spill] sm:$0xff] %v13860_v31  ;;  %v750_v56 = vld [vmem:[#allocation6 + $0xb8] sm:$0xff] }
 0x306   : > { %16184 = vst [vmem:[#allocation97_spill] sm:$0xff] %v13882_v52  ;;  %16185 = vst [vmem:[#allocation98_spill] sm:$0xff] %v13884_v55 }
 0x30b   : > { %11341 = vmatpush3.bf16.xpose.msra.mxu0 %v13850_v61  ;;  %11413 = vmatpush3.bf16.xpose.msra.mxu1 %v13852_v59  ;;  %v747_v59 = vld [vmem:[#allocation6 + $0xa0] sm:$0xff]  ;;  %v13890_v61 = vpack.c.bf16 %v700_v22, %v699_v39 }
 0x30c   : > { %11366 = vmatprep.subr.bf16.mxu0 %v16026_v2  ;;  %11438 = vmatprep.subr.bf16.mxu1 %v16026_v2 }
 0x30d   : > { %16186 = vst [vmem:[#allocation99_spill] sm:$0xff] %v13890_v61 }
 0x312   : > { %8868 = vmatmul.mubr.f32.vlgmr.msra.gmra.mrb[6].mxu0 %v13870_v25  ;;  %8973 = vmatmul.mubr.f32.vlgmr.msra.gmra.mrb[18].mxu1 %v13866_v24  ;;  %v816_v24 = vld [vmem:[#allocation6 + $0x2c8] sm:$0xff]  ;;  %v14082_v25 = vpack.c.bf16 %v768_v8, %v767_v11  ;;  %v819_v11 = vld [vmem:[#allocation6 + $0x2e0] sm:$0xff] }
 0x313   : > { %11368 = vmatpush3.bf16.xpose.msra.mxu0 %v13858_v54  ;;  %11440 = vmatpush3.bf16.xpose.msra.mxu1 %v13860_v31  ;;  %v748_v54 = vld [vmem:[#allocation6 + $0xa8] sm:$0xff] }
 0x314   : > { %11369 = vmatprep.subr.bf16.mxu0 %v16026_v2  ;;  %11441 = vmatprep.subr.bf16.mxu1 %v16026_v2  ;;  %v13892_v36 = vpack.c.bf16 %v748_v54, %v747_v59  ;;  %v13902_v54 = vpack.c.bf16 %v702_v44, %v701_v33  ;;  %v13904_v59 = vpack.c.bf16 %v750_v56, %v749_v51  ;;  %v705_v33 = vld [vmem:[#allocation3 + $0x3d0] sm:$0xff]  ;;  %v706_v44 = vld [vmem:[#allocation3 + $0x3d8] sm:$0xff]  ;;  %v772_v8 = vld [vmem:[#allocation6 + $0x168] sm:$0xff] }
 0x315   : > { %8937 = vmatprep.mubr.msk.f32.mxu0 %vm13211_vm4, %v16144_v37  ;;  %9042 = vmatprep.mubr.msk.f32.mxu1 %vm13211_vm4, %v16144_v37  ;;  %v753_v51 = vld [vmem:[#allocation6 + $0xd0] sm:$0xff]  ;;  %v754_v56 = vld [vmem:[#allocation6 + $0xd8] sm:$0xff]  ;;  %16230 = vst [vmem:[#allocation141_spill] sm:$0xff] %v14082_v25 }
 0x316   : > { %16187 = vst [vmem:[#allocation100_spill] sm:$0xff] %v13892_v36  ;;  %16188 = vst [vmem:[#allocation101_spill] sm:$0xff] %v13902_v54 }
 0x317   : > { %16189 = vst [vmem:[#allocation102_spill] sm:$0xff] %v13904_v59 }
 0x31b   : > { %11371 = vmatpush3.bf16.xpose.msra.mxu0 %v13882_v52  ;;  %11443 = vmatpush3.bf16.xpose.msra.mxu1 %v13884_v55 }
 0x31c   : > { %11372 = vmatprep.subr.bf16.mxu0 %v16026_v2  ;;  %11444 = vmatprep.subr.bf16.mxu1 %v16026_v2 }
 0x323   : > { %11374 = vmatpush3.bf16.xpose.msra.mxu0 %v13890_v61  ;;  %11446 = vmatpush3.bf16.xpose.msra.mxu1 %v13892_v36  ;;  %v703_v61 = vld [vmem:[#allocation3 + $0x3c0] sm:$0xff] }
 0x324   : > { %11375 = vmatprep.subr.bf16.mxu0 %v16026_v2  ;;  %11447 = vmatprep.subr.bf16.mxu1 %v16026_v2  ;;  %v13910_v35 = vpack.c.bf16 %v704_v1, %v703_v61  ;;  %v708_v1 = vld [vmem:[#allocation3 + $0x3e8] sm:$0xff] }
 0x325   : > { %v13898_v52 = vpop.f32.mrb[0].mxu0  ;;  %v13900_v10 = vpop.f32.mrb[12].mxu1  ;;  %v756_v61 = vld [vmem:[#allocation6 + $0xe8] sm:$0xff] }
 0x326   : > { %v8694_v39 = vpop.f32.mrb[1].mxu0  ;;  %v8764_v22 = vpop.f32.mrb[13].mxu1  ;;  %16190 = vst [vmem:[#allocation103_spill] sm:$0xff] %v13910_v35 }
 0x327   : > { %v13912_v39 = vpack.c.bf16 %v752_v42, %v751_v53  ;;  %v13918_v22 = vpack.c.bf16 %v706_v44, %v705_v33  ;;  %v707_v42 = vld [vmem:[#allocation3 + $0x3e0] sm:$0xff]  ;;  %v709_v33 = vld [vmem:[#allocation3 + $0x3f0] sm:$0xff]  ;;  %v710_v44 = vld [vmem:[#allocation3 + $0x3f8] sm:$0xff] }
 0x328   : > { %v755_v53 = vld [vmem:[#allocation6 + $0xe0] sm:$0xff] }
 0x329   : > { %16191 = vst [vmem:[#allocation104_spill] sm:$0xff] %v13912_v39  ;;  %16192 = vst [vmem:[#allocation105_spill] sm:$0xff] %v13918_v22  ;;  %v13928_v27 = vpack.c.bf16 %v756_v61, %v755_v53  ;;  %v728_v61 = vld [vmem:[#allocation6 + $0x8] sm:$0xff] }
 0x32b   : > { %11377 = vmatpush3.bf16.xpose.msra.mxu0 %v13902_v54  ;;  %11449 = vmatpush3.bf16.xpose.msra.mxu1 %v13904_v59  ;;  %v13920_v54 = vpack.c.bf16 %v754_v56, %v753_v51  ;;  %16195 = vst [vmem:[#allocation108_spill] sm:$0xff] %v13928_v27  ;;  %v757_v51 = vld [vmem:[#allocation6 + $0xf0] sm:$0xff]  ;;  %v758_v56 = vld [vmem:[#allocation6 + $0xf8] sm:$0xff] }
 0x32c   : > { %11378 = vmatprep.subr.bf16.mxu0 %v16026_v2  ;;  %11450 = vmatprep.subr.bf16.mxu1 %v16026_v2  ;;  %v13936_v21 = vpack.c.bf16 %v758_v56, %v757_v51 }
 0x32d   : > { %16193 = vst [vmem:[#allocation106_spill] sm:$0xff] %v13920_v54 }
 0x32e   : > { %16197 = vst [vmem:[#allocation110_spill] sm:$0xff] %v13936_v21 }
 0x333   : > { %11380 = vmatpush3.bf16.xpose.msra.mxu0 %v13910_v35  ;;  %11452 = vmatpush3.bf16.xpose.msra.mxu1 %v13912_v39  ;;  %v13926_v35 = vpack.c.bf16 %v708_v1, %v707_v42  ;;  %v727_v42 = vld [vmem:[#allocation6] sm:$0xff]  ;;  %v16198_v1 = vcombine.low %v13636_v19, %v13647_v45 }
 0x334   : > { %11381 = vmatprep.subr.bf16.mxu0 %v16026_v2  ;;  %11453 = vmatprep.subr.bf16.mxu1 %v16026_v2  ;;  %v13948_v51 = vpack.c.bf16 %v728_v61, %v727_v42  ;;  %v729_v42 = vld [vmem:[#allocation6 + $0x10] sm:$0xff] }
 0x335   : > { %16194 = vst [vmem:[#allocation107_spill] sm:$0xff] %v13926_v35  ;;  %v13944_v53 = vrot.slane %v16198_v1, %v13576_v49  ;;  %v730_v1 = vld [vmem:[#allocation6 + $0x18] sm:$0xff]  ;;  %v777_v61 = vld [vmem:[#allocation6 + $0x190] sm:$0xff] }
 0x336   : > { %16200 = vst [vmem:[#allocation112_spill] sm:$0xff] %v13948_v51 }
 0x337   : > { %16199 = vst [vmem:[#allocation111_spill] sm:$0xff] %v13944_v53 }
 0x33b   : > { %11383 = vmatpush3.bf16.xpose.msra.mxu0 %v13918_v22  ;;  %11455 = vmatpush3.bf16.xpose.msra.mxu1 %v13920_v54  ;;  %v13934_v22 = vpack.c.bf16 %v710_v44, %v709_v33  ;;  %v775_v33 = vld [vmem:[#allocation6 + $0x180] sm:$0xff]  ;;  %v776_v44 = vld [vmem:[#allocation6 + $0x188] sm:$0xff] }
 0x33c   : > { %11384 = vmatprep.subr.bf16.mxu0 %v16026_v2  ;;  %11456 = vmatprep.subr.bf16.mxu1 %v16026_v2  ;;  %v13950_v56 = vpack.c.bf16 %v776_v44, %v775_v33  ;;  %v778_v33 = vld [vmem:[#allocation6 + $0x198] sm:$0xff]  ;;  %v13970_v44 = vpack.c.bf16 %v730_v1, %v729_v42  ;;  %v733_v42 = vld [vmem:[#allocation6 + $0x30] sm:$0xff] }
 0x33d   : > { %16196 = vst [vmem:[#allocation109_spill] sm:$0xff] %v13934_v22  ;;  %v13972_v6 = vpack.c.bf16 %v778_v33, %v777_v61  ;;  %v734_v1 = vld [vmem:[#allocation6 + $0x38] sm:$0xff]  ;;  %v781_v61 = vld [vmem:[#allocation6 + $0x1b0] sm:$0xff] }
 0x33e   : > { %16201 = vst [vmem:[#allocation113_spill] sm:$0xff] %v13950_v56  ;;  %16204 = vst [vmem:[#allocation116_spill] sm:$0xff] %v13970_v44  ;;  %v782_v33 = vld [vmem:[#allocation6 + $0x1b8] sm:$0xff]  ;;  %v13990_v18 = vpack.c.bf16 %v734_v1, %v733_v42  ;;  %v737_v42 = vld [vmem:[#allocation6 + $0x50] sm:$0xff] }
 0x33f   : > { %16205 = vst [vmem:[#allocation117_spill] sm:$0xff] %v13972_v6  ;;  %v13992_v12 = vpack.c.bf16 %v782_v33, %v781_v61  ;;  %v738_v1 = vld [vmem:[#allocation6 + $0x58] sm:$0xff]  ;;  %v785_v61 = vld [vmem:[#allocation6 + $0x1d0] sm:$0xff] }
 0x340   : > { %16208 = vst [vmem:[#allocation120_spill] sm:$0xff] %v13990_v18  ;;  %v786_v33 = vld [vmem:[#allocation6 + $0x1d8] sm:$0xff] }
 0x341   : > { %16209 = vst [vmem:[#allocation121_spill] sm:$0xff] %v13992_v12  ;;  %v14008_v41 = vpack.c.bf16 %v786_v33, %v785_v61  ;;  %v789_v61 = vld [vmem:[#allocation6 + $0x1f0] sm:$0xff]  ;;  %v790_v33 = vld [vmem:[#allocation6 + $0x1f8] sm:$0xff] }
 0x342   : > { %v14024_v3 = vpack.c.bf16 %v790_v33, %v789_v61 }
 0x343   : > { %11386 = vmatpush3.bf16.xpose.msra.mxu0 %v13926_v35  ;;  %11458 = vmatpush3.bf16.xpose.msra.mxu1 %v13928_v27  ;;  %v13958_v35 = vcombine.high %v13944_v53, %v16144_v37  ;;  %16213 = vst [vmem:[#allocation125_spill] sm:$0xff] %v14008_v41 }
 0x344   : > { %11387 = vmatprep.subr.bf16.mxu0 %v16026_v2  ;;  %11459 = vmatprep.subr.bf16.mxu1 %v16026_v2  ;;  %16217 = vst [vmem:[#allocation129_spill] sm:$0xff] %v14024_v3 }
 0x345   : > { %16203 = vst [vmem:[#allocation115_spill] sm:$0xff] %v13958_v35 }
 0x34b   : > { %11389 = vmatpush3.bf16.xpose.msra.mxu0 %v13934_v22  ;;  %11461 = vmatpush3.bf16.xpose.msra.mxu1 %v13936_v21  ;;  %v13954_v22 = vcombine.high %v13790_v16, %v16144_v37 }
 0x34c   : > { %11414 = vmatprep.subr.bf16.mxu0 %v16026_v2  ;;  %11486 = vmatprep.subr.bf16.mxu1 %v16026_v2 }
 0x34d   : > { %16202 = vst [vmem:[#allocation114_spill] sm:$0xff] %v13954_v22 }
 0x352   : > { %8938 = vmatmul.mubr.f32.vlgmr.msra.gmra.mrb[8].mxu0 %v13954_v22  ;;  %9043 = vmatmul.mubr.f32.vlgmr.msra.gmra.mrb[20].mxu1 %v13958_v35  ;;  %v732_v35 = vld [vmem:[#allocation6 + $0x28] sm:$0xff] }
 0x353   : > { %11416 = vmatpush3.bf16.xpose.msra.mxu0 %v13948_v51  ;;  %11488 = vmatpush3.bf16.xpose.msra.mxu1 %v13950_v56  ;;  %v13978_v9 = vpack.c.bf16 %v732_v35, %v731_v0 }
 0x354   : > { %11417 = vmatprep.subr.bf16.mxu0 %v16026_v2  ;;  %11489 = vmatprep.subr.bf16.mxu1 %v16026_v2 }
 0x355   : > { %9007 = vmatprep.mubr.msk.f32.mxu0 %vm13211_vm4, %v16144_v37  ;;  %9112 = vmatprep.mubr.msk.f32.mxu1 %vm13211_vm4, %v16144_v37  ;;  %16206 = vst [vmem:[#allocation118_spill] sm:$0xff] %v13978_v9 }
 0x35b   : > { %11419 = vmatpush3.bf16.xpose.msra.mxu0 %v13970_v44  ;;  %11491 = vmatpush3.bf16.xpose.msra.mxu1 %v13972_v6 }
 0x35c   : > { %11420 = vmatprep.subr.bf16.mxu0 %v16026_v2  ;;  %11492 = vmatprep.subr.bf16.mxu1 %v16026_v2 }
 0x363   : > { %11422 = vmatpush3.bf16.xpose.msra.mxu0 %v13978_v9  ;;  %11494 = vmatpush3.bf16.xpose.msra.mxu1 %v13980_v48 }
 0x364   : > { %11423 = vmatprep.subr.bf16.mxu0 %v16026_v2  ;;  %11495 = vmatprep.subr.bf16.mxu1 %v16026_v2 }
 0x365   : > { %v13986_v4 = vpop.f32.mrb[2].mxu0  ;;  %v13988_v29 = vpop.f32.mrb[14].mxu1 }
 0x366   : > { %v8729_v0 = vpop.f32.mrb[3].mxu0  ;;  %v8834_v35 = vpop.f32.mrb[15].mxu1 }
 0x367   : > { %v14000_v0 = vpack.c.bf16 %v784_v62, %v783_v60  ;;  %v14006_v35 = vpack.c.bf16 %v738_v1, %v737_v42  ;;  %v740_v60 = vld [vmem:[#allocation6 + $0x68] sm:$0xff]  ;;  %v741_v42 = vld [vmem:[#allocation6 + $0x70] sm:$0xff]  ;;  %v742_v1 = vld [vmem:[#allocation6 + $0x78] sm:$0xff] }
 0x368   : > { %v788_v62 = vld [vmem:[#allocation6 + $0x1e8] sm:$0xff]  ;;  %v14014_v50 = vpack.c.bf16 %v740_v60, %v739_v38  ;;  %v14022_v47 = vpack.c.bf16 %v742_v1, %v741_v42  ;;  %v759_v38 = vld [vmem:[#allocation6 + $0x100] sm:$0xff]  ;;  %v16218_v60 = vcombine.high %v13636_v19, %v13647_v45  ;;  %v761_v19 = vld [vmem:[#allocation6 + $0x110] sm:$0xff] }
 0x369   : > { %16211 = vst [vmem:[#allocation123_spill] sm:$0xff] %v14000_v0  ;;  %16212 = vst [vmem:[#allocation124_spill] sm:$0xff] %v14006_v35  ;;  %v14016_v26 = vpack.c.bf16 %v788_v62, %v787_v63  ;;  %v760_v62 = vld [vmem:[#allocation6 + $0x108] sm:$0xff]  ;;  %v807_v42 = vld [vmem:[#allocation6 + $0x280] sm:$0xff] }
 0x36a   : > { %16214 = vst [vmem:[#allocation126_spill] sm:$0xff] %v14014_v50  ;;  %16216 = vst [vmem:[#allocation128_spill] sm:$0xff] %v14022_v47  ;;  %v14032_v63 = vrot.slane %v16218_v60, %v13576_v49  ;;  %v808_v1 = vld [vmem:[#allocation6 + $0x288] sm:$0xff]  ;;  %v14036_v61 = vpack.c.bf16 %v760_v62, %v759_v38  ;;  %v762_v45 = vld [vmem:[#allocation6 + $0x118] sm:$0xff] }
 0x36b   : > { %11425 = vmatpush3.bf16.xpose.msra.mxu0 %v13990_v18  ;;  %11497 = vmatpush3.bf16.xpose.msra.mxu1 %v13992_v12  ;;  %16215 = vst [vmem:[#allocation127_spill] sm:$0xff] %v14016_v26  ;;  %v14038_v33 = vpack.c.bf16 %v808_v1, %v807_v42  ;;  %v809_v38 = vld [vmem:[#allocation6 + $0x290] sm:$0xff]  ;;  %v810_v60 = vld [vmem:[#allocation6 + $0x298] sm:$0xff]  ;;  %v14054_v62 = vpack.c.bf16 %v762_v45, %v761_v19  ;;  %v763_v1 = vld [vmem:[#allocation6 + $0x120] sm:$0xff] }
 0x36c   : > { %11426 = vmatprep.subr.bf16.mxu0 %v16026_v2  ;;  %11498 = vmatprep.subr.bf16.mxu1 %v16026_v2  ;;  %16219 = vst [vmem:[#allocation130_spill] sm:$0xff] %v14032_v63  ;;  %16220 = vst [vmem:[#allocation131_spill] sm:$0xff] %v14036_v61  ;;  %v14042_v22 = vcombine.high %v14032_v63, %v16144_v37  ;;  %v14056_v42 = vpack.c.bf16 %v810_v60, %v809_v38  ;;  %v765_v19 = vld [vmem:[#allocation6 + $0x130] sm:$0xff]  ;;  %v766_v45 = vld [vmem:[#allocation6 + $0x138] sm:$0xff] }
 0x36d   : > { %16221 = vst [vmem:[#allocation132_spill] sm:$0xff] %v14038_v33  ;;  %16223 = vst [vmem:[#allocation134_spill] sm:$0xff] %v14054_v62  ;;  %v813_v38 = vld [vmem:[#allocation6 + $0x2b0] sm:$0xff]  ;;  %v814_v60 = vld [vmem:[#allocation6 + $0x2b8] sm:$0xff] }
 0x36e   : > { %16222 = vst [vmem:[#allocation133_spill] sm:$0xff] %v14042_v22  ;;  %16224 = vst [vmem:[#allocation135_spill] sm:$0xff] %v14056_v42 }
 0x373   : > { %11428 = vmatpush3.bf16.xpose.msra.mxu0 %v13998_v57  ;;  %11500 = vmatpush3.bf16.xpose.msra.mxu1 %v14000_v0 }
 0x374   : > { %11429 = vmatprep.subr.bf16.mxu0 %v16026_v2  ;;  %11501 = vmatprep.subr.bf16.mxu1 %v16026_v2 }
 0x37b   : > { %11431 = vmatpush3.bf16.xpose.msra.mxu0 %v14006_v35  ;;  %11503 = vmatpush3.bf16.xpose.msra.mxu1 %v14008_v41  ;;  %v848_v41 = vld [vmem:[#allocation6 + $0x3c8] sm:$0xff] }
 0x37c   : > { %11432 = vmatprep.subr.bf16.mxu0 %v16026_v2  ;;  %11504 = vmatprep.subr.bf16.mxu1 %v16026_v2 }
 0x383   : > { %11434 = vmatpush3.bf16.xpose.msra.mxu0 %v14014_v50  ;;  %11506 = vmatpush3.bf16.xpose.msra.mxu1 %v14016_v26  ;;  %v847_v26 = vld [vmem:[#allocation6 + $0x3c0] sm:$0xff] }
 0x384   : > { %11435 = vmatprep.subr.bf16.mxu0 %v16026_v2  ;;  %11507 = vmatprep.subr.bf16.mxu1 %v16026_v2 }
 0x38b   : > { %11437 = vmatpush3.bf16.xpose.msra.mxu0 %v14022_v47  ;;  %11509 = vmatpush3.bf16.xpose.msra.mxu1 %v14024_v3  ;;  %v800_v3 = vld [vmem:[#allocation6 + $0x248] sm:$0xff] }
 0x38c   : > { %11462 = vmatprep.subr.bf16.mxu0 %v16026_v2  ;;  %11534 = vmatprep.subr.bf16.mxu1 %v16026_v2 }
 0x392   : > { %9008 = vmatmul.mubr.f32.vlgmr.msra.gmra.mrb[10].mxu0 %v13944_v53  ;;  %9113 = vmatmul.mubr.f32.vlgmr.msra.gmra.mrb[22].mxu1 %v14042_v22  ;;  %v764_v22 = vld [vmem:[#allocation6 + $0x128] sm:$0xff]  ;;  %v811_v53 = vld [vmem:[#allocation6 + $0x2a0] sm:$0xff] }
 0x393   : > { %11464 = vmatpush3.bf16.xpose.msra.mxu0 %v14036_v61  ;;  %11536 = vmatpush3.bf16.xpose.msra.mxu1 %v14038_v33  ;;  %v14062_v23 = vpack.c.bf16 %v764_v22, %v763_v1  ;;  %v14064_v20 = vpack.c.bf16 %v812_v15, %v811_v53  ;;  %v14074_v15 = vpack.c.bf16 %v766_v45, %v765_v19  ;;  %v769_v19 = vld [vmem:[#allocation6 + $0x150] sm:$0xff]  ;;  %v770_v45 = vld [vmem:[#allocation6 + $0x158] sm:$0xff] }
 0x394   : > { %11465 = vmatprep.subr.bf16.mxu0 %v16026_v2  ;;  %11537 = vmatprep.subr.bf16.mxu1 %v16026_v2  ;;  %v14076_v53 = vpack.c.bf16 %v814_v60, %v813_v38  ;;  %v817_v38 = vld [vmem:[#allocation6 + $0x2d0] sm:$0xff]  ;;  %v818_v60 = vld [vmem:[#allocation6 + $0x2d8] sm:$0xff] }
 0x395   : > { %9077 = vmatprep.mubr.msk.f32.mxu0 %vm13211_vm4, %v16144_v37  ;;  %9182 = vmatprep.mubr.msk.f32.mxu1 %vm13211_vm4, %v16144_v37  ;;  %16225 = vst [vmem:[#allocation136_spill] sm:$0xff] %v14062_v23  ;;  %16226 = vst [vmem:[#allocation137_spill] sm:$0xff] %v14064_v20 }
 0x396   : > { %16228 = vst [vmem:[#allocation139_spill] sm:$0xff] %v14074_v15  ;;  %16229 = vst [vmem:[#allocation140_spill] sm:$0xff] %v14076_v53 }
 0x39b   : > { %11467 = vmatpush3.bf16.xpose.msra.mxu0 %v14054_v62  ;;  %11539 = vmatpush3.bf16.xpose.msra.mxu1 %v14056_v42  ;;  %v844_v42 = vld [vmem:[#allocation6 + $0x3a8] sm:$0xff] }
 0x39c   : > { %11468 = vmatprep.subr.bf16.mxu0 %v16026_v2  ;;  %11540 = vmatprep.subr.bf16.mxu1 %v16026_v2 }
 0x3a3   : > { %11470 = vmatpush3.bf16.xpose.msra.mxu0 %v14062_v23  ;;  %11542 = vmatpush3.bf16.xpose.msra.mxu1 %v14064_v20 }
 0x3a4   : > { %11471 = vmatprep.subr.bf16.mxu0 %v16026_v2  ;;  %11543 = vmatprep.subr.bf16.mxu1 %v16026_v2 }
 0x3a5   : > { %v14070_v17 = vpop.f32.mrb[4].mxu0  ;;  %v14072_v14 = vpop.f32.mrb[16].mxu1 }
 0x3a6   : > { %16227 = vst [vmem:[#allocation138_spill] sm:$0xff] %v14072_v14  ;;  %v8799_v22 = vpop.f32.mrb[5].mxu0  ;;  %v8904_v1 = vpop.f32.mrb[17].mxu1 }
 0x3a7   : > { %v14084_v22 = vpack.c.bf16 %v816_v24, %v815_v5  ;;  %v14090_v1 = vpack.c.bf16 %v770_v45, %v769_v19  ;;  %v771_v5 = vld [vmem:[#allocation6 + $0x160] sm:$0xff]  ;;  %v820_v24 = vld [vmem:[#allocation6 + $0x2e8] sm:$0xff]  ;;  %v773_v19 = vld [vmem:[#allocation6 + $0x170] sm:$0xff] }
 0x3a8   : > { %v14100_v14 = vpack.c.bf16 %v820_v24, %v819_v11  ;;  %v774_v45 = vld [vmem:[#allocation6 + $0x178] sm:$0xff]  ;;  %v792_v24 = vld [vmem:[#allocation6 + $0x208] sm:$0xff] }
 0x3a9   : > { %16231 = vst [vmem:[#allocation142_spill] sm:$0xff] %v14084_v22  ;;  %16232 = vst [vmem:[#allocation143_spill] sm:$0xff] %v14090_v1 }
 0x3aa   : > { %16235 = vst [vmem:[#allocation146_spill] sm:$0xff] %v14100_v14 }
 0x3ab   : > { %11473 = vmatpush3.bf16.xpose.msra.mxu0 %v14074_v15  ;;  %11545 = vmatpush3.bf16.xpose.msra.mxu1 %v14076_v53  ;;  %v14092_v53 = vpack.c.bf16 %v818_v60, %v817_v38  ;;  %v821_v38 = vld [vmem:[#allocation6 + $0x2f0] sm:$0xff]  ;;  %v822_v60 = vld [vmem:[#allocation6 + $0x2f8] sm:$0xff] }
 0x3ac   : > { %11474 = vmatprep.subr.bf16.mxu0 %v16026_v2  ;;  %11546 = vmatprep.subr.bf16.mxu1 %v16026_v2  ;;  %v14108_v20 = vpack.c.bf16 %v822_v60, %v821_v38 }
 0x3ad   : > { %16233 = vst [vmem:[#allocation144_spill] sm:$0xff] %v14092_v53 }
 0x3ae   : > { %16237 = vst [vmem:[#allocation148_spill] sm:$0xff] %v14108_v20 }
 0x3b3   : > { %11476 = vmatpush3.bf16.xpose.msra.mxu0 %v14082_v25  ;;  %11548 = vmatpush3.bf16.xpose.msra.mxu1 %v14084_v22  ;;  %v14098_v22 = vpack.c.bf16 %v772_v8, %v771_v5  ;;  %v791_v5 = vld [vmem:[#allocation6 + $0x200] sm:$0xff]  ;;  %v16238_v8 = vcombine.low %v13643_v40, %v13650_v46 }
 0x3b4   : > { %11477 = vmatprep.subr.bf16.mxu0 %v16026_v2  ;;  %11549 = vmatprep.subr.bf16.mxu1 %v16026_v2  ;;  %v14120_v38 = vpack.c.bf16 %v792_v24, %v791_v5  ;;  %v794_v5 = vld [vmem:[#allocation6 + $0x218] sm:$0xff]  ;;  %v841_v24 = vld [vmem:[#allocation6 + $0x390] sm:$0xff] }
 0x3b5   : > { %16234 = vst [vmem:[#allocation145_spill] sm:$0xff] %v14098_v22  ;;  %v14116_v11 = vrot.slane %v16238_v8, %v13576_v49  ;;  %v793_v8 = vld [vmem:[#allocation6 + $0x210] sm:$0xff] }
 0x3b6   : > { %16240 = vst [vmem:[#allocation150_spill] sm:$0xff] %v14120_v38 }
 0x3b7   : > { %16239 = vst [vmem:[#allocation149_spill] sm:$0xff] %v14116_v11 }
 0x3bb   : > { %11479 = vmatpush3.bf16.xpose.msra.mxu0 %v14090_v1  ;;  %11551 = vmatpush3.bf16.xpose.msra.mxu1 %v14092_v53  ;;  %v14106_v53 = vpack.c.bf16 %v774_v45, %v773_v19  ;;  %v839_v19 = vld [vmem:[#allocation6 + $0x380] sm:$0xff]  ;;  %v840_v45 = vld [vmem:[#allocation6 + $0x388] sm:$0xff] }
 0x3bc   : > { %11480 = vmatprep.subr.bf16.mxu0 %v16026_v2  ;;  %11552 = vmatprep.subr.bf16.mxu1 %v16026_v2  ;;  %v14122_v60 = vpack.c.bf16 %v840_v45, %v839_v19  ;;  %v842_v19 = vld [vmem:[#allocation6 + $0x398] sm:$0xff]  ;;  %v14138_v45 = vpack.c.bf16 %v794_v5, %v793_v8  ;;  %v797_v8 = vld [vmem:[#allocation6 + $0x230] sm:$0xff] }
 0x3bd   : > { %16236 = vst [vmem:[#allocation147_spill] sm:$0xff] %v14106_v53  ;;  %v798_v5 = vld [vmem:[#allocation6 + $0x238] sm:$0xff] }
 0x3be   : > { %16241 = vst [vmem:[#allocation151_spill] sm:$0xff] %v14122_v60  ;;  %16243 = vst [vmem:[#allocation153_spill] sm:$0xff] %v14138_v45 }
 0x3c3   : > { %11482 = vmatpush3.bf16.xpose.msra.mxu0 %v14098_v22  ;;  %11554 = vmatpush3.bf16.xpose.msra.mxu1 %v14100_v14  ;;  %v843_v14 = vld [vmem:[#allocation6 + $0x3a0] sm:$0xff] }
 0x3c4   : > { %11483 = vmatprep.subr.bf16.mxu0 %v16026_v2  ;;  %11555 = vmatprep.subr.bf16.mxu1 %v16026_v2  ;;  %v14148_v16 = vpack.c.bf16 %v844_v42, %v843_v14  ;;  %v14158_v14 = vpack.c.bf16 %v798_v5, %v797_v8  ;;  %v801_v8 = vld [vmem:[#allocation6 + $0x250] sm:$0xff]  ;;  %v802_v5 = vld [vmem:[#allocation6 + $0x258] sm:$0xff] }
 0x3c6   : > { %16246 = vst [vmem:[#allocation156_spill] sm:$0xff] %v14148_v16  ;;  %16248 = vst [vmem:[#allocation158_spill] sm:$0xff] %v14158_v14 }
 0x3cb   : > { %11485 = vmatpush3.bf16.xpose.msra.mxu0 %v14106_v53  ;;  %11557 = vmatpush3.bf16.xpose.msra.mxu1 %v14108_v20  ;;  %v14126_v20 = vcombine.high %v14116_v11, %v16144_v37 }
 0x3cc   : > { %11510 = vmatprep.subr.bf16.mxu0 %v16026_v2  ;;  %11582 = vmatprep.subr.bf16.mxu1 %v16026_v2 }
 0x3cd   : > { %16242 = vst [vmem:[#allocation152_spill] sm:$0xff] %v14126_v20 }
 0x3d2   : > { %9078 = vmatmul.mubr.f32.vlgmr.msra.gmra.mrb[12].mxu0 %v14032_v63  ;;  %9183 = vmatmul.mubr.f32.vlgmr.msra.gmra.mrb[24].mxu1 %v14126_v20  ;;  %v14140_v20 = vpack.c.bf16 %v842_v19, %v841_v24  ;;  %v795_v63 = vld [vmem:[#allocation6 + $0x220] sm:$0xff]  ;;  %v845_v24 = vld [vmem:[#allocation6 + $0x3b0] sm:$0xff]  ;;  %v846_v19 = vld [vmem:[#allocation6 + $0x3b8] sm:$0xff] }
 0x3d3   : > { %11512 = vmatpush3.bf16.xpose.msra.mxu0 %v14120_v38  ;;  %11584 = vmatpush3.bf16.xpose.msra.mxu1 %v14122_v60  ;;  %v796_v60 = vld [vmem:[#allocation6 + $0x228] sm:$0xff]  ;;  %v14160_v42 = vpack.c.bf16 %v846_v19, %v845_v24  ;;  %v849_v24 = vld [vmem:[#allocation6 + $0x3d0] sm:$0xff]  ;;  %v850_v19 = vld [vmem:[#allocation6 + $0x3d8] sm:$0xff] }
 0x3d4   : > { %11513 = vmatprep.subr.bf16.mxu0 %v16026_v2  ;;  %11585 = vmatprep.subr.bf16.mxu1 %v16026_v2  ;;  %16244 = vst [vmem:[#allocation154_spill] sm:$0xff] %v14140_v20  ;;  %v14146_v33 = vpack.c.bf16 %v796_v60, %v795_v63 }
 0x3d5   : > { %9147 = vmatprep.mubr.msk.f32.mxu0 %vm13211_vm4, %v16144_v37  ;;  %9252 = vmatprep.mubr.msk.f32.mxu1 %vm13211_vm4, %v16144_v37  ;;  %16249 = vst [vmem:[#allocation159_spill] sm:$0xff] %v14160_v42 }
 0x3d6   : > { %16245 = vst [vmem:[#allocation155_spill] sm:$0xff] %v14146_v33 }
 0x3db   : > { %11515 = vmatpush3.bf16.xpose.msra.mxu0 %v14138_v45  ;;  %11587 = vmatpush3.bf16.xpose.msra.mxu1 %v14140_v20 }
 0x3dc   : > { %11516 = vmatprep.subr.bf16.mxu0 %v16026_v2  ;;  %11588 = vmatprep.subr.bf16.mxu1 %v16026_v2 }
 0x3e3   : > { %11518 = vmatpush3.bf16.xpose.msra.mxu0 %v14146_v33  ;;  %11590 = vmatpush3.bf16.xpose.msra.mxu1 %v14148_v16  ;;  %v799_v16 = vld [vmem:[#allocation6 + $0x240] sm:$0xff] }
 0x3e4   : > { %11519 = vmatprep.subr.bf16.mxu0 %v16026_v2  ;;  %11591 = vmatprep.subr.bf16.mxu1 %v16026_v2  ;;  %v14166_v0 = vpack.c.bf16 %v800_v3, %v799_v16  ;;  %v803_v3 = vld [vmem:[#allocation6 + $0x260] sm:$0xff]  ;;  %v852_v16 = vld [vmem:[#allocation6 + $0x3e8] sm:$0xff] }
 0x3e5   : > { %v14154_v20 = vpop.f32.mrb[6].mxu0  ;;  %v14156_v30 = vpop.f32.mrb[18].mxu1 }
 0x3e6   : > { %16247 = vst [vmem:[#allocation157_spill] sm:$0xff] %v14156_v30  ;;  %v8869_v63 = vpop.f32.mrb[7].mxu0  ;;  %v8974_v60 = vpop.f32.mrb[19].mxu1  ;;  %16250 = vst [vmem:[#allocation160_spill] sm:$0xff] %v14166_v0 }
 0x3e7   : > { %v14168_v63 = vpack.c.bf16 %v848_v41, %v847_v26  ;;  %v14174_v60 = vpack.c.bf16 %v802_v5, %v801_v8  ;;  %v804_v26 = vld [vmem:[#allocation6 + $0x268] sm:$0xff]  ;;  %v851_v41 = vld [vmem:[#allocation6 + $0x3e0] sm:$0xff]  ;;  %v805_v8 = vld [vmem:[#allocation6 + $0x270] sm:$0xff] }
 0x3e8   : > { %v14184_v30 = vpack.c.bf16 %v852_v16, %v851_v41  ;;  %v806_v5 = vld [vmem:[#allocation6 + $0x278] sm:$0xff]  ;;  %v823_v41 = vld [vmem:[#allocation6 + $0x300] sm:$0xff]  ;;  %v824_v16 = vld [vmem:[#allocation6 + $0x308] sm:$0xff] }
 0x3e9   : > { %16251 = vst [vmem:[#allocation161_spill] sm:$0xff] %v14168_v63  ;;  %16252 = vst [vmem:[#allocation162_spill] sm:$0xff] %v14174_v60 }
 0x3ea   : > { %16255 = vst [vmem:[#allocation165_spill] sm:$0xff] %v14184_v30 }
 0x3eb   : > { %11521 = vmatpush3.bf16.xpose.msra.mxu0 %v14158_v14  ;;  %11593 = vmatpush3.bf16.xpose.msra.mxu1 %v14160_v42  ;;  %v14176_v42 = vpack.c.bf16 %v850_v19, %v849_v24  ;;  %v853_v24 = vld [vmem:[#allocation6 + $0x3f0] sm:$0xff]  ;;  %v854_v19 = vld [vmem:[#allocation6 + $0x3f8] sm:$0xff] }
 0x3ec   : > { %11522 = vmatprep.subr.bf16.mxu0 %v16026_v2  ;;  %11594 = vmatprep.subr.bf16.mxu1 %v16026_v2  ;;  %v14192_v12 = vpack.c.bf16 %v854_v19, %v853_v24  ;;  %v827_v19 = vld [vmem:[#allocation6 + $0x320] sm:$0xff] }
 0x3ed   : > { %16253 = vst [vmem:[#allocation163_spill] sm:$0xff] %v14176_v42 }
 0x3ee   : > { %16257 = vst [vmem:[#allocation167_spill] sm:$0xff] %v14192_v12 }
 0x3f3   : > { %11524 = vmatpush3.bf16.xpose.msra.mxu0 %v14166_v0  ;;  %11596 = vmatpush3.bf16.xpose.msra.mxu1 %v14168_v63  ;;  %v14182_v63 = vpack.c.bf16 %v804_v26, %v803_v3  ;;  %v16258_v3 = vcombine.high %v13643_v40, %v13650_v46  ;;  %v825_v40 = vld [vmem:[#allocation6 + $0x310] sm:$0xff]  ;;  %v826_v46 = vld [vmem:[#allocation6 + $0x318] sm:$0xff] }
 0x3f4   : > { %11525 = vmatprep.subr.bf16.mxu0 %v16026_v2  ;;  %11597 = vmatprep.subr.bf16.mxu1 %v16026_v2  ;;  %v14220_v24 = vpack.c.bf16 %v826_v46, %v825_v40  ;;  %v830_v40 = vld [vmem:[#allocation6 + $0x338] sm:$0xff] }
 0x3f5   : > { %16254 = vst [vmem:[#allocation164_spill] sm:$0xff] %v14182_v63  ;;  %v14200_v26 = vrot.slane %v16258_v3, %v13576_v49  ;;  %v828_v3 = vld [vmem:[#allocation6 + $0x328] sm:$0xff] }
 0x3f6   : > { %16262 = vst [vmem:[#allocation171_spill] sm:$0xff] %v14220_v24 }
 0x3f7   : > { %16259 = vst [vmem:[#allocation168_spill] sm:$0xff] %v14200_v26 }
 0x3fb   : > { %11527 = vmatpush3.bf16.xpose.msra.mxu0 %v14174_v60  ;;  %11599 = vmatpush3.bf16.xpose.msra.mxu1 %v14176_v42  ;;  %v14190_v42 = vpack.c.bf16 %v806_v5, %v805_v8  ;;  %v14204_v8 = vpack.c.bf16 %v824_v16, %v823_v41  ;;  %v14208_v5 = vcombine.high %v14200_v26, %v16144_v37  ;;  %v829_v16 = vld [vmem:[#allocation6 + $0x330] sm:$0xff] }
 0x3fc   : > { %11528 = vmatprep.subr.bf16.mxu0 %v16026_v2  ;;  %11600 = vmatprep.subr.bf16.mxu1 %v16026_v2  ;;  %v14226_v41 = vpack.c.bf16 %v828_v3, %v827_v19  ;;  %v14238_v3 = vpack.c.bf16 %v830_v40, %v829_v16  ;;  %v834_v16 = vld [vmem:[#allocation6 + $0x358] sm:$0xff] }
 0x3fd   : > { %16256 = vst [vmem:[#allocation166_spill] sm:$0xff] %v14190_v42  ;;  %16260 = vst [vmem:[#allocation169_spill] sm:$0xff] %v14204_v8 }
 0x3fe   : > { %16261 = vst [vmem:[#allocation170_spill] sm:$0xff] %v14208_v5  ;;  %16263 = vst [vmem:[#allocation172_spill] sm:$0xff] %v14226_v41 }
 0x3ff   : > { %16264 = vst [vmem:[#allocation173_spill] sm:$0xff] %v14238_v3 }
 0x403   : > { %11530 = vmatpush3.bf16.xpose.msra.mxu0 %v14182_v63  ;;  %11602 = vmatpush3.bf16.xpose.msra.mxu1 %v14184_v30  ;;  %v863_v30 = vld [vmem:[#allocation6 + $0x440] sm:$0xff] }
 0x404   : > { %11531 = vmatprep.subr.bf16.mxu0 %v16026_v2  ;;  %11603 = vmatprep.subr.bf16.mxu1 %v16026_v2 }
 0x40b   : > { %11533 = vmatpush3.bf16.xpose.msra.mxu0 %v14190_v42  ;;  %11605 = vmatpush3.bf16.xpose.msra.mxu1 %v14192_v12 }
 0x40c   : > { %11558 = vmatprep.subr.bf16.mxu0 %v16026_v2  ;;  %11630 = vmatprep.subr.bf16.mxu1 %v16026_v2 }
 0x412   : > { %9148 = vmatmul.mubr.f32.vlgmr.msra.gmra.mrb[14].mxu0 %v14116_v11  ;;  %9253 = vmatmul.mubr.f32.vlgmr.msra.gmra.mrb[26].mxu1 %v14208_v5  ;;  %v832_v11 = vld [vmem:[#allocation6 + $0x348] sm:$0xff] }
 0x413   : > { %11560 = vmatpush3.bf16.xpose.msra.mxu0 %v14204_v8  ;;  %11632 = vmatpush3.bf16.xpose.msra.mxu1 %v13948_v51 }
 0x414   : > { %11561 = vmatprep.subr.bf16.mxu0 %v16026_v2  ;;  %11633 = vmatprep.subr.bf16.mxu1 %v16026_v2 }
 0x415   : > { %9217 = vmatprep.mubr.msk.f32.mxu0 %vm13211_vm4, %v16144_v37  ;;  %9322 = vmatprep.mubr.msk.f32.mxu1 %vm13211_vm4, %v16144_v37 }
 0x41b   : > { %11563 = vmatpush3.bf16.xpose.msra.mxu0 %v14220_v24  ;;  %11635 = vmatpush3.bf16.xpose.msra.mxu1 %v13970_v44 }
 0x41c   : > { %11564 = vmatprep.subr.bf16.mxu0 %v16026_v2  ;;  %11636 = vmatprep.subr.bf16.mxu1 %v16026_v2 }
 0x423   : > { %11566 = vmatpush3.bf16.xpose.msra.mxu0 %v14226_v41  ;;  %11638 = vmatpush3.bf16.xpose.msra.mxu1 %v13978_v9  ;;  %v831_v9 = vld [vmem:[#allocation6 + $0x340] sm:$0xff] }
 0x424   : > { %11567 = vmatprep.subr.bf16.mxu0 %v16026_v2  ;;  %11639 = vmatprep.subr.bf16.mxu1 %v16026_v2  ;;  %v14244_v12 = vpack.c.bf16 %v832_v11, %v831_v9  ;;  %v835_v9 = vld [vmem:[#allocation6 + $0x360] sm:$0xff]  ;;  %v836_v11 = vld [vmem:[#allocation6 + $0x368] sm:$0xff] }
 0x425   : > { %v14232_v46 = vpop.f32.mrb[8].mxu0  ;;  %v14234_v44 = vpop.f32.mrb[20].mxu1 }
 0x426   : > { %v8939_v5 = vpop.f32.mrb[9].mxu0  ;;  %v9044_v19 = vpop.f32.mrb[21].mxu1  ;;  %16265 = vst [vmem:[#allocation174_spill] sm:$0xff] %v14244_v12 }
 0x427   : > { %v833_v5 = vld [vmem:[#allocation6 + $0x350] sm:$0xff]  ;;  %v14256_v19 = vpack.c.bf16 %v836_v11, %v835_v9  ;;  %v855_v9 = vld [vmem:[#allocation6 + $0x400] sm:$0xff]  ;;  %v856_v11 = vld [vmem:[#allocation6 + $0x408] sm:$0xff] }
 0x428   : > { %v14250_v40 = vpack.c.bf16 %v834_v16, %v833_v5  ;;  %v837_v5 = vld [vmem:[#allocation6 + $0x370] sm:$0xff]  ;;  %v838_v16 = vld [vmem:[#allocation6 + $0x378] sm:$0xff] }
 0x429   : > { %16267 = vst [vmem:[#allocation176_spill] sm:$0xff] %v14256_v19  ;;  %v14262_v51 = vpack.c.bf16 %v838_v16, %v837_v5  ;;  %v857_v5 = vld [vmem:[#allocation6 + $0x410] sm:$0xff]  ;;  %v858_v16 = vld [vmem:[#allocation6 + $0x418] sm:$0xff] }
 0x42a   : > { %16266 = vst [vmem:[#allocation175_spill] sm:$0xff] %v14250_v40 }
 0x42b   : > { %11569 = vmatpush3.bf16.xpose.msra.mxu0 %v14238_v3  ;;  %11641 = vmatpush3.bf16.xpose.msra.mxu1 %v13990_v18  ;;  %16268 = vst [vmem:[#allocation177_spill] sm:$0xff] %v14262_v51 }
 0x42c   : > { %11570 = vmatprep.subr.bf16.mxu0 %v16026_v2  ;;  %11642 = vmatprep.subr.bf16.mxu1 %v16026_v2 }
 0x433   : > { %11572 = vmatpush3.bf16.xpose.msra.mxu0 %v14244_v12  ;;  %11644 = vmatpush3.bf16.xpose.msra.mxu1 %v13998_v57 }
 0x434   : > { %11573 = vmatprep.subr.bf16.mxu0 %v16026_v2  ;;  %11645 = vmatprep.subr.bf16.mxu1 %v16026_v2 }
 0x43b   : > { %11575 = vmatpush3.bf16.xpose.msra.mxu0 %v14250_v40  ;;  %11647 = vmatpush3.bf16.xpose.msra.mxu1 %v14006_v35  ;;  %v14268_v35 = vpack.c.bf16 %v856_v11, %v855_v9  ;;  %v14280_v9 = vpack.c.bf16 %v858_v16, %v857_v5  ;;  %v860_v11 = vld [vmem:[#allocation6 + $0x428] sm:$0xff]  ;;  %v861_v5 = vld [vmem:[#allocation6 + $0x430] sm:$0xff]  ;;  %v862_v16 = vld [vmem:[#allocation6 + $0x438] sm:$0xff] }
 0x43c   : > { %11576 = vmatprep.subr.bf16.mxu0 %v16026_v2  ;;  %11648 = vmatprep.subr.bf16.mxu1 %v16026_v2  ;;  %v14297_v18 = vpack.c.bf16 %v862_v16, %v861_v5  ;;  %v870_v5 = vld [vmem:[#allocation6 + $0x478] sm:$0xff] }
 0x43d   : > { %16269 = vst [vmem:[#allocation178_spill] sm:$0xff] %v14268_v35  ;;  %16270 = vst [vmem:[#allocation179_spill] sm:$0xff] %v14280_v9 }
 0x43e   : > { %16272 = vst [vmem:[#allocation181_spill] sm:$0xff] %v14297_v18 }
 0x443   : > { %11578 = vmatpush3.bf16.xpose.msra.mxu0 %v14256_v19  ;;  %11650 = vmatpush3.bf16.xpose.msra.mxu1 %v14014_v50 }
 0x444   : > { %11579 = vmatprep.subr.bf16.mxu0 %v16026_v2  ;;  %11651 = vmatprep.subr.bf16.mxu1 %v16026_v2 }
 0x44b   : > { %11581 = vmatpush3.bf16.xpose.msra.mxu0 %v14262_v51  ;;  %11653 = vmatpush3.bf16.xpose.msra.mxu1 %v14022_v47 }
 0x44c   : > { %11606 = vmatprep.subr.bf16.mxu0 %v16026_v2  ;;  %11678 = vmatprep.subr.bf16.mxu1 %v16026_v2 }
 0x452   : > { %9218 = vmatmul.mubr.f32.vlgmr.msra.gmra.mrb[16].mxu0 %v14200_v26  ;;  %9323 = vmatmul.mubr.f32.vlgmr.msra.gmra.mrb[28].mxu1 %v13596_v13  ;;  %v859_v13 = vld [vmem:[#allocation6 + $0x420] sm:$0xff] }
 0x453   : > { %11608 = vmatpush3.bf16.xpose.msra.mxu0 %v14268_v35  ;;  %11680 = vmatpush3.bf16.xpose.msra.mxu1 %v14036_v61  ;;  %v14286_v61 = vpack.c.bf16 %v860_v11, %v859_v13 }
 0x454   : > { %11609 = vmatprep.subr.bf16.mxu0 %v16026_v2  ;;  %11681 = vmatprep.subr.bf16.mxu1 %v16026_v2 }
 0x455   : > { %9287 = vmatprep.mubr.msk.f32.mxu0 %vm13211_vm4, %v16144_v37  ;;  %9392 = vmatprep.mubr.msk.f32.mxu1 %vm13211_vm4, %v16144_v37  ;;  %16271 = vst [vmem:[#allocation180_spill] sm:$0xff] %v14286_v61 }
 0x45b   : > { %11611 = vmatpush3.bf16.xpose.msra.mxu0 %v14280_v9  ;;  %11683 = vmatpush3.bf16.xpose.msra.mxu1 %v14054_v62 }
 0x45c   : > { %11612 = vmatprep.subr.bf16.mxu0 %v16026_v2  ;;  %11684 = vmatprep.subr.bf16.mxu1 %v16026_v2 }
 0x463   : > { %11614 = vmatpush3.bf16.xpose.msra.mxu0 %v14286_v61  ;;  %11686 = vmatpush3.bf16.xpose.msra.mxu1 %v14062_v23  ;;  %v16273_v23 = vsub.f32 %v13986_v4, %v14234_v44  ;;  %v867_v4 = vld [vmem:[#allocation6 + $0x460] sm:$0xff] }
 0x464   : > { %11615 = vmatprep.subr.bf16.mxu0 %v16026_v2  ;;  %11687 = vmatprep.subr.bf16.mxu1 %v16026_v2 }
 0x465   : > { %v14292_v47 = vpop.f32.mrb[10].mxu0  ;;  %v2101_v62 = vpop.f32.mrb[22].mxu1 }
 0x466   : > { %v2455_v50 = vsub.f32 %v13898_v52, %v14292_v47  ;;  %v2458_v57 = vsub.f32 %v14070_v17, %v2101_v62  ;;  %v9009_v13 = vpop.f32.mrb[11].mxu0  ;;  %v9114_v11 = vpop.f32.mrb[23].mxu1  ;;  %v864_v47 = vld [vmem:[#allocation6 + $0x448] sm:$0xff]  ;;  %v865_v17 = vld [vmem:[#allocation6 + $0x450] sm:$0xff] }
 0x467   : > { %v14306_v52 = vpack.c.bf16 %v864_v47, %v863_v30  ;;  %v868_v30 = vld [vmem:[#allocation6 + $0x468] sm:$0xff]  ;;  %v869_v62 = vld [vmem:[#allocation6 + $0x470] sm:$0xff]  ;;  %v16278_v13 = vcombine.low %v13730_v58, %v13734_v32 }
 0x468   : > { %v2471_v26 = vcombine.low %v16273_v23, %v2458_v57  ;;  %v866_v23 = vld [vmem:[#allocation6 + $0x458] sm:$0xff]  ;;  %v14318_v44 = vpack.c.bf16 %v868_v30, %v867_v4  ;;  %v14324_v16 = vpack.c.bf16 %v870_v5, %v869_v62 }
 0x469   : > { %16274 = vst [vmem:[#allocation182_spill] sm:$0xff] %v14306_v52  ;;  %v14312_v57 = vpack.c.bf16 %v866_v23, %v865_v17  ;;  %v14334_v11 = vrot.slane %v16278_v13, %v13576_v49 }
 0x46a   : > { %16276 = vst [vmem:[#allocation184_spill] sm:$0xff] %v14318_v44  ;;  %16277 = vst [vmem:[#allocation185_spill] sm:$0xff] %v14324_v16  ;;  %v2478_v30 = vrot.slane %v2471_v26, %v13570_v34 }
 0x46b   : > { %11617 = vmatpush3.bf16.xpose.msra.mxu0 %v14297_v18  ;;  %11689 = vmatpush3.bf16.xpose.msra.mxu1 %v14074_v15  ;;  %16275 = vst [vmem:[#allocation183_spill] sm:$0xff] %v14312_v57  ;;  %v16347_v15 = vld [vmem:[#allocation56_spill] sm:$0xff] }
 0x46c   : > { %11618 = vmatprep.subr.bf16.mxu0 %v16026_v2  ;;  %11690 = vmatprep.subr.bf16.mxu1 %v16026_v2 }
 0x473   : > { %11620 = vmatpush3.bf16.xpose.msra.mxu0 %v14306_v52  ;;  %11692 = vmatpush3.bf16.xpose.msra.mxu1 %v14082_v25  ;;  %v16345_v25 = vld [vmem:[#allocation54_spill] sm:$0xff] }
 0x474   : > { %11621 = vmatprep.subr.bf16.mxu0 %v16026_v2  ;;  %11693 = vmatprep.subr.bf16.mxu1 %v16026_v2 }
 0x47b   : > { %11623 = vmatpush3.bf16.xpose.msra.mxu0 %v14312_v57  ;;  %11695 = vmatpush3.bf16.xpose.msra.mxu1 %v14090_v1  ;;  %v16343_v1 = vld [vmem:[#allocation52_spill] sm:$0xff] }
 0x47c   : > { %11624 = vmatprep.subr.bf16.mxu0 %v16026_v2  ;;  %11696 = vmatprep.subr.bf16.mxu1 %v16026_v2 }
 0x483   : > { %11626 = vmatpush3.bf16.xpose.msra.mxu0 %v14318_v44  ;;  %11698 = vmatpush3.bf16.xpose.msra.mxu1 %v14098_v22  ;;  %v16341_v22 = vld [vmem:[#allocation50_spill] sm:$0xff] }
 0x484   : > { %11627 = vmatprep.subr.bf16.mxu0 %v16026_v2  ;;  %11699 = vmatprep.subr.bf16.mxu1 %v16026_v2 }
 0x48b   : > { %11629 = vmatpush3.bf16.xpose.msra.mxu0 %v14324_v16  ;;  %11701 = vmatpush3.bf16.xpose.msra.mxu1 %v14106_v53  ;;  %v16337_v53 = vld [vmem:[#allocation46_spill] sm:$0xff] }
 0x48c   : > { %11654 = vmatprep.subr.bf16.mxu0 %v16026_v2  ;;  %11726 = vmatprep.subr.bf16.mxu1 %v16026_v2 }
 0x492   : > { %9288 = vmatmul.mubr.f32.vlgmr.msra.gmra.mrb[18].mxu0 %v14334_v11  ;;  %9393 = vmatmul.mubr.f32.vlgmr.msra.gmra.mrb[30].mxu1 %v13589_v7 }
 0x493   : > { %11656 = vmatpush3.bf16.xpose.msra.mxu0 %v13860_v31  ;;  %11728 = vmatpush3.bf16.xpose.msra.mxu1 %v14120_v38  ;;  %v16335_v38 = vld [vmem:[#allocation44_spill] sm:$0xff] }
 0x494   : > { %11657 = vmatprep.subr.bf16.mxu0 %v16026_v2  ;;  %11729 = vmatprep.subr.bf16.mxu1 %v16026_v2  ;;  %v16368_v31 = vld [vmem:[#allocation152_spill] sm:$0xff] }
 0x495   : > { %9357 = vmatprep.mubr.msk.f32.mxu0 %vm13211_vm4, %v16144_v37  ;;  %9462 = vmatprep.mubr.msk.f32.mxu1 %vm13211_vm4, %v16144_v37 }
 0x49b   : > { %11659 = vmatpush3.bf16.xpose.msra.mxu0 %v13884_v55  ;;  %11731 = vmatpush3.bf16.xpose.msra.mxu1 %v14138_v45  ;;  %v16333_v45 = vld [vmem:[#allocation130_spill] sm:$0xff] }
 0x49c   : > { %11660 = vmatprep.subr.bf16.mxu0 %v16026_v2  ;;  %11732 = vmatprep.subr.bf16.mxu1 %v16026_v2  ;;  %v16367_v55 = vld [vmem:[#allocation74_spill] sm:$0xff] }
 0x4a3   : > { %11662 = vmatpush3.bf16.xpose.msra.mxu0 %v13892_v36  ;;  %11734 = vmatpush3.bf16.xpose.msra.mxu1 %v14146_v33  ;;  %v16331_v33 = vld [vmem:[#allocation42_spill] sm:$0xff]  ;;  %v16366_v36 = vld [vmem:[#allocation91_spill] sm:$0xff] }
 0x4a4   : > { %11663 = vmatprep.subr.bf16.mxu0 %v16026_v2  ;;  %11735 = vmatprep.subr.bf16.mxu1 %v16026_v2 }
 0x4a5   : > { %v2031_v32 = vpop.f32.mrb[12].mxu0  ;;  %v2241_v7 = vpop.f32.mrb[24].mxu1 }
 0x4a6   : > { %v2457_v58 = vsub.f32 %v13900_v10, %v2031_v32  ;;  %v2460_v47 = vsub.f32 %v14154_v20, %v2241_v7  ;;  %v9079_v17 = vpop.f32.mrb[13].mxu0  ;;  %v9184_v23 = vpop.f32.mrb[25].mxu1  ;;  %v16279_v32 = vld [vmem:[#allocation121_spill] sm:$0xff]  ;;  %v16280_v7 = vld [vmem:[#allocation123_spill] sm:$0xff] }
 0x4a7   : > { %v16285_v17 = vld [vmem:[#allocation78_spill] sm:$0xff]  ;;  %v16286_v23 = vld [vmem:[#allocation132_spill] sm:$0xff] }
 0x4a8   : > { %v2463_v4 = vcombine.low %v2455_v50, %v2457_v58  ;;  %v16283_v58 = vld [vmem:[#allocation129_spill] sm:$0xff] }
 0x4aa   : > { %v2470_v62 = vrot.slane %v2463_v4, %v13570_v34  ;;  %v16287_v4 = vld [vmem:[#allocation135_spill] sm:$0xff] }
 0x4ab   : > { %11665 = vmatpush3.bf16.xpose.msra.mxu0 %v13904_v59  ;;  %11737 = vmatpush3.bf16.xpose.msra.mxu1 %v14158_v14  ;;  %v16329_v14 = vld [vmem:[#allocation40_spill] sm:$0xff] }
 0x4ac   : > { %v14360_v5 = vcombine.low %v2470_v62, %v2478_v30  ;;  %11666 = vmatprep.subr.bf16.mxu0 %v16026_v2  ;;  %11738 = vmatprep.subr.bf16.mxu1 %v16026_v2  ;;  %v16288_v30 = vld [vmem:[#allocation137_spill] sm:$0xff]  ;;  %v16365_v59 = vld [vmem:[#allocation72_spill] sm:$0xff] }
 0x4b3   : > { %11668 = vmatpush3.bf16.xpose.msra.mxu0 %v13912_v39  ;;  %11740 = vmatpush3.bf16.xpose.msra.mxu1 %v14166_v0  ;;  %v16327_v0 = vld [vmem:[#allocation39_spill] sm:$0xff]  ;;  %v16364_v39 = vld [vmem:[#allocation89_spill] sm:$0xff] }
 0x4b4   : > { %11669 = vmatprep.subr.bf16.mxu0 %v16026_v2  ;;  %11741 = vmatprep.subr.bf16.mxu1 %v16026_v2 }
 0x4bb   : > { %11671 = vmatpush3.bf16.xpose.msra.mxu0 %v13920_v54  ;;  %11743 = vmatpush3.bf16.xpose.msra.mxu1 %v14174_v60  ;;  %v16325_v60 = vld [vmem:[#allocation38_spill] sm:$0xff] }
 0x4bc   : > { %11672 = vmatprep.subr.bf16.mxu0 %v16026_v2  ;;  %11744 = vmatprep.subr.bf16.mxu1 %v16026_v2  ;;  %v16363_v54 = vld [vmem:[#allocation70_spill] sm:$0xff] }
 0x4c3   : > { %11674 = vmatpush3.bf16.xpose.msra.mxu0 %v13928_v27  ;;  %11746 = vmatpush3.bf16.xpose.msra.mxu1 %v14182_v63  ;;  %v16323_v63 = vld [vmem:[#allocation37_spill] sm:$0xff]  ;;  %v16362_v27 = vld [vmem:[#allocation87_spill] sm:$0xff] }
 0x4c4   : > { %11675 = vmatprep.subr.bf16.mxu0 %v16026_v2  ;;  %11747 = vmatprep.subr.bf16.mxu1 %v16026_v2 }
 0x4cb   : > { %11677 = vmatpush3.bf16.xpose.msra.mxu0 %v13936_v21  ;;  %11749 = vmatpush3.bf16.xpose.msra.mxu1 %v14190_v42  ;;  %v16319_v42 = vld [vmem:[#allocation35_spill] sm:$0xff]  ;;  %v16361_v21 = vld [vmem:[#allocation68_spill] sm:$0xff] }
 0x4cc   : > { %11702 = vmatprep.subr.bf16.mxu0 %v16026_v2  ;;  %11774 = vmatprep.subr.bf16.mxu1 %v16026_v2 }
 0x4d2   : > { %9358 = vmatmul.mubr.f32.vlgmr.msra.gmra.mrb[20].mxu0 %v13698_v43  ;;  %9463 = vmatmul.mubr.f32.vlgmr.msra.gmra.mrb[32].mxu1 %v13704_v28 }
 0x4d3   : > { %11704 = vmatpush3.bf16.xpose.msra.mxu0 %v13950_v56  ;;  %11776 = vmatpush3.bf16.xpose.msra.mxu1 %v14204_v8  ;;  %v16317_v8 = vld [vmem:[#allocation34_spill] sm:$0xff]  ;;  %v16360_v56 = vld [vmem:[#allocation85_spill] sm:$0xff] }
 0x4d4   : > { %11705 = vmatprep.subr.bf16.mxu0 %v16026_v2  ;;  %11777 = vmatprep.subr.bf16.mxu1 %v16026_v2 }
 0x4d5   : > { %9427 = vmatprep.mubr.msk.f32.mxu0 %vm13211_vm4, %v16144_v37  ;;  %9532 = vmatprep.mubr.msk.f32.mxu1 %vm13211_vm4, %v16144_v37 }
 0x4db   : > { %11707 = vmatpush3.bf16.xpose.msra.mxu0 %v13972_v6  ;;  %11779 = vmatpush3.bf16.xpose.msra.mxu1 %v14220_v24  ;;  %v16316_v24 = vld [vmem:[#allocation43_spill] sm:$0xff]  ;;  %v16359_v6 = vld [vmem:[#allocation66_spill] sm:$0xff] }
 0x4dc   : > { %11708 = vmatprep.subr.bf16.mxu0 %v16026_v2  ;;  %11780 = vmatprep.subr.bf16.mxu1 %v16026_v2 }
 0x4e3   : > { %11710 = vmatpush3.bf16.xpose.msra.mxu0 %v13980_v48  ;;  %11782 = vmatpush3.bf16.xpose.msra.mxu1 %v14226_v41  ;;  %v16315_v41 = vld [vmem:[#allocation111_spill] sm:$0xff] }
 0x4e4   : > { %11711 = vmatprep.subr.bf16.mxu0 %v16026_v2  ;;  %11783 = vmatprep.subr.bf16.mxu1 %v16026_v2  ;;  %v16358_v48 = vld [vmem:[#allocation83_spill] sm:$0xff] }
 0x4e5   : > { %v2171_v20 = vpop.f32.mrb[14].mxu0  ;;  %v2381_v50 = vpop.f32.mrb[26].mxu1 }
 0x4e6   : > { %v2459_v10 = vsub.f32 %v13988_v29, %v2171_v20  ;;  %v2462_v43 = vsub.f32 %v14232_v46, %v2381_v50  ;;  %v9149_v28 = vpop.f32.mrb[15].mxu0  ;;  %v9254_v26 = vpop.f32.mrb[27].mxu1  ;;  %v16281_v29 = vld [vmem:[#allocation125_spill] sm:$0xff]  ;;  %v16282_v46 = vld [vmem:[#allocation127_spill] sm:$0xff]  ;;  %v16289_v20 = vld [vmem:[#allocation138_spill] sm:$0xff] }
 0x4e8   : > { %v2487_v13 = vcombine.low %v2460_v47, %v2462_v43  ;;  %v16284_v47 = vld [vmem:[#allocation77_spill] sm:$0xff] }
 0x4ea   : > { %v2494_v26 = vrot.slane %v2487_v13, %v13570_v34  ;;  %v16292_v13 = vld [vmem:[#allocation144_spill] sm:$0xff] }
 0x4eb   : > { %11713 = vmatpush3.bf16.xpose.msra.mxu0 %v16279_v32  ;;  %11785 = vmatpush3.bf16.xpose.msra.mxu1 %v14238_v3  ;;  %v16306_v3 = vld [vmem:[#allocation161_spill] sm:$0xff]  ;;  %v16355_v32 = vld [vmem:[#allocation62_spill] sm:$0xff] }
 0x4ec   : > { %11714 = vmatprep.subr.bf16.mxu0 %v16026_v2  ;;  %11786 = vmatprep.subr.bf16.mxu1 %v16026_v2 }
 0x4f3   : > { %11716 = vmatpush3.bf16.xpose.msra.mxu0 %v16280_v7  ;;  %11788 = vmatpush3.bf16.xpose.msra.mxu1 %v14244_v12  ;;  %v16354_v7 = vld [vmem:[#allocation79_spill] sm:$0xff] }
 0x4f4   : > { %11717 = vmatprep.subr.bf16.mxu0 %v16026_v2  ;;  %11789 = vmatprep.subr.bf16.mxu1 %v16026_v2 }
 0x4fb   : > { %11719 = vmatpush3.bf16.xpose.msra.mxu0 %v16281_v29  ;;  %11791 = vmatpush3.bf16.xpose.msra.mxu1 %v14250_v40  ;;  %v16305_v40 = vld [vmem:[#allocation26_spill] sm:$0xff]  ;;  %v16353_v29 = vld [vmem:[#allocation60_spill] sm:$0xff] }
 0x4fc   : > { %11720 = vmatprep.subr.bf16.mxu0 %v16026_v2  ;;  %11792 = vmatprep.subr.bf16.mxu1 %v16026_v2 }
 0x503   : > { %11722 = vmatpush3.bf16.xpose.msra.mxu0 %v16282_v46  ;;  %11794 = vmatpush3.bf16.xpose.msra.mxu1 %v14256_v19  ;;  %v16304_v19 = vld [vmem:[#allocation159_spill] sm:$0xff] }
 0x504   : > { %11723 = vmatprep.subr.bf16.mxu0 %v16026_v2  ;;  %11795 = vmatprep.subr.bf16.mxu1 %v16026_v2  ;;  %v16352_v46 = vld [vmem:[#allocation75_spill] sm:$0xff] }
 0x50b   : > { %11725 = vmatpush3.bf16.xpose.msra.mxu0 %v16283_v58  ;;  %11797 = vmatpush3.bf16.xpose.msra.mxu1 %v14262_v51  ;;  %v16351_v58 = vld [vmem:[#allocation149_spill] sm:$0xff] }
 0x50c   : > { %11750 = vmatprep.subr.bf16.mxu0 %v16026_v2  ;;  %11822 = vmatprep.subr.bf16.mxu1 %v16026_v2 }
 0x512   : > { %9428 = vmatmul.mubr.f32.vlgmr.msra.gmra.mrb[22].mxu0 %v16284_v47  ;;  %9533 = vmatmul.mubr.f32.vlgmr.msra.gmra.mrb[34].mxu1 %v16285_v17  ;;  %v16290_v17 = vld [vmem:[#allocation140_spill] sm:$0xff] }
 0x513   : > { %11752 = vmatpush3.bf16.xpose.msra.mxu0 %v16286_v23  ;;  %11824 = vmatpush3.bf16.xpose.msra.mxu1 %v14268_v35  ;;  %v16350_v23 = vld [vmem:[#allocation133_spill] sm:$0xff] }
 0x514   : > { %11753 = vmatprep.subr.bf16.mxu0 %v16026_v2  ;;  %11825 = vmatprep.subr.bf16.mxu1 %v16026_v2 }
 0x515   : > { %9497 = vmatprep.mubr.msk.f32.mxu0 %vm13211_vm4, %v16144_v37  ;;  %9602 = vmatprep.mubr.msk.f32.mxu1 %vm13211_vm4, %v16144_v37 }
 0x51b   : > { %11755 = vmatpush3.bf16.xpose.msra.mxu0 %v16287_v4  ;;  %11827 = vmatpush3.bf16.xpose.msra.mxu1 %v14280_v9  ;;  %v16349_v4 = vld [vmem:[#allocation58_spill] sm:$0xff] }
 0x51c   : > { %11756 = vmatprep.subr.bf16.mxu0 %v16026_v2  ;;  %11828 = vmatprep.subr.bf16.mxu1 %v16026_v2 }
 0x523   : > { %11758 = vmatpush3.bf16.xpose.msra.mxu0 %v16288_v30  ;;  %11830 = vmatpush3.bf16.xpose.msra.mxu1 %v14286_v61  ;;  %v2502_v61 = vrot.slane %v14360_v5, %v13576_v49  ;;  %v16293_v5 = vld [vmem:[#allocation146_spill] sm:$0xff]  ;;  %v16348_v30 = vld [vmem:[#allocation73_spill] sm:$0xff] }
 0x524   : > { %11759 = vmatprep.subr.bf16.mxu0 %v16026_v2  ;;  %11831 = vmatprep.subr.bf16.mxu1 %v16026_v2 }
 0x525   : > { %v2311_v62 = vpop.f32.mrb[16].mxu0 }
 0x526   : > { %v2461_v50 = vsub.f32 %v16289_v20, %v2311_v62  ;;  %v9219_v43 = vpop.f32.mrb[17].mxu0 }
 0x527   : > { %v16296_v43 = vld [vmem:[#allocation95_spill] sm:$0xff] }
 0x528   : > { %v2479_v28 = vcombine.low %v2459_v10, %v2461_v50  ;;  %v16291_v50 = vld [vmem:[#allocation142_spill] sm:$0xff] }
 0x52a   : > { %v2486_v47 = vrot.slane %v2479_v28, %v13570_v34  ;;  %v16297_v28 = vld [vmem:[#allocation151_spill] sm:$0xff] }
 0x52b   : > { %11761 = vmatpush3.bf16.xpose.msra.mxu0 %v16290_v17  ;;  %11833 = vmatpush3.bf16.xpose.msra.mxu1 %v14297_v18  ;;  %v16346_v17 = vld [vmem:[#allocation71_spill] sm:$0xff] }
 0x52c   : > { %v2503_v9 = vcombine.low %v2486_v47, %v2494_v26  ;;  %11762 = vmatprep.subr.bf16.mxu0 %v16026_v2  ;;  %11834 = vmatprep.subr.bf16.mxu1 %v16026_v2  ;;  %v16298_v26 = vld [vmem:[#allocation23_spill] sm:$0xff]  ;;  %v16299_v47 = vld [vmem:[#allocation154_spill] sm:$0xff] }
 0x52e   : > { %v2510_v62 = vrot.slane %v2503_v9, %v13576_v49  ;;  %v16295_v9 = vld [vmem:[#allocation96_spill] sm:$0xff] }
 0x530   : > { %v2511_v20 = vcombine.low %v2502_v61, %v2510_v62  ;;  %v2512_v10 = vcombine.high %v2502_v61, %v2510_v62  ;;  %v16294_v61 = vld [vmem:[#allocation148_spill] sm:$0xff] }
 0x531   : > { %v16300_v62 = vld [vmem:[#allocation24_spill] sm:$0xff] }
 0x533   : > { %11764 = vmatpush3.bf16.xpose.msra.mxu0 %v16291_v50  ;;  %11836 = vmatpush3.bf16.xpose.msra.mxu1 %v14306_v52  ;;  %v16344_v50 = vld [vmem:[#allocation69_spill] sm:$0xff] }
 0x534   : > { %11765 = vmatprep.subr.bf16.mxu0 %v16026_v2  ;;  %11837 = vmatprep.subr.bf16.mxu1 %v16026_v2 }
 0x53b   : > { %11767 = vmatpush3.bf16.xpose.msra.mxu0 %v16292_v13  ;;  %11839 = vmatpush3.bf16.xpose.msra.mxu1 %v14312_v57  ;;  %v16342_v13 = vld [vmem:[#allocation67_spill] sm:$0xff] }
 0x53c   : > { %11768 = vmatprep.subr.bf16.mxu0 %v16026_v2  ;;  %11840 = vmatprep.subr.bf16.mxu1 %v16026_v2 }
 0x543   : > { %11770 = vmatpush3.bf16.xpose.msra.mxu0 %v16293_v5  ;;  %11842 = vmatpush3.bf16.xpose.msra.mxu1 %v14318_v44  ;;  %v16303_v44 = vld [vmem:[#allocation157_spill] sm:$0xff] }
 0x544   : > { %11771 = vmatprep.subr.bf16.mxu0 %v16026_v2  ;;  %11843 = vmatprep.subr.bf16.mxu1 %v16026_v2  ;;  %v16340_v5 = vld [vmem:[#allocation65_spill] sm:$0xff] }
 0x54b   : > { %11773 = vmatpush3.bf16.xpose.msra.mxu0 %v16294_v61  ;;  %11845 = vmatpush3.bf16.xpose.msra.mxu1 %v14324_v16  ;;  %v16336_v61 = vld [vmem:[#allocation61_spill] sm:$0xff] }
 0x54c   : > { %11798 = vmatprep.subr.bf16.mxu0 %v16026_v2  ;;  %11846 = vmatprep.subr.bf16.mxu1 %v16026_v2 }
 0x552   : > { %9498 = vmatmul.mubr.f32.vlgmr.msra.gmra.mrb[24].mxu0 %v16295_v9  ;;  %9603 = vmatmul.mubr.f32.vlgmr.msra.gmra.mrb[36].mxu1 %v16296_v43  ;;  %v16301_v9 = vld [vmem:[#allocation156_spill] sm:$0xff]  ;;  %v16302_v43 = vld [vmem:[#allocation25_spill] sm:$0xff] }
 0x553   : > { %11800 = vmatpush3.bf16.xpose.msra.mxu0 %v16297_v28  ;;  %11848 = vmatpush3.bf16.xpose.msra.mxu1 %v16298_v26  ;;  %v16334_v28 = vld [vmem:[#allocation59_spill] sm:$0xff] }
 0x554   : > { %11801 = vmatprep.subr.bf16.mxu0 %v16026_v2  ;;  %11849 = vmatprep.subr.bf16.mxu1 %v16026_v2 }
 0x555   : > { %9567 = vmatprep.mubr.msk.f32.mxu0 %vm13211_vm4, %v16144_v37  ;;  %9637 = vmatprep.mubr.msk.f32.mxu1 %vm13211_vm4, %v16144_v37 }
 0x55b   : > { %11803 = vmatpush3.bf16.xpose.msra.mxu0 %v16299_v47  ;;  %11851 = vmatpush3.bf16.xpose.msra.mxu1 %v16300_v62  ;;  %v16332_v47 = vld [vmem:[#allocation115_spill] sm:$0xff] }
 0x55c   : > { %11804 = vmatprep.subr.bf16.mxu0 %v16026_v2  ;;  %11852 = vmatprep.subr.bf16.mxu1 %v16026_v2 }
 0x563   : > { %11806 = vmatpush3.bf16.xpose.msra.mxu0 %v16301_v9  ;;  %11854 = vmatpush3.bf16.xpose.msra.mxu1 %v16302_v43  ;;  %v16330_v9 = vld [vmem:[#allocation57_spill] sm:$0xff] }
 0x564   : > { %11807 = vmatprep.subr.bf16.mxu0 %v16026_v2  ;;  %11855 = vmatprep.subr.bf16.mxu1 %v16026_v2 }
 0x565   : > { %v2451_v16 = vpop.f32.mrb[18].mxu0 }
 0x566   : > { %v2513_v57 = vsub.f32 %v16303_v44, %v2451_v16  ;;  %v9289_v52 = vpop.f32.mrb[19].mxu0  ;;  %v16307_v44 = vld [vmem:[#allocation27_spill] sm:$0xff] }
 0x567   : > { %v16309_v52 = vld [vmem:[#allocation28_spill] sm:$0xff]  ;;  %v16312_v16 = vld [vmem:[#allocation167_spill] sm:$0xff] }
 0x568   : > { %v2520_v18 = vrot.slane %v2513_v57, %v13576_v49  ;;  %v16311_v57 = vld [vmem:[#allocation29_spill] sm:$0xff] }
 0x56a   : > { %v2521_v35 = vcombine.high %v2520_v18, %v16144_v37  ;;  %v14485_v51 = vpack.c.bf16 %v2520_v18, %v2511_v20  ;;  %v16308_v18 = vld [vmem:[#allocation163_spill] sm:$0xff]  ;;  %v16313_v20 = vld [vmem:[#allocation41_spill] sm:$0xff] }
 0x56b   : > { %11809 = vmatpush3.bf16.xpose.msra.mxu0 %v16304_v19  ;;  %11857 = vmatpush3.bf16.xpose.msra.mxu1 %v16305_v40  ;;  %v16328_v19 = vld [vmem:[#allocation55_spill] sm:$0xff] }
 0x56c   : > { %v14489_v12 = vpack.c.bf16 %v2521_v35, %v2512_v10  ;;  %11810 = vmatprep.subr.bf16.mxu0 %v16026_v2  ;;  %11858 = vmatprep.subr.bf16.mxu1 %v16026_v2  ;;  %v16310_v35 = vld [vmem:[#allocation165_spill] sm:$0xff]  ;;  %v16314_v10 = vld [vmem:[#allocation114_spill] sm:$0xff] }
 0x573   : > { %11812 = vmatpush3.bf16.xpose.msra.mxu0 %v16306_v3  ;;  %11860 = vmatpush3.bf16.xpose.msra.mxu1 %v16307_v44  ;;  %v16326_v3 = vld [vmem:[#allocation53_spill] sm:$0xff] }
 0x574   : > { %11813 = vmatprep.subr.bf16.mxu0 %v16026_v2  ;;  %11861 = vmatprep.subr.bf16.mxu1 %v16026_v2 }
 0x57b   : > { %11815 = vmatpush3.bf16.xpose.msra.mxu0 %v16308_v18  ;;  %11863 = vmatpush3.bf16.xpose.msra.mxu1 %v16309_v52  ;;  %v16324_v18 = vld [vmem:[#allocation51_spill] sm:$0xff] }
 0x57c   : > { %11816 = vmatprep.subr.bf16.mxu0 %v16026_v2  ;;  %11864 = vmatprep.subr.bf16.mxu1 %v16026_v2 }
 0x583   : > { %11818 = vmatpush3.bf16.xpose.msra.mxu0 %v16310_v35  ;;  %11866 = vmatpush3.bf16.xpose.msra.mxu1 %v16311_v57  ;;  %v16322_v35 = vld [vmem:[#allocation49_spill] sm:$0xff] }
 0x584   : > { %11819 = vmatprep.subr.bf16.mxu0 %v16026_v2  ;;  %11867 = vmatprep.subr.bf16.mxu1 %v16026_v2 }
 0x58b   : > { %11821 = vmatpush3.bf16.xpose.msra.mxu0 %v16312_v16  ;;  %11869 = vmatpush3.bf16.xpose.msra.mxu1 %v16313_v20  ;;  %v16318_v16 = vld [vmem:[#allocation45_spill] sm:$0xff] }
 0x58c   : > { %11870 = vmatprep.subr.bf16.mxu0 %v16026_v2  ;;  %11894 = vmatprep.subr.bf16.mxu1 %v16026_v2 }
 0x592   : > { %9568 = vmatmul.mubr.f32.vlgmr.msra.gmra.mrb[26].mxu0 %v16314_v10  ;;  %9638 = vmatmul.mubr.f32.vlgmr.msra.gmra.mrb[28].mxu1 %v16315_v41  ;;  %v16320_v41 = vld [vmem:[#allocation47_spill] sm:$0xff]  ;;  %v16321_v10 = vld [vmem:[#allocation36_spill] sm:$0xff] }
 0x593   : > { %11872 = vmatpush3.bf16.xpose.msra.mxu0 %v16316_v24  ;;  %11896 = vmatpush3.bf16.xpose.msra.mxu1 %v16317_v8 }
 0x594   : > { %11873 = vmatprep.subr.bf16.mxu0 %v16026_v2  ;;  %11897 = vmatprep.subr.bf16.mxu1 %v16026_v2 }
 0x595   : > { %9672 = vmatprep.mubr.msk.f32.mxu0 %vm13211_vm4, %v16144_v37  ;;  %9707 = vmatprep.mubr.msk.f32.mxu1 %vm13211_vm4, %v16144_v37 }
 0x59b   : > { %11875 = vmatpush3.bf16.xpose.msra.mxu0 %v16318_v16  ;;  %11899 = vmatpush3.bf16.xpose.msra.mxu1 %v16319_v42 }
 0x59c   : > { %11876 = vmatprep.subr.bf16.mxu0 %v16026_v2  ;;  %11900 = vmatprep.subr.bf16.mxu1 %v16026_v2 }
 0x5a3   : > { %11878 = vmatpush3.bf16.xpose.msra.mxu0 %v16320_v41  ;;  %11902 = vmatpush3.bf16.xpose.msra.mxu1 %v16321_v10 }
 0x5a4   : > { %11879 = vmatprep.subr.bf16.mxu0 %v16026_v2  ;;  %11903 = vmatprep.subr.bf16.mxu1 %v16026_v2 }
 0x5ab   : > { %11881 = vmatpush3.bf16.xpose.msra.mxu0 %v16322_v35  ;;  %11905 = vmatpush3.bf16.xpose.msra.mxu1 %v16323_v63 }
 0x5ac   : > { %11882 = vmatprep.subr.bf16.mxu0 %v16026_v2  ;;  %11906 = vmatprep.subr.bf16.mxu1 %v16026_v2 }
 0x5b3   : > { %11884 = vmatpush3.bf16.xpose.msra.mxu0 %v16324_v18  ;;  %11908 = vmatpush3.bf16.xpose.msra.mxu1 %v16325_v60 }
 0x5b4   : > { %11885 = vmatprep.subr.bf16.mxu0 %v16026_v2  ;;  %11909 = vmatprep.subr.bf16.mxu1 %v16026_v2 }
 0x5bb   : > { %11887 = vmatpush3.bf16.xpose.msra.mxu0 %v16326_v3  ;;  %11911 = vmatpush3.bf16.xpose.msra.mxu1 %v16327_v0 }
 0x5bc   : > { %11888 = vmatprep.subr.bf16.mxu0 %v16026_v2  ;;  %11912 = vmatprep.subr.bf16.mxu1 %v16026_v2 }
 0x5c3   : > { %11890 = vmatpush3.bf16.xpose.msra.mxu0 %v16328_v19  ;;  %11914 = vmatpush3.bf16.xpose.msra.mxu1 %v16329_v14 }
 0x5c4   : > { %11891 = vmatprep.subr.bf16.mxu0 %v16026_v2  ;;  %11915 = vmatprep.subr.bf16.mxu1 %v16026_v2 }
 0x5cb   : > { %11893 = vmatpush3.bf16.xpose.msra.mxu0 %v16330_v9  ;;  %11917 = vmatpush3.bf16.xpose.msra.mxu1 %v16331_v33 }
 0x5cc   : > { %11918 = vmatprep.subr.bf16.mxu0 %v16026_v2  ;;  %11942 = vmatprep.subr.bf16.mxu1 %v16026_v2 }
 0x5d2   : > { %9673 = vmatmul.mubr.f32.vlgmr.msra.gmra.mrb[20].mxu0 %v16332_v47  ;;  %9708 = vmatmul.mubr.f32.vlgmr.msra.gmra.mrb[30].mxu1 %v16333_v45  ;;  %v16338_v45 = vld [vmem:[#allocation63_spill] sm:$0xff]  ;;  %v16339_v47 = vld [vmem:[#allocation48_spill] sm:$0xff] }
 0x5d3   : > { %11920 = vmatpush3.bf16.xpose.msra.mxu0 %v16334_v28  ;;  %11944 = vmatpush3.bf16.xpose.msra.mxu1 %v16335_v38 }
 0x5d4   : > { %11921 = vmatprep.subr.bf16.mxu0 %v16026_v2  ;;  %11945 = vmatprep.subr.bf16.mxu1 %v16026_v2 }
 0x5d5   : > { %9742 = vmatprep.mubr.msk.f32.mxu0 %vm13211_vm4, %v16144_v37  ;;  %9777 = vmatprep.mubr.msk.f32.mxu1 %vm13211_vm4, %v16144_v37 }
 0x5db   : > { %11923 = vmatpush3.bf16.xpose.msra.mxu0 %v16336_v61  ;;  %11947 = vmatpush3.bf16.xpose.msra.mxu1 %v16337_v53 }
 0x5dc   : > { %11924 = vmatprep.subr.bf16.mxu0 %v16026_v2  ;;  %11948 = vmatprep.subr.bf16.mxu1 %v16026_v2 }
 0x5e3   : > { %11926 = vmatpush3.bf16.xpose.msra.mxu0 %v16338_v45  ;;  %11950 = vmatpush3.bf16.xpose.msra.mxu1 %v16339_v47 }
 0x5e4   : > { %11927 = vmatprep.subr.bf16.mxu0 %v16026_v2  ;;  %11951 = vmatprep.subr.bf16.mxu1 %v16026_v2 }
 0x5eb   : > { %11929 = vmatpush3.bf16.xpose.msra.mxu0 %v16340_v5  ;;  %11953 = vmatpush3.bf16.xpose.msra.mxu1 %v16341_v22 }
 0x5ec   : > { %11930 = vmatprep.subr.bf16.mxu0 %v16026_v2  ;;  %11954 = vmatprep.subr.bf16.mxu1 %v16026_v2 }
 0x5f3   : > { %11932 = vmatpush3.bf16.xpose.msra.mxu0 %v16342_v13  ;;  %11956 = vmatpush3.bf16.xpose.msra.mxu1 %v16343_v1 }
 0x5f4   : > { %11933 = vmatprep.subr.bf16.mxu0 %v16026_v2  ;;  %11957 = vmatprep.subr.bf16.mxu1 %v16026_v2 }
 0x5fb   : > { %11935 = vmatpush3.bf16.xpose.msra.mxu0 %v16344_v50  ;;  %11959 = vmatpush3.bf16.xpose.msra.mxu1 %v16345_v25 }
 0x5fc   : > { %11936 = vmatprep.subr.bf16.mxu0 %v16026_v2  ;;  %11960 = vmatprep.subr.bf16.mxu1 %v16026_v2 }
 0x603   : > { %11938 = vmatpush3.bf16.xpose.msra.mxu0 %v16346_v17  ;;  %11962 = vmatpush3.bf16.xpose.msra.mxu1 %v16347_v15 }
 0x604   : > { %11939 = vmatprep.subr.bf16.mxu0 %v16026_v2  ;;  %11963 = vmatprep.subr.bf16.mxu1 %v16026_v2 }
 0x60b   : > { %11941 = vmatpush3.bf16.xpose.msra.mxu0 %v16348_v30  ;;  %11965 = vmatpush3.bf16.xpose.msra.mxu1 %v16349_v4 }
 0x60c   : > { %11966 = vmatprep.subr.bf16.mxu0 %v16026_v2  ;;  %11990 = vmatprep.subr.bf16.mxu1 %v16026_v2 }
 0x612   : > { %9743 = vmatmul.mubr.f32.vlgmr.msra.gmra.mrb[22].mxu0 %v16350_v23  ;;  %9778 = vmatmul.mubr.f32.vlgmr.msra.gmra.mrb[32].mxu1 %v16351_v58  ;;  %v16356_v58 = vld [vmem:[#allocation81_spill] sm:$0xff]  ;;  %v16357_v23 = vld [vmem:[#allocation64_spill] sm:$0xff] }
 0x613   : > { %11968 = vmatpush3.bf16.xpose.msra.mxu0 %v16352_v46  ;;  %11992 = vmatpush3.bf16.xpose.msra.mxu1 %v16353_v29 }
 0x614   : > { %11969 = vmatprep.subr.bf16.mxu0 %v16026_v2  ;;  %11993 = vmatprep.subr.bf16.mxu1 %v16026_v2 }
 0x615   : > { %9812 = vmatprep.mubr.msk.f32.mxu0 %vm13211_vm4, %v16144_v37  ;;  %9847 = vmatprep.mubr.msk.f32.mxu1 %vm13211_vm4, %v16144_v37 }
 0x61b   : > { %11971 = vmatpush3.bf16.xpose.msra.mxu0 %v16354_v7  ;;  %11995 = vmatpush3.bf16.xpose.msra.mxu1 %v16355_v32  ;;  %v16376_v7 = vld [vmem:[#allocation101_spill] sm:$0xff] }
 0x61c   : > { %11972 = vmatprep.subr.bf16.mxu0 %v16026_v2  ;;  %11996 = vmatprep.subr.bf16.mxu1 %v16026_v2 }
 0x623   : > { %11974 = vmatpush3.bf16.xpose.msra.mxu0 %v16356_v58  ;;  %11998 = vmatpush3.bf16.xpose.msra.mxu1 %v16357_v23 }
 0x624   : > { %11975 = vmatprep.subr.bf16.mxu0 %v16026_v2  ;;  %11999 = vmatprep.subr.bf16.mxu1 %v16026_v2 }
 0x62b   : > { %11977 = vmatpush3.bf16.xpose.msra.mxu0 %v16358_v48  ;;  %12001 = vmatpush3.bf16.xpose.msra.mxu1 %v16359_v6  ;;  %v16373_v48 = vld [vmem:[#allocation80_spill] sm:$0xff] }
 0x62c   : > { %11978 = vmatprep.subr.bf16.mxu0 %v16026_v2  ;;  %12002 = vmatprep.subr.bf16.mxu1 %v16026_v2 }
 0x633   : > { %11980 = vmatpush3.bf16.xpose.msra.mxu0 %v16360_v56  ;;  %12004 = vmatpush3.bf16.xpose.msra.mxu1 %v16361_v21  ;;  %v16370_v56 = vld [vmem:[#allocation93_spill] sm:$0xff] }
 0x634   : > { %11981 = vmatprep.subr.bf16.mxu0 %v16026_v2  ;;  %12005 = vmatprep.subr.bf16.mxu1 %v16026_v2 }
 0x63b   : > { %11983 = vmatpush3.bf16.xpose.msra.mxu0 %v16362_v27  ;;  %12007 = vmatpush3.bf16.xpose.msra.mxu1 %v16363_v54  ;;  %v16369_v27 = vld [vmem:[#allocation168_spill] sm:$0xff] }
 0x63c   : > { %11984 = vmatprep.subr.bf16.mxu0 %v16026_v2  ;;  %12008 = vmatprep.subr.bf16.mxu1 %v16026_v2 }
 0x643   : > { %11986 = vmatpush3.bf16.xpose.msra.mxu0 %v16364_v39  ;;  %12010 = vmatpush3.bf16.xpose.msra.mxu1 %v16365_v59  ;;  %v16371_v39 = vld [vmem:[#allocation76_spill] sm:$0xff] }
 0x644   : > { %11987 = vmatprep.subr.bf16.mxu0 %v16026_v2  ;;  %12011 = vmatprep.subr.bf16.mxu1 %v16026_v2 }
 0x64b   : > { %11989 = vmatpush3.bf16.xpose.msra.mxu0 %v16366_v36  ;;  %12013 = vmatpush3.bf16.xpose.msra.mxu1 %v16367_v55  ;;  %v16372_v36 = vld [vmem:[#allocation97_spill] sm:$0xff] }
 0x64c   : > { %12014 = vmatprep.subr.bf16.mxu0 %v16026_v2  ;;  %12038 = vmatprep.subr.bf16.mxu1 %v16026_v2 }
 0x652   : > { %9813 = vmatmul.mubr.f32.vlgmr.msra.gmra.mrb[24].mxu0 %v16368_v31  ;;  %9848 = vmatmul.mubr.f32.vlgmr.msra.gmra.mrb[34].mxu1 %v16369_v27  ;;  %v16374_v27 = vld [vmem:[#allocation99_spill] sm:$0xff]  ;;  %v16375_v31 = vld [vmem:[#allocation82_spill] sm:$0xff] }
 0x653   : > { %12016 = vmatpush3.bf16.xpose.msra.mxu0 %v16370_v56  ;;  %12040 = vmatpush3.bf16.xpose.msra.mxu1 %v16371_v39  ;;  %v16377_v39 = vld [vmem:[#allocation84_spill] sm:$0xff] }
 0x654   : > { %12017 = vmatprep.subr.bf16.mxu0 %v16026_v2  ;;  %12041 = vmatprep.subr.bf16.mxu1 %v16026_v2 }
 0x655   : > { %9882 = vmatprep.mubr.msk.f32.mxu0 %vm13211_vm4, %v16144_v37  ;;  %9917 = vmatprep.mubr.msk.f32.mxu1 %vm13211_vm4, %v16144_v37 }
 0x65b   : > { %12019 = vmatpush3.bf16.xpose.msra.mxu0 %v16372_v36  ;;  %12043 = vmatpush3.bf16.xpose.msra.mxu1 %v16373_v48  ;;  %v16378_v36 = vld [vmem:[#allocation103_spill] sm:$0xff]  ;;  %v16379_v48 = vld [vmem:[#allocation86_spill] sm:$0xff] }
 0x65c   : > { %12020 = vmatprep.subr.bf16.mxu0 %v16026_v2  ;;  %12044 = vmatprep.subr.bf16.mxu1 %v16026_v2 }
 0x663   : > { %12022 = vmatpush3.bf16.xpose.msra.mxu0 %v16374_v27  ;;  %12046 = vmatpush3.bf16.xpose.msra.mxu1 %v16375_v31  ;;  %v16380_v27 = vld [vmem:[#allocation105_spill] sm:$0xff]  ;;  %v16381_v31 = vld [vmem:[#allocation88_spill] sm:$0xff] }
 0x664   : > { %12023 = vmatprep.subr.bf16.mxu0 %v16026_v2  ;;  %12047 = vmatprep.subr.bf16.mxu1 %v16026_v2 }
 0x665   : > { %v3218_v56 = vpop.f32.mrb[28].mxu1 }
 0x666   : > { %v9639_v58 = vpop.f32.mrb[29].mxu1 }
 0x667   : > { %v16382_v58 = vld [vmem:[#allocation107_spill] sm:$0xff] }
 0x66b   : > { %12025 = vmatpush3.bf16.xpose.msra.mxu0 %v16376_v7  ;;  %12049 = vmatpush3.bf16.xpose.msra.mxu1 %v16377_v39  ;;  %v16383_v7 = vld [vmem:[#allocation90_spill] sm:$0xff] }
 0x66c   : > { %12026 = vmatprep.subr.bf16.mxu0 %v16026_v2  ;;  %12050 = vmatprep.subr.bf16.mxu1 %v16026_v2 }
 0x673   : > { %12028 = vmatpush3.bf16.xpose.msra.mxu0 %v16378_v36  ;;  %12052 = vmatpush3.bf16.xpose.msra.mxu1 %v16379_v48  ;;  %v16384_v36 = vmov 0 }
 0x674   : > { %12029 = vmatprep.subr.bf16.mxu0 %v16026_v2  ;;  %12053 = vmatprep.subr.bf16.mxu1 %v16026_v2  ;;  %v16385_v36 = vsel %vm14658_vm6, 4294967295, %v16384_v36 }
 0x675   : > { %16386 = vst [vmem:[#allocation77_spill] sm:$0xff] %v16385_v36  ;;  %v16395_v36 = vld [vmem:[#allocation32_spill] sm:$0xff] }
 0x67b   : > { %12031 = vmatpush3.bf16.xpose.msra.mxu0 %v16380_v27  ;;  %12055 = vmatpush3.bf16.xpose.msra.mxu1 %v16381_v31  ;;  %v16387_v27 = vld [vmem:[#allocation109_spill] sm:$0xff]  ;;  %v16388_v31 = vld [vmem:[#allocation92_spill] sm:$0xff] }
 0x67c   : > { %12032 = vmatprep.subr.bf16.mxu0 %v16026_v2  ;;  %12056 = vmatprep.subr.bf16.mxu1 %v16026_v2 }
 0x683   : > { %12034 = vmatpush3.bf16.xpose.msra.mxu0 %v16382_v58  ;;  %12058 = vmatpush3.bf16.xpose.msra.mxu1 %v16383_v7  ;;  %v16389_v58 = vld [vmem:[#allocation170_spill] sm:$0xff] }
 0x684   : > { %12035 = vmatprep.subr.bf16.mxu0 %v16026_v2  ;;  %12059 = vmatprep.subr.bf16.mxu1 %v16026_v2 }
 0x68b   : > { %12037 = vmatpush3.bf16.xpose.msra.mxu0 %v16387_v27  ;;  %12061 = vmatpush3.bf16.xpose.msra.mxu1 %v16388_v31 }
 0x68c   : > { %12064 = vmatprep.subr.msk.bf16.mxu1 %vm14658_vm6, %v14489_v12 }
 0x692   : > { %9883 = vmatmul.mubr.f32.vlgmr.msra.gmra.mrb[26].mxu0 %v16389_v58  ;;  %9918 = vmatmul.mubr.f32.vlgmr.msra.gmra.mrb[36].mxu1 %v14334_v11 }
 0x693   : > { %12067 = vmatpush1.bf16.msk.msra.mxu1 %vm14658_vm6, %v14485_v51  ;;  %3920 = vmatprep.mubr.f32.mxu1 %v16144_v37  ;;  %v3840_v51 = vld [vmem:[%s15698_s9] sm:$0xff] }
 0x694   : > { %4111 = vmatprep.mubr.f32.mxu0 %v16144_v37 }
 0x696   : > { %7404 = vmatmul.mubr.msk.f32.vlgmr.msra.gmra.mrb[38].mxu1 %vm3842_vm7, %v3840_v51 }
 0x697   : > { %3926 = vmatprep.mubr.f32.mxu1 %v16144_v37 }
 0x6a5   : > { %v3288_v2 = vpop.f32.mrb[20].mxu0  ;;  %v3358_v27 = vpop.f32.mrb[30].mxu1 }
 0x6a6   : > { %v3782_v7 = vcombine.low %v3218_v56, %v3358_v27  ;;  %v9674_v31 = vpop.f32.mrb[21].mxu0  ;;  %v9709_v48 = vpop.f32.mrb[31].mxu1 }
 0x6a8   : > { %v3789_v11 = vrot.slane %v3782_v7, %v13570_v34 }
 0x6e5   : > { %v3428_v39 = vpop.f32.mrb[22].mxu0  ;;  %v3498_v46 = vpop.f32.mrb[32].mxu1 }
 0x6e6   : > { %v3790_v12 = vcombine.low %v3288_v2, %v3428_v39  ;;  %v9744_v55 = vpop.f32.mrb[23].mxu0  ;;  %v9779_v58 = vpop.f32.mrb[33].mxu1  ;;  %v3841_v2 = vld [vmem:[%s15698_s9 + $0x8] sm:$0xff] }
 0x6e7   : > { %7405 = vmatmul.mubr.msk.f32.gmra.mrb[40].mxu1 %vm3842_vm7, %v3841_v2 }
 0x6e8   : > { %v3797_v30 = vrot.slane %v3790_v12, %v13570_v34  ;;  %4011 = vmatprep.mubr.f32.mxu1 %v16144_v37 }
 0x6ea   : > { %v3814_v59 = vcombine.low %v3789_v11, %v3797_v30 }
 0x6ec   : > { %v3821_v2 = vrot.slane %v3814_v59, %v13576_v49 }
 0x725   : > { %v3568_v48 = vpop.f32.mrb[24].mxu0  ;;  %v3638_v55 = vpop.f32.mrb[34].mxu1 }
 0x726   : > { %v3798_v39 = vcombine.low %v3498_v46, %v3638_v55  ;;  %v9814_v56 = vpop.f32.mrb[25].mxu0  ;;  %v9849_v7 = vpop.f32.mrb[35].mxu1 }
 0x728   : > { %v3805_v11 = vrot.slane %v3798_v39, %v13570_v34  ;;  %v16390_v39 = vmov 0.0|0.0  }
 0x765   : > { %v3708_v30 = vpop.f32.mrb[26].mxu0  ;;  %v3778_v27 = vpop.f32.mrb[36].mxu1 }
 0x766   : > { %v3806_v31 = vcombine.low %v3568_v48, %v3708_v30  ;;  %v9884_v12 = vpop.f32.mrb[27].mxu0  ;;  %v9919_v58 = vpop.f32.mrb[37].mxu1  ;;  %v3838_v54 = vrot.slane %v3778_v27, %v13576_v49  ;;  %v3933_v48 = vld [vmem:[%s15699_s10] sm:$0xff] }
 0x767   : > { %v16391_v58 = vld [vmem:[#allocation31_spill] sm:$0xff] }
 0x768   : > { %v3813_v51 = vrot.slane %v3806_v31, %v13570_v34  ;;  %v3839_v55 = vcombine.high %v3838_v54, %v16144_v37 }
 0x76a   : > { %v3822_v17 = vcombine.low %v3805_v11, %v3813_v51  ;;  %v16392_v11 = vmax.f32 %v16391_v58, 0.0 }
 0x76c   : > { %v3829_v50 = vrot.slane %v3822_v17, %v13576_v49 }
 0x76e   : > { %v3830_v21 = vcombine.low %v3821_v2, %v3829_v50  ;;  %v3831_v46 = vcombine.high %v3821_v2, %v3829_v50  ;;  %v16393_v2 = vld [vmem:[#allocation30_spill] sm:$0xff] }
 0x770   : > { %v12068_v56 = vpack.c.bf16 %v3839_v55, %v3831_v46  ;;  %v12071_v7 = vpack.c.bf16 %v3838_v54, %v3830_v21  ;;  %v3934_v21 = vld [vmem:[%s15699_s10 + $0x8] sm:$0xff]  ;;  %v3922_v54 = vpop.f32.mrb[38].mxu1  ;;  %v16394_v46 = vmax.f32 %v16393_v2, 0.0 }
 0x771   : > { %v3924_v59 = vpop.f32.mrb[39].mxu1 }
 0x772   : > { %12070 = vmatprep.subr.msk.bf16.mxu1 %vm14658_vm6, %v12068_v56 }
 0x773   : > { %12073 = vmatpush1.bf16.msk.msra.mxu1 %vm14658_vm6, %v12071_v7 }
 0x774   : > { %12130 = vmatprep.subr.bf16.mxu1 %v16390_v39 }
 0x776   : > { %7408 = vmatmul.mubr.msk.f32.vlgmr.msra.gmra.mrb[42].mxu1 %vm3842_vm7, %v3933_v48 }
 0x777   : > { %4017 = vmatprep.mubr.f32.mxu1 %v16144_v37 }
 0x77a   : > { %7409 = vmatmul.mubr.msk.f32.gmra.mrb[44].mxu1 %vm3842_vm7, %v3934_v21 }
 0x77b   : > { %10022 = vmatprep.mubr.msk.f32.mxu1 %vm13211_vm4, %v16144_v37 }
 0x77c   : > { %12132 = vmatpush3.bf16.xpose.msra.mxu1 %v16317_v8 }
 0x77d   : > { %12133 = vmatprep.subr.bf16.mxu1 %v16390_v39 }
 0x784   : > { %12135 = vmatpush3.bf16.xpose.msra.mxu1 %v16319_v42  ;;  %v16467_v42 = vld [vmem:[#allocation132_spill] sm:$0xff] }
 0x785   : > { %12136 = vmatprep.subr.bf16.mxu1 %v16390_v39 }
 0x78c   : > { %12138 = vmatpush3.bf16.xpose.msra.mxu1 %v16321_v10 }
 0x78d   : > { %12139 = vmatprep.subr.bf16.mxu1 %v16390_v39 }
 0x794   : > { %12141 = vmatpush3.bf16.xpose.msra.mxu1 %v16323_v63 }
 0x795   : > { %12142 = vmatprep.subr.bf16.mxu1 %v16390_v39 }
 0x79c   : > { %12144 = vmatpush3.bf16.xpose.msra.mxu1 %v16325_v60 }
 0x79d   : > { %12145 = vmatprep.subr.bf16.mxu1 %v16390_v39 }
 0x7a4   : > { %12147 = vmatpush3.bf16.xpose.msra.mxu1 %v16327_v0  ;;  %v16397_v0 = vld [vmem:[#allocation33_spill] sm:$0xff] }
 0x7a5   : > { %12148 = vmatprep.subr.bf16.mxu1 %v16390_v39  ;;  %v16398_v60 = vmax.f32 %v16397_v0, 0.0  ;;  %v13070_v0 = vld [vmem:[%s15696_s7 + $0x8] sm:$0x1] }
 0x7ac   : > { %12150 = vmatpush3.bf16.xpose.msra.mxu1 %v16329_v14 }
 0x7ad   : > { %12151 = vmatprep.subr.bf16.mxu1 %v16390_v39 }
 0x7b4   : > { %12153 = vmatpush3.bf16.xpose.msra.mxu1 %v16331_v33  ;;  %v16396_v33 = vmax.f32 %v16395_v36, 0.0  ;;  %v13069_v36 = vld [vmem:[%s15696_s7] sm:$0xff] }
 0x7b5   : > { %12178 = vmatprep.subr.bf16.mxu1 %v16390_v39 }
 0x7ba   : > { %v3928_v17 = vpop.f32.mrb[40].mxu1 }
 0x7bb   : > { %v3930_v50 = vpop.f32.mrb[41].mxu1 }
 0x849   : > { %v4013_v30 = vpop.f32.mrb[42].mxu1 }
 0x84a   : > { %v4024_v27 = vsub.f32 %v3922_v54, %v4013_v30  ;;  %v4015_v31 = vpop.f32.mrb[43].mxu1 }
 0x84b   : > { %v4025_v12 = vsub.f32 %v3924_v59, %v4015_v31 }
 0x84c   : > { %v4028_v51 = vadd.f32 %v4024_v27, %v16392_v11 }
 0x84d   : > { %v4029_v55 = vadd.f32 %v4025_v12, %v16394_v46  ;;  %v4019_v56 = vpop.f32.mrb[44].mxu1 }
 0x84e   : > { %v4026_v7 = vsub.f32 %v3928_v17, %v4019_v56  ;;  %v4021_v48 = vpop.f32.mrb[45].mxu1 }
 0x84f   : > { %v4027_v21 = vsub.f32 %v3930_v50, %v4021_v48 }
 0x850   : > { %v4030_v14 = vadd.f32 %v4026_v7, %v16396_v33  ;;  %4036 = vst [vmem:[#allocation2 + $0x10] sm:$0xf0] %v4026_v7  ;;  %v13071_v33 = vld [vmem:[%s15697_s8] sm:$0xff] }
 0x851   : > { %v4031_v63 = vadd.f32 %v4027_v21, %v16398_v60  ;;  %4037 = vst [vmem:[#allocation2 + $0x18] sm:$0xf0] %v4027_v21 }
 0x852   : > { %4034 = vst [vmem:[#allocation2 + $0x10] sm:$0xf] %v4030_v14  ;;  %v13072_v14 = vld [vmem:[%s15697_s8 + $0x8] sm:$0x1] }
 0x853   : > { %4035 = vst [vmem:[#allocation2 + $0x18] sm:$0xf] %v4031_v63 }
 0x859   : > { %v4040_v54 = vld [vmem:[#allocation2 + $0x10] sm:$0xff] }
 0x85a   : > { %v4041_v59 = vld [vmem:[#allocation2 + $0x18] sm:$0xff]  ;;  %v12076_v27 = vpack.c.bf16 %v4040_v54, %v4028_v51 }
 0x85b   : > { %v12074_v30 = vpack.c.bf16 %v4041_v59, %v4029_v55 }
 0x85d   : > { %12075 = vmatprep.subr.bf16.mxu0 %v12074_v30 }
 0x85e   : > { %12077 = vmatpush1.bf16.msra.mxu0 %v12076_v27 }
 0x85f   : > { %12079 = vmatprep.subr.bf16.mxu0 %v12074_v30 }
 0x861   : > { %7410 = vmatmul.mubr.msk.f32.vlgmr.msra.gmra.mrb[28].mxu0 %vm4042_vm8, %v13069_v36 }
 0x862   : > { %12081 = vmatpush1.bf16.msra.mxu0 %v12076_v27  ;;  %4117 = vmatprep.mubr.f32.mxu0 %v16144_v37 }
 0x863   : > { %12082 = vmatprep.subr.bf16.mxu0 %v16390_v39 }
 0x865   : > { %7411 = vmatmul.mubr.msk.f32.gmra.mrb[30].mxu0 %vm4042_vm8, %v13070_v0 }
 0x866   : > { %4192 = vmatprep.mubr.f32.mxu0 %v16144_v37 }
 0x869   : > { %7412 = vmatmul.mubr.msk.f32.vlgmr.msra.gmra.mrb[32].mxu0 %vm4042_vm8, %v13071_v33 }
 0x86a   : > { %4198 = vmatprep.mubr.f32.mxu0 %v16144_v37 }
 0x86b   : > { %12084 = vmatpush3.bf16.xpose.msra.mxu0 %v16298_v26 }
 0x86c   : > { %12085 = vmatprep.subr.bf16.mxu0 %v16390_v39 }
 0x86d   : > { %7413 = vmatmul.mubr.msk.f32.gmra.mrb[34].mxu0 %vm4042_vm8, %v13072_v14 }
 0x86e   : > { %9952 = vmatprep.mubr.msk.f32.mxu0 %vm13211_vm4, %v16144_v37 }
 0x873   : > { %12087 = vmatpush3.bf16.xpose.msra.mxu0 %v16300_v62  ;;  %v16482_v62 = vld [vmem:[#allocation148_spill] sm:$0xff] }
 0x874   : > { %12088 = vmatprep.subr.bf16.mxu0 %v16390_v39 }
 0x87b   : > { %12090 = vmatpush3.bf16.xpose.msra.mxu0 %v16302_v43  ;;  %v16481_v43 = vld [vmem:[#allocation147_spill] sm:$0xff] }
 0x87c   : > { %12091 = vmatprep.subr.bf16.mxu0 %v16390_v39 }
 0x883   : > { %12093 = vmatpush3.bf16.xpose.msra.mxu0 %v16305_v40  ;;  %v16480_v40 = vld [vmem:[#allocation146_spill] sm:$0xff] }
 0x884   : > { %12094 = vmatprep.subr.bf16.mxu0 %v16390_v39 }
 0x88b   : > { %12096 = vmatpush3.bf16.xpose.msra.mxu0 %v16307_v44  ;;  %v16477_v44 = vld [vmem:[#allocation143_spill] sm:$0xff] }
 0x88c   : > { %12097 = vmatprep.subr.bf16.mxu0 %v16390_v39 }
 0x893   : > { %12099 = vmatpush3.bf16.xpose.msra.mxu0 %v16309_v52  ;;  %v16476_v52 = vld [vmem:[#allocation142_spill] sm:$0xff] }
 0x894   : > { %12100 = vmatprep.subr.bf16.mxu0 %v16390_v39 }
 0x89b   : > { %12102 = vmatpush3.bf16.xpose.msra.mxu0 %v16311_v57  ;;  %v16475_v57 = vld [vmem:[#allocation141_spill] sm:$0xff] }
 0x89c   : > { %12103 = vmatprep.subr.bf16.mxu0 %v16390_v39 }
 0x8a3   : > { %12105 = vmatpush3.bf16.xpose.msra.mxu0 %v16313_v20  ;;  %v16474_v20 = vld [vmem:[#allocation140_spill] sm:$0xff] }
 0x8a4   : > { %12106 = vmatprep.subr.bf16.mxu0 %v16390_v39 }
 0x934   : > { %v4113_v63 = vpop.f32.mrb[28].mxu0 }
 0x935   : > { %v4205_v60 = vcombine.high %v4113_v63, %v16144_v37  ;;  %v4212_v17 = vrot.slane %v4113_v63, %v13570_v34  ;;  %v4115_v50 = vpop.f32.mrb[29].mxu0 }
 0x936   : > { %v4220_v31 = vcombine.high %v4115_v50, %v16144_v37  ;;  %v4227_v12 = vrot.slane %v4115_v50, %v13570_v34  ;;  %v16404_v50 = vld [vmem:[#allocation73_spill] sm:$0xff] }
 0x937   : > { %v14775_v58 = vrot.slane %v4205_v60, %v13570_v34 }
 0x938   : > { %v14778_v11 = vrot.slane %v4220_v31, %v13570_v34  ;;  %v4235_v51 = vcombine.low %v4212_v17, %v4227_v12  ;;  %v4236_v2 = vcombine.high %v4212_v17, %v4227_v12  ;;  %v14802_v48 = vpop.f32.mrb[30].mxu0  ;;  %v16403_v31 = vld [vmem:[#allocation72_spill] sm:$0xff]  ;;  %v16405_v17 = vld [vmem:[#allocation74_spill] sm:$0xff] }
 0x939   : > { %v14806_v21 = vpop.f32.mrb[31].mxu0 }
 0x93a   : > { %v14781_v46 = vrot.slane %v4235_v51, %v13576_v49  ;;  %v14784_v55 = vrot.slane %v4236_v2, %v13576_v49  ;;  %v4251_v56 = vcombine.low %v14775_v58, %v14778_v11  ;;  %v4252_v7 = vcombine.high %v14775_v58, %v14778_v11  ;;  %v16410_v58 = vld [vmem:[#allocation79_spill] sm:$0xff]  ;;  %v16411_v11 = vld [vmem:[#allocation80_spill] sm:$0xff] }
 0x93c   : > { %9953 = vmatmul.mubr.f32.vlgmr.msra.gmra.mrb[36].mxu0 %v14781_v46  ;;  %10023 = vmatmul.mubr.f32.vlgmr.msra.gmra.mrb[46].mxu1 %v14784_v55  ;;  %v4194_v59 = vpop.f32.mrb[32].mxu0  ;;  %v14858_v12 = vcombine.high %v14781_v46, %v16144_v37  ;;  %v14861_v51 = vrot.slane %v4251_v56, %v13576_v49  ;;  %v14909_v60 = vcombine.high %v14784_v55, %v16144_v37 }
 0x93d   : > { %12108 = vmatpush3.bf16.xpose.msra.mxu0 %v16316_v24  ;;  %12180 = vmatpush3.bf16.xpose.msra.mxu1 %v16335_v38  ;;  %v4279_v30 = vcombine.high %v4194_v59, %v16144_v37  ;;  %v14816_v27 = vrot.slane %v4194_v59, %v13570_v34  ;;  %v4196_v36 = vpop.f32.mrb[33].mxu0  ;;  %v16402_v59 = vld [vmem:[#allocation71_spill] sm:$0xff]  ;;  %v14915_v54 = vrot.slane %v4252_v7, %v13576_v49  ;;  %v16412_v7 = vld [vmem:[#allocation81_spill] sm:$0xff]  ;;  %v16455_v38 = vld [vmem:[#allocation122_spill] sm:$0xff] }
 0x93e   : > { %12109 = vmatprep.subr.bf16.mxu0 %v16390_v39  ;;  %12181 = vmatprep.subr.bf16.mxu1 %v16390_v39  ;;  %v4294_v0 = vcombine.high %v4196_v36, %v16144_v37  ;;  %v14820_v33 = vrot.slane %v4196_v36, %v13570_v34  ;;  %v16400_v36 = vld [vmem:[#allocation69_spill] sm:$0xff]  ;;  %16406 = vst [vmem:[#allocation78_spill] sm:$0xff] %v14909_v60 }
 0x93f   : > { %9987 = vmatprep.mubr.msk.f32.mxu0 %vm13211_vm4, %v16144_v37  ;;  %10092 = vmatprep.mubr.msk.f32.mxu1 %vm13211_vm4, %v16144_v37  ;;  %v14823_v14 = vrot.slane %v4279_v30, %v13570_v34  ;;  %v16399_v30 = vld [vmem:[#allocation68_spill] sm:$0xff]  ;;  %16407 = vst [vmem:[#allocation138_spill] sm:$0xff] %v14915_v54 }
 0x940   : > { %v14826_v63 = vrot.slane %v4294_v0, %v13570_v34  ;;  %v14875_v2 = vpop.f32.mrb[34].mxu0  ;;  %v16401_v0 = vld [vmem:[#allocation70_spill] sm:$0xff] }
 0x941   : > { %v14879_v56 = vpop.f32.mrb[35].mxu0 }
 0x942   : > { %v16483_v26 = vcombine.low %v14823_v14, %v14826_v63 }
 0x945   : > { %12111 = vmatpush3.bf16.xpose.msra.mxu0 %v16318_v16  ;;  %12183 = vmatpush3.bf16.xpose.msra.mxu1 %v16337_v53  ;;  %v16453_v53 = vld [vmem:[#allocation120_spill] sm:$0xff] }
 0x946   : > { %12112 = vmatprep.subr.bf16.mxu0 %v16390_v39  ;;  %12184 = vmatprep.subr.bf16.mxu1 %v16390_v39 }
 0x94d   : > { %12114 = vmatpush3.bf16.xpose.msra.mxu0 %v16320_v41  ;;  %12186 = vmatpush3.bf16.xpose.msra.mxu1 %v16339_v47  ;;  %v16466_v41 = vld [vmem:[#allocation131_spill] sm:$0xff] }
 0x94e   : > { %12115 = vmatprep.subr.bf16.mxu0 %v16390_v39  ;;  %12187 = vmatprep.subr.bf16.mxu1 %v16390_v39 }
 0x955   : > { %12117 = vmatpush3.bf16.xpose.msra.mxu0 %v16322_v35  ;;  %12189 = vmatpush3.bf16.xpose.msra.mxu1 %v16341_v22 }
 0x956   : > { %12118 = vmatprep.subr.bf16.mxu0 %v16390_v39  ;;  %12190 = vmatprep.subr.bf16.mxu1 %v16390_v39 }
 0x95d   : > { %12120 = vmatpush3.bf16.xpose.msra.mxu0 %v16324_v18  ;;  %12192 = vmatpush3.bf16.xpose.msra.mxu1 %v16343_v1  ;;  %v16451_v1 = vld [vmem:[#allocation118_spill] sm:$0xff]  ;;  %v16463_v18 = vcombine.high %v14816_v27, %v14820_v33 }
 0x95e   : > { %12121 = vmatprep.subr.bf16.mxu0 %v16390_v39  ;;  %12193 = vmatprep.subr.bf16.mxu1 %v16390_v39 }
 0x95f   : > { %v15065_v35 = vrot.slane %v16463_v18, %v13576_v49  ;;  %v16468_v18 = vld [vmem:[#allocation134_spill] sm:$0xff] }
 0x961   : > { %16464 = vst [vmem:[#allocation115_spill] sm:$0xff] %v15065_v35  ;;  %v15071_v10 = vcombine.high %v15065_v35, %v16144_v37 }
 0x963   : > { %16465 = vst [vmem:[#allocation130_spill] sm:$0xff] %v15071_v10 }
 0x965   : > { %12123 = vmatpush3.bf16.xpose.msra.mxu0 %v16326_v3  ;;  %12195 = vmatpush3.bf16.xpose.msra.mxu1 %v16345_v25  ;;  %v16449_v25 = vld [vmem:[#allocation116_spill] sm:$0xff]  ;;  %v16462_v3 = vld [vmem:[#allocation129_spill] sm:$0xff] }
 0x966   : > { %12124 = vmatprep.subr.bf16.mxu0 %v16390_v39  ;;  %12196 = vmatprep.subr.bf16.mxu1 %v16390_v39 }
 0x96d   : > { %12126 = vmatpush3.bf16.xpose.msra.mxu0 %v16328_v19  ;;  %12198 = vmatpush3.bf16.xpose.msra.mxu1 %v16347_v15  ;;  %v16461_v19 = vld [vmem:[#allocation128_spill] sm:$0xff] }
 0x96e   : > { %12127 = vmatprep.subr.bf16.mxu0 %v16390_v39  ;;  %12199 = vmatprep.subr.bf16.mxu1 %v16390_v39 }
 0x975   : > { %12129 = vmatpush3.bf16.xpose.msra.mxu0 %v16330_v9  ;;  %12201 = vmatpush3.bf16.xpose.msra.mxu1 %v16349_v4  ;;  %v16437_v4 = vld [vmem:[#allocation105_spill] sm:$0xff]  ;;  %v16460_v9 = vld [vmem:[#allocation127_spill] sm:$0xff] }
 0x976   : > { %12154 = vmatprep.subr.bf16.mxu0 %v16390_v39  ;;  %12226 = vmatprep.subr.bf16.mxu1 %v16390_v39 }
 0x97c   : > { %9988 = vmatmul.mubr.f32.vlgmr.msra.gmra.mrb[38].mxu0 %v14858_v12  ;;  %10093 = vmatmul.mubr.f32.vlgmr.msra.gmra.mrb[48].mxu1 %v14861_v51 }
 0x97d   : > { %12156 = vmatpush3.bf16.xpose.msra.mxu0 %v16334_v28  ;;  %12228 = vmatpush3.bf16.xpose.msra.mxu1 %v16353_v29  ;;  %v16434_v29 = vld [vmem:[#allocation102_spill] sm:$0xff]  ;;  %v16456_v28 = vld [vmem:[#allocation123_spill] sm:$0xff] }
 0x97e   : > { %12157 = vmatprep.subr.bf16.mxu0 %v16390_v39  ;;  %12229 = vmatprep.subr.bf16.mxu1 %v16390_v39 }
 0x97f   : > { %10057 = vmatprep.mubr.msk.f32.mxu0 %vm13211_vm4, %v16144_v37  ;;  %10162 = vmatprep.mubr.msk.f32.mxu1 %vm13211_vm4, %v16144_v37 }
 0x985   : > { %12159 = vmatpush3.bf16.xpose.msra.mxu0 %v16336_v61  ;;  %12231 = vmatpush3.bf16.xpose.msra.mxu1 %v16355_v32  ;;  %v16454_v61 = vld [vmem:[#allocation121_spill] sm:$0xff] }
 0x986   : > { %12160 = vmatprep.subr.bf16.mxu0 %v16390_v39  ;;  %12232 = vmatprep.subr.bf16.mxu1 %v16390_v39 }
 0x98d   : > { %12162 = vmatpush3.bf16.xpose.msra.mxu0 %v16338_v45  ;;  %12234 = vmatpush3.bf16.xpose.msra.mxu1 %v16357_v23  ;;  %v16419_v23 = vld [vmem:[#allocation88_spill] sm:$0xff] }
 0x98e   : > { %12163 = vmatprep.subr.bf16.mxu0 %v16390_v39  ;;  %12235 = vmatprep.subr.bf16.mxu1 %v16390_v39 }
 0x995   : > { %12165 = vmatpush3.bf16.xpose.msra.mxu0 %v16340_v5  ;;  %12237 = vmatpush3.bf16.xpose.msra.mxu1 %v16359_v6  ;;  %v16417_v6 = vld [vmem:[#allocation86_spill] sm:$0xff] }
 0x996   : > { %12166 = vmatprep.subr.bf16.mxu0 %v16390_v39  ;;  %12238 = vmatprep.subr.bf16.mxu1 %v16390_v39 }
 0x99d   : > { %12168 = vmatpush3.bf16.xpose.msra.mxu0 %v16342_v13  ;;  %12240 = vmatpush3.bf16.xpose.msra.mxu1 %v16399_v30  ;;  %v16415_v30 = vld [vmem:[#allocation84_spill] sm:$0xff]  ;;  %v16452_v13 = vld [vmem:[#allocation119_spill] sm:$0xff] }
 0x99e   : > { %12169 = vmatprep.subr.bf16.mxu0 %v16390_v39  ;;  %12241 = vmatprep.subr.bf16.mxu1 %v16390_v39 }
 0x9a5   : > { %12171 = vmatpush3.bf16.xpose.msra.mxu0 %v16400_v36  ;;  %12243 = vmatpush3.bf16.xpose.msra.mxu1 %v16401_v0  ;;  %v16414_v0 = vld [vmem:[#allocation83_spill] sm:$0xff]  ;;  %v16450_v36 = vld [vmem:[#allocation117_spill] sm:$0xff] }
 0x9a6   : > { %12172 = vmatprep.subr.bf16.mxu0 %v16390_v39  ;;  %12244 = vmatprep.subr.bf16.mxu1 %v16390_v39 }
 0x9ad   : > { %12174 = vmatpush3.bf16.xpose.msra.mxu0 %v16402_v59  ;;  %12246 = vmatpush3.bf16.xpose.msra.mxu1 %v16403_v31  ;;  %v16408_v31 = vld [vmem:[#allocation75_spill] sm:$0xff] }
 0x9ae   : > { %12175 = vmatprep.subr.bf16.mxu0 %v16390_v39  ;;  %12247 = vmatprep.subr.bf16.mxu1 %v16390_v39 }
 0x9b5   : > { %12177 = vmatpush3.bf16.xpose.msra.mxu0 %v16404_v50  ;;  %12249 = vmatpush3.bf16.xpose.msra.mxu1 %v16405_v17  ;;  %v16409_v17 = vld [vmem:[#allocation76_spill] sm:$0xff]  ;;  %v16442_v50 = vld [vmem:[#allocation110_spill] sm:$0xff] }
 0x9b6   : > { %12202 = vmatprep.subr.bf16.mxu0 %v16390_v39  ;;  %12274 = vmatprep.subr.bf16.mxu1 %v16390_v39 }
 0x9bc   : > { %10058 = vmatmul.mubr.f32.vlgmr.msra.gmra.mrb[40].mxu0 %v14909_v60  ;;  %10163 = vmatmul.mubr.f32.vlgmr.msra.gmra.mrb[50].mxu1 %v14915_v54  ;;  %v16506_v60 = vld [vmem:[#allocation169_spill] sm:$0xff] }
 0x9bd   : > { %12204 = vmatpush3.bf16.xpose.msra.mxu0 %v16408_v31  ;;  %12276 = vmatpush3.bf16.xpose.msra.mxu1 %v16409_v17  ;;  %v16413_v17 = vld [vmem:[#allocation82_spill] sm:$0xff]  ;;  %v16436_v31 = vld [vmem:[#allocation104_spill] sm:$0xff] }
 0x9be   : > { %12205 = vmatprep.subr.bf16.mxu0 %v16390_v39  ;;  %12277 = vmatprep.subr.bf16.mxu1 %v16390_v39 }
 0x9bf   : > { %10127 = vmatprep.mubr.msk.f32.mxu0 %vm13211_vm4, %v16144_v37  ;;  %10232 = vmatprep.mubr.msk.f32.mxu1 %vm13211_vm4, %v16144_v37 }
 0x9c5   : > { %12207 = vmatpush3.bf16.xpose.msra.mxu0 %v16410_v58  ;;  %12279 = vmatpush3.bf16.xpose.msra.mxu1 %v16411_v11  ;;  %v16416_v11 = vld [vmem:[#allocation85_spill] sm:$0xff] }
 0x9c6   : > { %12208 = vmatprep.subr.bf16.mxu0 %v16390_v39  ;;  %12280 = vmatprep.subr.bf16.mxu1 %v16390_v39  ;;  %v16433_v58 = vld [vmem:[#allocation101_spill] sm:$0xff] }
 0x9cd   : > { %12210 = vmatpush3.bf16.xpose.msra.mxu0 %v16412_v7  ;;  %12282 = vmatpush3.bf16.xpose.msra.mxu1 %v16413_v17  ;;  %v16418_v17 = vld [vmem:[#allocation87_spill] sm:$0xff] }
 0x9ce   : > { %12211 = vmatprep.subr.bf16.mxu0 %v16390_v39  ;;  %12283 = vmatprep.subr.bf16.mxu1 %v16390_v39 }
 0x9d5   : > { %12213 = vmatpush3.bf16.xpose.msra.mxu0 %v16414_v0  ;;  %12285 = vmatpush3.bf16.xpose.msra.mxu1 %v16415_v30  ;;  %v16420_v30 = vld [vmem:[#allocation89_spill] sm:$0xff]  ;;  %v16421_v0 = vld [vmem:[#allocation90_spill] sm:$0xff] }
 0x9d6   : > { %12214 = vmatprep.subr.bf16.mxu0 %v16390_v39  ;;  %12286 = vmatprep.subr.bf16.mxu1 %v16390_v39 }
 0x9dd   : > { %12216 = vmatpush3.bf16.xpose.msra.mxu0 %v16416_v11  ;;  %12288 = vmatpush3.bf16.xpose.msra.mxu1 %v16417_v6  ;;  %v16422_v6 = vld [vmem:[#allocation91_spill] sm:$0xff]  ;;  %v16423_v11 = vld [vmem:[#allocation92_spill] sm:$0xff] }
 0x9de   : > { %12217 = vmatprep.subr.bf16.mxu0 %v16390_v39  ;;  %12289 = vmatprep.subr.bf16.mxu1 %v16390_v39 }
 0x9e5   : > { %12219 = vmatpush3.bf16.xpose.msra.mxu0 %v16418_v17  ;;  %12291 = vmatpush3.bf16.xpose.msra.mxu1 %v16419_v23  ;;  %v16424_v23 = vcombine.low %v14802_v48, %v14806_v21  ;;  %v16430_v48 = vld [vmem:[#allocation98_spill] sm:$0xff]  ;;  %v16431_v21 = vld [vmem:[#allocation99_spill] sm:$0xff] }
 0x9e6   : > { %12220 = vmatprep.subr.bf16.mxu0 %v16390_v39  ;;  %12292 = vmatprep.subr.bf16.mxu1 %v16390_v39 }
 0x9e7   : > { %v14959_v17 = vrot.slane %v16424_v23, %v13576_v49  ;;  %v16429_v23 = vld [vmem:[#allocation97_spill] sm:$0xff] }
 0x9e9   : > { %16425 = vst [vmem:[#allocation96_spill] sm:$0xff] %v14959_v17 }
 0x9ed   : > { %12222 = vmatpush3.bf16.xpose.msra.mxu0 %v16420_v30  ;;  %12294 = vmatpush3.bf16.xpose.msra.mxu1 %v16421_v0  ;;  %v14963_v0 = vcombine.high %v14861_v51, %v16144_v37 }
 0x9ee   : > { %12223 = vmatprep.subr.bf16.mxu0 %v16390_v39  ;;  %12295 = vmatprep.subr.bf16.mxu1 %v16390_v39 }
 0x9ef   : > { %16426 = vst [vmem:[#allocation95_spill] sm:$0xff] %v14963_v0 }
 0x9f5   : > { %12225 = vmatpush3.bf16.xpose.msra.mxu0 %v16422_v6  ;;  %12297 = vmatpush3.bf16.xpose.msra.mxu1 %v16423_v11  ;;  %v16427_v6 = vld [vmem:[#allocation93_spill] sm:$0xff]  ;;  %v16428_v11 = vld [vmem:[#allocation94_spill] sm:$0xff] }
 0x9f6   : > { %12250 = vmatprep.subr.bf16.mxu0 %v16390_v39  ;;  %12322 = vmatprep.subr.bf16.mxu1 %v16390_v39 }
 0x9fc   : > { %10128 = vmatmul.mubr.f32.vlgmr.msra.gmra.mrb[42].mxu0 %v14963_v0  ;;  %10233 = vmatmul.mubr.f32.vlgmr.msra.gmra.mrb[52].mxu1 %v14959_v17  ;;  %v15117_v17 = vrot.slane %v16483_v26, %v13576_v49  ;;  %v16488_v26 = vld [vmem:[#allocation153_spill] sm:$0xff] }
 0x9fd   : > { %12252 = vmatpush3.bf16.xpose.msra.mxu0 %v16427_v6  ;;  %12324 = vmatpush3.bf16.xpose.msra.mxu1 %v16428_v11  ;;  %v16432_v6 = vld [vmem:[#allocation100_spill] sm:$0xff] }
 0x9fe   : > { %12253 = vmatprep.subr.bf16.mxu0 %v16390_v39  ;;  %12325 = vmatprep.subr.bf16.mxu1 %v16390_v39  ;;  %16484 = vst [vmem:[#allocation149_spill] sm:$0xff] %v15117_v17  ;;  %v15123_v0 = vcombine.high %v15117_v17, %v16144_v37 }
 0x9ff   : > { %10197 = vmatprep.mubr.msk.f32.mxu0 %vm13211_vm4, %v16144_v37  ;;  %10302 = vmatprep.mubr.msk.f32.mxu1 %vm13211_vm4, %v16144_v37 }
 0xa00   : > { %16485 = vst [vmem:[#allocation152_spill] sm:$0xff] %v15123_v0 }
 0xa05   : > { %12255 = vmatpush3.bf16.xpose.msra.mxu0 %v16429_v23  ;;  %12327 = vmatpush3.bf16.xpose.msra.mxu1 %v16430_v48 }
 0xa06   : > { %12256 = vmatprep.subr.bf16.mxu0 %v16390_v39  ;;  %12328 = vmatprep.subr.bf16.mxu1 %v16390_v39 }
 0xa0d   : > { %12258 = vmatpush3.bf16.xpose.msra.mxu0 %v16431_v21  ;;  %12330 = vmatpush3.bf16.xpose.msra.mxu1 %v16432_v6  ;;  %v16435_v21 = vld [vmem:[#allocation103_spill] sm:$0xff] }
 0xa0e   : > { %12259 = vmatprep.subr.bf16.mxu0 %v16390_v39  ;;  %12331 = vmatprep.subr.bf16.mxu1 %v16390_v39 }
 0xa0f   : > { %v14983_v30 = vpop.f32.mrb[36].mxu0  ;;  %v14985_v7 = vpop.f32.mrb[46].mxu1 }
 0xa10   : > { %v9954_v32 = vpop.f32.mrb[37].mxu0  ;;  %v10024_v23 = vpop.f32.mrb[47].mxu1 }
 0xa11   : > { %v16438_v32 = vld [vmem:[#allocation106_spill] sm:$0xff]  ;;  %v16439_v23 = vld [vmem:[#allocation107_spill] sm:$0xff] }
 0xa15   : > { %12261 = vmatpush3.bf16.xpose.msra.mxu0 %v16433_v58  ;;  %12333 = vmatpush3.bf16.xpose.msra.mxu1 %v16434_v29  ;;  %v16440_v58 = vld [vmem:[#allocation108_spill] sm:$0xff] }
 0xa16   : > { %12262 = vmatprep.subr.bf16.mxu0 %v16390_v39  ;;  %12334 = vmatprep.subr.bf16.mxu1 %v16390_v39 }
 0xa1d   : > { %12264 = vmatpush3.bf16.xpose.msra.mxu0 %v16435_v21  ;;  %12336 = vmatpush3.bf16.xpose.msra.mxu1 %v16436_v31  ;;  %v16441_v21 = vld [vmem:[#allocation109_spill] sm:$0xff] }
 0xa1e   : > { %12265 = vmatprep.subr.bf16.mxu0 %v16390_v39  ;;  %12337 = vmatprep.subr.bf16.mxu1 %v16390_v39 }
 0xa25   : > { %12267 = vmatpush3.bf16.xpose.msra.mxu0 %v16437_v4  ;;  %12339 = vmatpush3.bf16.xpose.msra.mxu1 %v16438_v32  ;;  %v16443_v4 = vcombine.low %v14816_v27, %v14820_v33  ;;  %v16469_v27 = vld [vmem:[#allocation135_spill] sm:$0xff]  ;;  %v16470_v33 = vld [vmem:[#allocation136_spill] sm:$0xff] }
 0xa26   : > { %12268 = vmatprep.subr.bf16.mxu0 %v16390_v39  ;;  %12340 = vmatprep.subr.bf16.mxu1 %v16390_v39 }
 0xa27   : > { %v15009_v15 = vrot.slane %v16443_v4, %v13576_v49  ;;  %v16448_v4 = vld [vmem:[#allocation113_spill] sm:$0xff] }
 0xa29   : > { %16444 = vst [vmem:[#allocation157_spill] sm:$0xff] %v15009_v15  ;;  %v15019_v59 = vcombine.high %v15009_v15, %v16144_v37 }
 0xa2b   : > { %16446 = vst [vmem:[#allocation111_spill] sm:$0xff] %v15019_v59 }
 0xa2d   : > { %12270 = vmatpush3.bf16.xpose.msra.mxu0 %v16439_v23  ;;  %12342 = vmatpush3.bf16.xpose.msra.mxu1 %v16440_v58  ;;  %v15015_v23 = vcombine.high %v14915_v54, %v16144_v37 }
 0xa2e   : > { %12271 = vmatprep.subr.bf16.mxu0 %v16390_v39  ;;  %12343 = vmatprep.subr.bf16.mxu1 %v16390_v39 }
 0xa2f   : > { %16445 = vst [vmem:[#allocation114_spill] sm:$0xff] %v15015_v23 }
 0xa35   : > { %12273 = vmatpush3.bf16.xpose.msra.mxu0 %v16441_v21  ;;  %12345 = vmatpush3.bf16.xpose.msra.mxu1 %v16442_v50  ;;  %v16447_v21 = vld [vmem:[#allocation112_spill] sm:$0xff] }
 0xa36   : > { %12298 = vmatprep.subr.bf16.mxu0 %v16390_v39  ;;  %12370 = vmatprep.subr.bf16.mxu1 %v16390_v39 }
 0xa3c   : > { %10198 = vmatmul.mubr.f32.vlgmr.msra.gmra.mrb[44].mxu0 %v15015_v23  ;;  %10303 = vmatmul.mubr.f32.vlgmr.msra.gmra.mrb[54].mxu1 %v15019_v59  ;;  %v16457_v59 = vld [vmem:[#allocation124_spill] sm:$0xff]  ;;  %v16473_v23 = vld [vmem:[#allocation139_spill] sm:$0xff] }
 0xa3d   : > { %12300 = vmatpush3.bf16.xpose.msra.mxu0 %v16447_v21  ;;  %12372 = vmatpush3.bf16.xpose.msra.mxu1 %v16448_v4 }
 0xa3e   : > { %12301 = vmatprep.subr.bf16.mxu0 %v16390_v39  ;;  %12373 = vmatprep.subr.bf16.mxu1 %v16390_v39 }
 0xa3f   : > { %10267 = vmatprep.mubr.msk.f32.mxu0 %vm13211_vm4, %v16144_v37  ;;  %10372 = vmatprep.mubr.msk.f32.mxu1 %vm13211_vm4, %v16144_v37 }
 0xa45   : > { %12303 = vmatpush3.bf16.xpose.msra.mxu0 %v16449_v25  ;;  %12375 = vmatpush3.bf16.xpose.msra.mxu1 %v16450_v36 }
 0xa46   : > { %12304 = vmatprep.subr.bf16.mxu0 %v16390_v39  ;;  %12376 = vmatprep.subr.bf16.mxu1 %v16390_v39 }
 0xa4d   : > { %12306 = vmatpush3.bf16.xpose.msra.mxu0 %v16451_v1  ;;  %12378 = vmatpush3.bf16.xpose.msra.mxu1 %v16452_v13 }
 0xa4e   : > { %12307 = vmatprep.subr.bf16.mxu0 %v16390_v39  ;;  %12379 = vmatprep.subr.bf16.mxu1 %v16390_v39 }
 0xa4f   : > { %v15039_v22 = vpop.f32.mrb[38].mxu0  ;;  %v15041_v5 = vpop.f32.mrb[48].mxu1 }
 0xa50   : > { %v9989_v47 = vpop.f32.mrb[39].mxu0  ;;  %v10094_v45 = vpop.f32.mrb[49].mxu1 }
 0xa51   : > { %v16458_v47 = vld [vmem:[#allocation125_spill] sm:$0xff]  ;;  %v16459_v45 = vld [vmem:[#allocation126_spill] sm:$0xff] }
 0xa55   : > { %12309 = vmatpush3.bf16.xpose.msra.mxu0 %v16453_v53  ;;  %12381 = vmatpush3.bf16.xpose.msra.mxu1 %v16454_v61 }
 0xa56   : > { %12310 = vmatprep.subr.bf16.mxu0 %v16390_v39  ;;  %12382 = vmatprep.subr.bf16.mxu1 %v16390_v39 }
 0xa5d   : > { %12312 = vmatpush3.bf16.xpose.msra.mxu0 %v16455_v38  ;;  %12384 = vmatpush3.bf16.xpose.msra.mxu1 %v16456_v28 }
 0xa5e   : > { %12313 = vmatprep.subr.bf16.mxu0 %v16390_v39  ;;  %12385 = vmatprep.subr.bf16.mxu1 %v16390_v39 }
 0xa65   : > { %12315 = vmatpush3.bf16.xpose.msra.mxu0 %v16457_v59  ;;  %12387 = vmatpush3.bf16.xpose.msra.mxu1 %v16458_v47 }
 0xa66   : > { %12316 = vmatprep.subr.bf16.mxu0 %v16390_v39  ;;  %12388 = vmatprep.subr.bf16.mxu1 %v16390_v39 }
 0xa6d   : > { %12318 = vmatpush3.bf16.xpose.msra.mxu0 %v16459_v45  ;;  %12390 = vmatpush3.bf16.xpose.msra.mxu1 %v16460_v9 }
 0xa6e   : > { %12319 = vmatprep.subr.bf16.mxu0 %v16390_v39  ;;  %12391 = vmatprep.subr.bf16.mxu1 %v16390_v39 }
 0xa75   : > { %12321 = vmatpush3.bf16.xpose.msra.mxu0 %v16461_v19  ;;  %12393 = vmatpush3.bf16.xpose.msra.mxu1 %v16462_v3  ;;  %v16511_v3 = vld [vmem:[#allocation175_spill] sm:$0xff] }
 0xa76   : > { %12346 = vmatprep.subr.bf16.mxu0 %v16390_v39  ;;  %12418 = vmatprep.subr.bf16.mxu1 %v16390_v39 }
 0xa7c   : > { %10268 = vmatmul.mubr.f32.vlgmr.msra.gmra.mrb[46].mxu0 %v15009_v15  ;;  %10373 = vmatmul.mubr.f32.vlgmr.msra.gmra.mrb[56].mxu1 %v15071_v10  ;;  %v16471_v10 = vld [vmem:[#allocation137_spill] sm:$0xff] }
 0xa7d   : > { %12348 = vmatpush3.bf16.xpose.msra.mxu0 %v16466_v41  ;;  %12420 = vmatpush3.bf16.xpose.msra.mxu1 %v16467_v42  ;;  %v16497_v42 = vld [vmem:[#allocation162_spill] sm:$0xff] }
 0xa7e   : > { %12349 = vmatprep.subr.bf16.mxu0 %v16390_v39  ;;  %12421 = vmatprep.subr.bf16.mxu1 %v16390_v39 }
 0xa7f   : > { %10337 = vmatprep.mubr.msk.f32.mxu0 %vm13211_vm4, %v16144_v37  ;;  %10442 = vmatprep.mubr.msk.f32.mxu1 %vm13211_vm4, %v16144_v37 }
 0xa85   : > { %12351 = vmatpush3.bf16.xpose.msra.mxu0 %v16468_v18  ;;  %12423 = vmatpush3.bf16.xpose.msra.mxu1 %v16469_v27  ;;  %v16495_v27 = vld [vmem:[#allocation160_spill] sm:$0xff] }
 0xa86   : > { %12352 = vmatprep.subr.bf16.mxu0 %v16390_v39  ;;  %12424 = vmatprep.subr.bf16.mxu1 %v16390_v39 }
 0xa8d   : > { %12354 = vmatpush3.bf16.xpose.msra.mxu0 %v16470_v33  ;;  %12426 = vmatpush3.bf16.xpose.msra.mxu1 %v16471_v10  ;;  %v16493_v10 = vld [vmem:[#allocation158_spill] sm:$0xff] }
 0xa8e   : > { %12355 = vmatprep.subr.bf16.mxu0 %v16390_v39  ;;  %12427 = vmatprep.subr.bf16.mxu1 %v16390_v39 }
 0xa8f   : > { %v15091_v16 = vpop.f32.mrb[40].mxu0  ;;  %v15093_v8 = vpop.f32.mrb[50].mxu1 }
 0xa90   : > { %16472 = vst [vmem:[#allocation133_spill] sm:$0xff] %v15093_v8  ;;  %v10059_v24 = vpop.f32.mrb[41].mxu0  ;;  %v10164_v15 = vpop.f32.mrb[51].mxu1 }
 0xa91   : > { %v16478_v24 = vld [vmem:[#allocation144_spill] sm:$0xff]  ;;  %v16479_v15 = vld [vmem:[#allocation145_spill] sm:$0xff] }
 0xa95   : > { %12357 = vmatpush3.bf16.xpose.msra.mxu0 %v16473_v23  ;;  %12429 = vmatpush3.bf16.xpose.msra.mxu1 %v16474_v20 }
 0xa96   : > { %12358 = vmatprep.subr.bf16.mxu0 %v16390_v39  ;;  %12430 = vmatprep.subr.bf16.mxu1 %v16390_v39 }
 0xa9d   : > { %12360 = vmatpush3.bf16.xpose.msra.mxu0 %v16475_v57  ;;  %12432 = vmatpush3.bf16.xpose.msra.mxu1 %v16476_v52 }
 0xa9e   : > { %12361 = vmatprep.subr.bf16.mxu0 %v16390_v39  ;;  %12433 = vmatprep.subr.bf16.mxu1 %v16390_v39 }
 0xaa5   : > { %12363 = vmatpush3.bf16.xpose.msra.mxu0 %v16477_v44  ;;  %12435 = vmatpush3.bf16.xpose.msra.mxu1 %v16478_v24  ;;  %v16489_v24 = vld [vmem:[#allocation154_spill] sm:$0xff] }
 0xaa6   : > { %12364 = vmatprep.subr.bf16.mxu0 %v16390_v39  ;;  %12436 = vmatprep.subr.bf16.mxu1 %v16390_v39 }
 0xaad   : > { %12366 = vmatpush3.bf16.xpose.msra.mxu0 %v16479_v15  ;;  %12438 = vmatpush3.bf16.xpose.msra.mxu1 %v16480_v40  ;;  %v16486_v40 = vld [vmem:[#allocation150_spill] sm:$0xff] }
 0xaae   : > { %12367 = vmatprep.subr.bf16.mxu0 %v16390_v39  ;;  %12439 = vmatprep.subr.bf16.mxu1 %v16390_v39 }
 0xab5   : > { %12369 = vmatpush3.bf16.xpose.msra.mxu0 %v16481_v43  ;;  %12441 = vmatpush3.bf16.xpose.msra.mxu1 %v16482_v62  ;;  %v16487_v62 = vld [vmem:[#allocation151_spill] sm:$0xff] }
 0xab6   : > { %12394 = vmatprep.subr.bf16.mxu0 %v16390_v39  ;;  %12466 = vmatprep.subr.bf16.mxu1 %v16390_v39 }
 0xabc   : > { %10338 = vmatmul.mubr.f32.vlgmr.msra.gmra.mrb[48].mxu0 %v15065_v35  ;;  %10443 = vmatmul.mubr.f32.vlgmr.msra.gmra.mrb[58].mxu1 %v15123_v0  ;;  %v16490_v0 = vld [vmem:[#allocation155_spill] sm:$0xff]  ;;  %v16491_v35 = vld [vmem:[#allocation156_spill] sm:$0xff] }
 0xabd   : > { %12396 = vmatpush3.bf16.xpose.msra.mxu0 %v16486_v40  ;;  %12468 = vmatpush3.bf16.xpose.msra.mxu1 %v16487_v62 }
 0xabe   : > { %12397 = vmatprep.subr.bf16.mxu0 %v16390_v39  ;;  %12469 = vmatprep.subr.bf16.mxu1 %v16390_v39 }
 0xabf   : > { %10407 = vmatprep.mubr.msk.f32.mxu0 %vm13211_vm4, %v16144_v37  ;;  %10512 = vmatprep.mubr.msk.f32.mxu1 %vm13211_vm4, %v16144_v37 }
 0xac5   : > { %12399 = vmatpush3.bf16.xpose.msra.mxu0 %v16488_v26  ;;  %12471 = vmatpush3.bf16.xpose.msra.mxu1 %v16489_v24  ;;  %v16494_v24 = vld [vmem:[#allocation159_spill] sm:$0xff] }
 0xac6   : > { %12400 = vmatprep.subr.bf16.mxu0 %v16390_v39  ;;  %12472 = vmatprep.subr.bf16.mxu1 %v16390_v39 }
 0xacd   : > { %12402 = vmatpush3.bf16.xpose.msra.mxu0 %v16490_v0  ;;  %12474 = vmatpush3.bf16.xpose.msra.mxu1 %v16491_v35  ;;  %v16496_v35 = vld [vmem:[#allocation161_spill] sm:$0xff] }
 0xace   : > { %12403 = vmatprep.subr.bf16.mxu0 %v16390_v39  ;;  %12475 = vmatprep.subr.bf16.mxu1 %v16390_v39 }
 0xacf   : > { %v15143_v62 = vpop.f32.mrb[42].mxu0  ;;  %v15145_v52 = vpop.f32.mrb[52].mxu1 }
 0xad0   : > { %16492 = vst [vmem:[#allocation168_spill] sm:$0xff] %v15145_v52  ;;  %v10129_v20 = vpop.f32.mrb[43].mxu0  ;;  %v10234_v8 = vpop.f32.mrb[53].mxu1  ;;  %v16502_v52 = vld [vmem:[#allocation167_spill] sm:$0xff] }
 0xad1   : > { %v16498_v20 = vld [vmem:[#allocation163_spill] sm:$0xff]  ;;  %v16499_v8 = vld [vmem:[#allocation164_spill] sm:$0xff] }
 0xad5   : > { %12405 = vmatpush3.bf16.xpose.msra.mxu0 %v16493_v10  ;;  %12477 = vmatpush3.bf16.xpose.msra.mxu1 %v16494_v24  ;;  %v16500_v24 = vld [vmem:[#allocation165_spill] sm:$0xff] }
 0xad6   : > { %12406 = vmatprep.subr.bf16.mxu0 %v16390_v39  ;;  %12478 = vmatprep.subr.bf16.mxu1 %v16390_v39 }
 0xadd   : > { %12408 = vmatpush3.bf16.xpose.msra.mxu0 %v16495_v27  ;;  %12480 = vmatpush3.bf16.xpose.msra.mxu1 %v16496_v35  ;;  %v16501_v35 = vld [vmem:[#allocation166_spill] sm:$0xff] }
 0xade   : > { %12409 = vmatprep.subr.bf16.mxu0 %v16390_v39  ;;  %12481 = vmatprep.subr.bf16.mxu1 %v16390_v39 }
 0xae5   : > { %12411 = vmatpush3.bf16.xpose.msra.mxu0 %v16497_v42  ;;  %12483 = vmatpush3.bf16.xpose.msra.mxu1 %v16498_v20  ;;  %v16503_v20 = vcombine.high %v14823_v14, %v14826_v63  ;;  %v16507_v14 = vld [vmem:[#allocation171_spill] sm:$0xff]  ;;  %v16508_v63 = vld [vmem:[#allocation172_spill] sm:$0xff] }
 0xae6   : > { %12412 = vmatprep.subr.bf16.mxu0 %v16390_v39  ;;  %12484 = vmatprep.subr.bf16.mxu1 %v16390_v39 }
 0xae7   : > { %v15169_v54 = vrot.slane %v16503_v20, %v13576_v49 }
 0xae9   : > { %16504 = vst [vmem:[#allocation170_spill] sm:$0xff] %v15169_v54 }
 0xaed   : > { %12414 = vmatpush3.bf16.xpose.msra.mxu0 %v16499_v8  ;;  %12486 = vmatpush3.bf16.xpose.msra.mxu1 %v16500_v24  ;;  %v15175_v24 = vcombine.high %v15169_v54, %v16144_v37 }
 0xaee   : > { %12415 = vmatprep.subr.bf16.mxu0 %v16390_v39  ;;  %12487 = vmatprep.subr.bf16.mxu1 %v16390_v39 }
 0xaef   : > { %16505 = vst [vmem:[#allocation31_spill] sm:$0xff] %v15175_v24 }
 0xaf5   : > { %12417 = vmatpush3.bf16.xpose.msra.mxu0 %v16501_v35  ;;  %12489 = vmatpush3.bf16.xpose.msra.mxu1 %v16502_v52 }
 0xaf6   : > { %12442 = vmatprep.subr.bf16.mxu0 %v16390_v39  ;;  %12514 = vmatprep.subr.bf16.mxu1 %v16390_v39 }
 0xafc   : > { %10408 = vmatmul.mubr.f32.vlgmr.msra.gmra.mrb[50].mxu0 %v15117_v17  ;;  %10513 = vmatmul.mubr.f32.vlgmr.msra.gmra.mrb[60].mxu1 %v15175_v24 }
 0xafd   : > { %12444 = vmatpush3.bf16.xpose.msra.mxu0 %v16506_v60  ;;  %12516 = vmatpush3.bf16.xpose.msra.mxu1 %v16447_v21 }
 0xafe   : > { %12445 = vmatprep.subr.bf16.mxu0 %v16390_v39  ;;  %12517 = vmatprep.subr.bf16.mxu1 %v16390_v39 }
 0xaff   : > { %10477 = vmatprep.mubr.msk.f32.mxu0 %vm13211_vm4, %v16144_v37  ;;  %10582 = vmatprep.mubr.msk.f32.mxu1 %vm13211_vm4, %v16144_v37 }
 0xb05   : > { %12447 = vmatpush3.bf16.xpose.msra.mxu0 %v16507_v14  ;;  %12519 = vmatpush3.bf16.xpose.msra.mxu1 %v16449_v25  ;;  %v16509_v25 = vld [vmem:[#allocation173_spill] sm:$0xff] }
 0xb06   : > { %12448 = vmatprep.subr.bf16.mxu0 %v16390_v39  ;;  %12520 = vmatprep.subr.bf16.mxu1 %v16390_v39 }
 0xb0d   : > { %12450 = vmatpush3.bf16.xpose.msra.mxu0 %v16508_v63  ;;  %12522 = vmatpush3.bf16.xpose.msra.mxu1 %v16451_v1  ;;  %v16510_v1 = vld [vmem:[#allocation174_spill] sm:$0xff] }
 0xb0e   : > { %12451 = vmatprep.subr.bf16.mxu0 %v16390_v39  ;;  %12523 = vmatprep.subr.bf16.mxu1 %v16390_v39 }
 0xb0f   : > { %v15195_v21 = vpop.f32.mrb[44].mxu0  ;;  %v5119_v20 = vpop.f32.mrb[54].mxu1 }
 0xb10   : > { %v5614_v24 = vsub.f32 %v15039_v22, %v5119_v20  ;;  %v10199_v17 = vpop.f32.mrb[45].mxu0  ;;  %v10304_v52 = vpop.f32.mrb[55].mxu1  ;;  %v16513_v22 = vld [vmem:[#allocation177_spill] sm:$0xff] }
 0xb11   : > { %v16516_v52 = vld [vmem:[#allocation180_spill] sm:$0xff] }
 0xb15   : > { %12453 = vmatpush3.bf16.xpose.msra.mxu0 %v16509_v25  ;;  %12525 = vmatpush3.bf16.xpose.msra.mxu1 %v16453_v53  ;;  %v16512_v53 = vld [vmem:[#allocation176_spill] sm:$0xff] }
 0xb16   : > { %12454 = vmatprep.subr.bf16.mxu0 %v16390_v39  ;;  %12526 = vmatprep.subr.bf16.mxu1 %v16390_v39 }
 0xb1d   : > { %12456 = vmatpush3.bf16.xpose.msra.mxu0 %v16510_v1  ;;  %12528 = vmatpush3.bf16.xpose.msra.mxu1 %v16455_v38  ;;  %v16514_v38 = vld [vmem:[#allocation178_spill] sm:$0xff] }
 0xb1e   : > { %12457 = vmatprep.subr.bf16.mxu0 %v16390_v39  ;;  %12529 = vmatprep.subr.bf16.mxu1 %v16390_v39 }
 0xb25   : > { %12459 = vmatpush3.bf16.xpose.msra.mxu0 %v16511_v3  ;;  %12531 = vmatpush3.bf16.xpose.msra.mxu1 %v16457_v59 }
 0xb26   : > { %12460 = vmatprep.subr.bf16.mxu0 %v16390_v39  ;;  %12532 = vmatprep.subr.bf16.mxu1 %v16390_v39 }
 0xb2d   : > { %12462 = vmatpush3.bf16.xpose.msra.mxu0 %v16512_v53  ;;  %12534 = vmatpush3.bf16.xpose.msra.mxu1 %v16459_v45 }
 0xb2e   : > { %12463 = vmatprep.subr.bf16.mxu0 %v16390_v39  ;;  %12535 = vmatprep.subr.bf16.mxu1 %v16390_v39 }
 0xb35   : > { %12465 = vmatpush3.bf16.xpose.msra.mxu0 %v16513_v22  ;;  %12537 = vmatpush3.bf16.xpose.msra.mxu1 %v16461_v19  ;;  %v16515_v19 = vld [vmem:[#allocation179_spill] sm:$0xff] }
 0xb36   : > { %12490 = vmatprep.subr.bf16.mxu0 %v16390_v39  ;;  %12562 = vmatprep.subr.bf16.mxu1 %v16390_v39 }
 0xb3c   : > { %10478 = vmatmul.mubr.f32.vlgmr.msra.gmra.mrb[52].mxu0 %v15169_v54  ;;  %10583 = vmatmul.mubr.f32.vlgmr.msra.gmra.mrb[62].mxu1 %v14781_v46  ;;  %v16517_v54 = vld [vmem:[#allocation181_spill] sm:$0xff] }
 0xb3d   : > { %12492 = vmatpush3.bf16.xpose.msra.mxu0 %v16514_v38  ;;  %12564 = vmatpush3.bf16.xpose.msra.mxu1 %v16466_v41 }
 0xb3e   : > { %12493 = vmatprep.subr.bf16.mxu0 %v16390_v39  ;;  %12565 = vmatprep.subr.bf16.mxu1 %v16390_v39 }
 0xb3f   : > { %10547 = vmatprep.mubr.msk.f32.mxu0 %vm13211_vm4, %v16144_v37  ;;  %10652 = vmatprep.mubr.msk.f32.mxu1 %vm13211_vm4, %v16144_v37 }
 0xb45   : > { %12495 = vmatpush3.bf16.xpose.msra.mxu0 %v16515_v19  ;;  %12567 = vmatpush3.bf16.xpose.msra.mxu1 %v16468_v18 }
 0xb46   : > { %12496 = vmatprep.subr.bf16.mxu0 %v16390_v39  ;;  %12568 = vmatprep.subr.bf16.mxu1 %v16390_v39 }
 0xb4d   : > { %12498 = vmatpush3.bf16.xpose.msra.mxu0 %v16516_v52  ;;  %12570 = vmatpush3.bf16.xpose.msra.mxu1 %v16470_v33  ;;  %v16518_v33 = vld [vmem:[#allocation182_spill] sm:$0xff] }
 0xb4e   : > { %12499 = vmatprep.subr.bf16.mxu0 %v16390_v39  ;;  %12571 = vmatprep.subr.bf16.mxu1 %v16390_v39 }
 0xb4f   : > { %v5049_v41 = vpop.f32.mrb[46].mxu0  ;;  %v5259_v46 = vpop.f32.mrb[56].mxu1 }
 0xb50   : > { %v5613_v17 = vsub.f32 %v14983_v30, %v5049_v41  ;;  %v5616_v59 = vsub.f32 %v15091_v16, %v5259_v46  ;;  %v10269_v45 = vpop.f32.mrb[47].mxu0  ;;  %v10374_v18 = vpop.f32.mrb[57].mxu1  ;;  %v16519_v16 = vld [vmem:[#allocation183_spill] sm:$0xff]  ;;  %v16520_v30 = vld [vmem:[#allocation184_spill] sm:$0xff]  ;;  %v16542_v41 = vld [vmem:[#allocation25_spill] sm:$0xff] }
 0xb52   : > { %v5629_v20 = vcombine.low %v5614_v24, %v5616_v59 }
 0xb54   : > { %v5636_v24 = vrot.slane %v5629_v20, %v13570_v34 }
 0xb55   : > { %12501 = vmatpush3.bf16.xpose.msra.mxu0 %v16517_v54  ;;  %12573 = vmatpush3.bf16.xpose.msra.mxu1 %v16473_v23 }
 0xb56   : > { %12502 = vmatprep.subr.bf16.mxu0 %v16390_v39  ;;  %12574 = vmatprep.subr.bf16.mxu1 %v16390_v39 }
 0xb5d   : > { %12504 = vmatpush3.bf16.xpose.msra.mxu0 %v16518_v33  ;;  %12576 = vmatpush3.bf16.xpose.msra.mxu1 %v16475_v57  ;;  %v16521_v57 = vld [vmem:[#allocation185_spill] sm:$0xff] }
 0xb5e   : > { %12505 = vmatprep.subr.bf16.mxu0 %v16390_v39  ;;  %12577 = vmatprep.subr.bf16.mxu1 %v16390_v39 }
 0xb65   : > { %12507 = vmatpush3.bf16.xpose.msra.mxu0 %v16519_v16  ;;  %12579 = vmatpush3.bf16.xpose.msra.mxu1 %v16477_v44  ;;  %v16522_v44 = vcombine.low %v14875_v2, %v14879_v56 }
 0xb66   : > { %12508 = vmatprep.subr.bf16.mxu0 %v16390_v39  ;;  %12580 = vmatprep.subr.bf16.mxu1 %v16390_v39 }
 0xb67   : > { %v15262_v23 = vrot.slane %v16522_v44, %v13576_v49  ;;  %v16546_v44 = vld [vmem:[#allocation161_spill] sm:$0xff] }
 0xb6d   : > { %12510 = vmatpush3.bf16.xpose.msra.mxu0 %v16520_v30  ;;  %12582 = vmatpush3.bf16.xpose.msra.mxu1 %v16479_v15 }
 0xb6e   : > { %12511 = vmatprep.subr.bf16.mxu0 %v16390_v39  ;;  %12583 = vmatprep.subr.bf16.mxu1 %v16390_v39 }
 0xb75   : > { %12513 = vmatpush3.bf16.xpose.msra.mxu0 %v16521_v57  ;;  %12585 = vmatpush3.bf16.xpose.msra.mxu1 %v16481_v43 }
 0xb76   : > { %12538 = vmatprep.subr.bf16.mxu0 %v16390_v39  ;;  %12610 = vmatprep.subr.bf16.mxu1 %v16390_v39 }
 0xb7c   : > { %10548 = vmatmul.mubr.f32.vlgmr.msra.gmra.mrb[54].mxu0 %v15262_v23  ;;  %10653 = vmatmul.mubr.f32.vlgmr.msra.gmra.mrb[64].mxu1 %v14784_v55 }
 0xb7d   : > { %12540 = vmatpush3.bf16.xpose.msra.mxu0 %v16428_v11  ;;  %12612 = vmatpush3.bf16.xpose.msra.mxu1 %v16486_v40 }
 0xb7e   : > { %12541 = vmatprep.subr.bf16.mxu0 %v16390_v39  ;;  %12613 = vmatprep.subr.bf16.mxu1 %v16390_v39 }
 0xb7f   : > { %10617 = vmatprep.mubr.msk.f32.mxu0 %vm13211_vm4, %v16144_v37  ;;  %10722 = vmatprep.mubr.msk.f32.mxu1 %vm13211_vm4, %v16144_v37 }
 0xb85   : > { %12543 = vmatpush3.bf16.xpose.msra.mxu0 %v16430_v48  ;;  %12615 = vmatpush3.bf16.xpose.msra.mxu1 %v16488_v26 }
 0xb86   : > { %12544 = vmatprep.subr.bf16.mxu0 %v16390_v39  ;;  %12616 = vmatprep.subr.bf16.mxu1 %v16390_v39 }
 0xb8d   : > { %12546 = vmatpush3.bf16.xpose.msra.mxu0 %v16432_v6  ;;  %12618 = vmatpush3.bf16.xpose.msra.mxu1 %v16490_v0 }
 0xb8e   : > { %12547 = vmatprep.subr.bf16.mxu0 %v16390_v39  ;;  %12619 = vmatprep.subr.bf16.mxu1 %v16390_v39 }
 0xb8f   : > { %v5189_v40 = vpop.f32.mrb[48].mxu0  ;;  %v5399_v43 = vpop.f32.mrb[58].mxu1 }
 0xb90   : > { %v5615_v55 = vsub.f32 %v14985_v7, %v5189_v40  ;;  %v5618_v2 = vsub.f32 %v15143_v62, %v5399_v43  ;;  %v10339_v56 = vpop.f32.mrb[49].mxu0  ;;  %v10444_v11 = vpop.f32.mrb[59].mxu1  ;;  %v16547_v40 = vld [vmem:[#allocation27_spill] sm:$0xff] }
 0xb91   : > { %v16548_v43 = vld [vmem:[#allocation163_spill] sm:$0xff]  ;;  %v16551_v56 = vld [vmem:[#allocation29_spill] sm:$0xff] }
 0xb92   : > { %v5621_v48 = vcombine.low %v5613_v17, %v5615_v55  ;;  %v16543_v17 = vld [vmem:[#allocation168_spill] sm:$0xff]  ;;  %v16552_v11 = vld [vmem:[#allocation167_spill] sm:$0xff] }
 0xb93   : > { %v16549_v55 = vld [vmem:[#allocation28_spill] sm:$0xff] }
 0xb94   : > { %v5628_v15 = vrot.slane %v5621_v48, %v13570_v34  ;;  %v16553_v48 = vld [vmem:[#allocation41_spill] sm:$0xff] }
 0xb95   : > { %12549 = vmatpush3.bf16.xpose.msra.mxu0 %v16434_v29  ;;  %12621 = vmatpush3.bf16.xpose.msra.mxu1 %v16493_v10 }
 0xb96   : > { %v15288_v6 = vcombine.low %v5628_v15, %v5636_v24  ;;  %12550 = vmatprep.subr.bf16.mxu0 %v16390_v39  ;;  %12622 = vmatprep.subr.bf16.mxu1 %v16390_v39  ;;  %v16554_v24 = vld [vmem:[#allocation114_spill] sm:$0xff]  ;;  %v16555_v15 = vld [vmem:[#allocation157_spill] sm:$0xff] }
 0xb9d   : > { %12552 = vmatpush3.bf16.xpose.msra.mxu0 %v16436_v31  ;;  %12624 = vmatpush3.bf16.xpose.msra.mxu1 %v16495_v27 }
 0xb9e   : > { %12553 = vmatprep.subr.bf16.mxu0 %v16390_v39  ;;  %12625 = vmatprep.subr.bf16.mxu1 %v16390_v39 }
 0xba5   : > { %12555 = vmatpush3.bf16.xpose.msra.mxu0 %v16438_v32  ;;  %12627 = vmatpush3.bf16.xpose.msra.mxu1 %v16497_v42  ;;  %v16530_v32 = vld [vmem:[#allocation140_spill] sm:$0xff] }
 0xba6   : > { %12556 = vmatprep.subr.bf16.mxu0 %v16390_v39  ;;  %12628 = vmatprep.subr.bf16.mxu1 %v16390_v39 }
 0xbad   : > { %12558 = vmatpush3.bf16.xpose.msra.mxu0 %v16440_v58  ;;  %12630 = vmatpush3.bf16.xpose.msra.mxu1 %v16499_v8 }
 0xbae   : > { %12559 = vmatprep.subr.bf16.mxu0 %v16390_v39  ;;  %12631 = vmatprep.subr.bf16.mxu1 %v16390_v39 }
 0xbb5   : > { %12561 = vmatpush3.bf16.xpose.msra.mxu0 %v16442_v50  ;;  %12633 = vmatpush3.bf16.xpose.msra.mxu1 %v16501_v35 }
 0xbb6   : > { %12586 = vmatprep.subr.bf16.mxu0 %v16390_v39  ;;  %12658 = vmatprep.subr.bf16.mxu1 %v16390_v39 }
 0xbbc   : > { %10618 = vmatmul.mubr.f32.vlgmr.msra.gmra.mrb[56].mxu0 %v14858_v12  ;;  %10723 = vmatmul.mubr.f32.vlgmr.msra.gmra.mrb[66].mxu1 %v14861_v51  ;;  %v16529_v12 = vld [vmem:[#allocation133_spill] sm:$0xff] }
 0xbbd   : > { %12588 = vmatpush3.bf16.xpose.msra.mxu0 %v16448_v4  ;;  %12660 = vmatpush3.bf16.xpose.msra.mxu1 %v16506_v60 }
 0xbbe   : > { %12589 = vmatprep.subr.bf16.mxu0 %v16390_v39  ;;  %12661 = vmatprep.subr.bf16.mxu1 %v16390_v39 }
 0xbbf   : > { %10687 = vmatprep.mubr.msk.f32.mxu0 %vm13211_vm4, %v16144_v37  ;;  %10792 = vmatprep.mubr.msk.f32.mxu1 %vm13211_vm4, %v16144_v37 }
 0xbc5   : > { %12591 = vmatpush3.bf16.xpose.msra.mxu0 %v16450_v36  ;;  %12663 = vmatpush3.bf16.xpose.msra.mxu1 %v16507_v14  ;;  %v16531_v14 = vld [vmem:[#allocation142_spill] sm:$0xff] }
 0xbc6   : > { %12592 = vmatprep.subr.bf16.mxu0 %v16390_v39  ;;  %12664 = vmatprep.subr.bf16.mxu1 %v16390_v39 }
 0xbcd   : > { %12594 = vmatpush3.bf16.xpose.msra.mxu0 %v16452_v13  ;;  %12666 = vmatpush3.bf16.xpose.msra.mxu1 %v16508_v63  ;;  %v16523_v13 = vld [vmem:[#allocation129_spill] sm:$0xff]  ;;  %v16533_v63 = vld [vmem:[#allocation146_spill] sm:$0xff] }
 0xbce   : > { %12595 = vmatprep.subr.bf16.mxu0 %v16390_v39  ;;  %12667 = vmatprep.subr.bf16.mxu1 %v16390_v39 }
 0xbcf   : > { %v5329_v42 = vpop.f32.mrb[50].mxu0  ;;  %v5539_v29 = vpop.f32.mrb[60].mxu1 }
 0xbd0   : > { %v5617_v62 = vsub.f32 %v15041_v5, %v5329_v42  ;;  %v5620_v35 = vsub.f32 %v15195_v21, %v5539_v29  ;;  %v10409_v10 = vpop.f32.mrb[51].mxu0  ;;  %v10514_v60 = vpop.f32.mrb[61].mxu1  ;;  %v16525_v5 = vld [vmem:[#allocation138_spill] sm:$0xff]  ;;  %v16534_v21 = vld [vmem:[#allocation148_spill] sm:$0xff]  ;;  %v16558_v29 = vld [vmem:[#allocation45_spill] sm:$0xff] }
 0xbd1   : > { %v16557_v42 = vld [vmem:[#allocation34_spill] sm:$0xff]  ;;  %v16561_v10 = vld [vmem:[#allocation36_spill] sm:$0xff]  ;;  %v16562_v60 = vld [vmem:[#allocation49_spill] sm:$0xff] }
 0xbd2   : > { %v5645_v50 = vcombine.low %v5618_v2, %v5620_v35  ;;  %v16550_v2 = vld [vmem:[#allocation165_spill] sm:$0xff]  ;;  %v16560_v35 = vld [vmem:[#allocation47_spill] sm:$0xff] }
 0xbd4   : > { %v5652_v58 = vrot.slane %v5645_v50, %v13570_v34  ;;  %v16563_v50 = vld [vmem:[#allocation37_spill] sm:$0xff] }
 0xbd5   : > { %12597 = vmatpush3.bf16.xpose.msra.mxu0 %v16454_v61  ;;  %12669 = vmatpush3.bf16.xpose.msra.mxu1 %v16509_v25  ;;  %v16526_v61 = vld [vmem:[#allocation132_spill] sm:$0xff]  ;;  %v16535_v25 = vld [vmem:[#allocation95_spill] sm:$0xff] }
 0xbd6   : > { %12598 = vmatprep.subr.bf16.mxu0 %v16390_v39  ;;  %12670 = vmatprep.subr.bf16.mxu1 %v16390_v39 }
 0xbdd   : > { %12600 = vmatpush3.bf16.xpose.msra.mxu0 %v16456_v28  ;;  %12672 = vmatpush3.bf16.xpose.msra.mxu1 %v16510_v1  ;;  %v16527_v28 = vld [vmem:[#allocation135_spill] sm:$0xff]  ;;  %v16536_v1 = vld [vmem:[#allocation96_spill] sm:$0xff] }
 0xbde   : > { %12601 = vmatprep.subr.bf16.mxu0 %v16390_v39  ;;  %12673 = vmatprep.subr.bf16.mxu1 %v16390_v39 }
 0xbe5   : > { %12603 = vmatpush3.bf16.xpose.msra.mxu0 %v16458_v47  ;;  %12675 = vmatpush3.bf16.xpose.msra.mxu1 %v16511_v3  ;;  %v16524_v3 = vld [vmem:[#allocation78_spill] sm:$0xff]  ;;  %v5660_v47 = vrot.slane %v15288_v6, %v13576_v49  ;;  %v16556_v6 = vld [vmem:[#allocation43_spill] sm:$0xff] }
 0xbe6   : > { %12604 = vmatprep.subr.bf16.mxu0 %v16390_v39  ;;  %12676 = vmatprep.subr.bf16.mxu1 %v16390_v39 }
 0xbed   : > { %12606 = vmatpush3.bf16.xpose.msra.mxu0 %v16460_v9  ;;  %12678 = vmatpush3.bf16.xpose.msra.mxu1 %v16512_v53  ;;  %v16528_v9 = vld [vmem:[#allocation137_spill] sm:$0xff]  ;;  %v16537_v53 = vld [vmem:[#allocation151_spill] sm:$0xff] }
 0xbee   : > { %12607 = vmatprep.subr.bf16.mxu0 %v16390_v39  ;;  %12679 = vmatprep.subr.bf16.mxu1 %v16390_v39 }
 0xbf5   : > { %12609 = vmatpush3.bf16.xpose.msra.mxu0 %v16523_v13  ;;  %12681 = vmatpush3.bf16.xpose.msra.mxu1 %v16513_v22  ;;  %v16538_v22 = vld [vmem:[#allocation23_spill] sm:$0xff] }
 0xbf6   : > { %12634 = vmatprep.subr.bf16.mxu0 %v16390_v39  ;;  %12706 = vmatprep.subr.bf16.mxu1 %v16390_v39  ;;  %v16564_v13 = vld [vmem:[#allocation51_spill] sm:$0xff] }
 0xbfc   : > { %10688 = vmatmul.mubr.f32.vlgmr.msra.gmra.mrb[58].mxu0 %v16524_v3  ;;  %10793 = vmatmul.mubr.f32.vlgmr.msra.gmra.mrb[68].mxu1 %v16525_v5  ;;  %v16565_v3 = vld [vmem:[#allocation38_spill] sm:$0xff]  ;;  %v16566_v5 = vld [vmem:[#allocation53_spill] sm:$0xff] }
 0xbfd   : > { %12636 = vmatpush3.bf16.xpose.msra.mxu0 %v16526_v61  ;;  %12708 = vmatpush3.bf16.xpose.msra.mxu1 %v16514_v38  ;;  %v16539_v38 = vld [vmem:[#allocation154_spill] sm:$0xff]  ;;  %v16567_v61 = vld [vmem:[#allocation39_spill] sm:$0xff] }
 0xbfe   : > { %12637 = vmatprep.subr.bf16.mxu0 %v16390_v39  ;;  %12709 = vmatprep.subr.bf16.mxu1 %v16390_v39 }
 0xbff   : > { %10757 = vmatprep.mubr.msk.f32.mxu0 %vm13211_vm4, %v16144_v37  ;;  %10862 = vmatprep.mubr.msk.f32.mxu1 %vm13211_vm4, %v16144_v37 }
 0xc05   : > { %12639 = vmatpush3.bf16.xpose.msra.mxu0 %v16527_v28  ;;  %12711 = vmatpush3.bf16.xpose.msra.mxu1 %v16515_v19  ;;  %v16540_v19 = vld [vmem:[#allocation24_spill] sm:$0xff]  ;;  %v16568_v28 = vld [vmem:[#allocation55_spill] sm:$0xff] }
 0xc06   : > { %12640 = vmatprep.subr.bf16.mxu0 %v16390_v39  ;;  %12712 = vmatprep.subr.bf16.mxu1 %v16390_v39 }
 0xc0d   : > { %12642 = vmatpush3.bf16.xpose.msra.mxu0 %v16528_v9  ;;  %12714 = vmatpush3.bf16.xpose.msra.mxu1 %v16516_v52  ;;  %v16541_v52 = vld [vmem:[#allocation156_spill] sm:$0xff] }
 0xc0e   : > { %12643 = vmatprep.subr.bf16.mxu0 %v16390_v39  ;;  %12715 = vmatprep.subr.bf16.mxu1 %v16390_v39  ;;  %v16569_v9 = vld [vmem:[#allocation40_spill] sm:$0xff] }
 0xc0f   : > { %v5469_v31 = vpop.f32.mrb[52].mxu0 }
 0xc10   : > { %v5619_v51 = vsub.f32 %v16529_v12, %v5469_v31  ;;  %v10479_v36 = vpop.f32.mrb[53].mxu0  ;;  %v16570_v31 = vld [vmem:[#allocation57_spill] sm:$0xff]  ;;  %v16571_v12 = vld [vmem:[#allocation42_spill] sm:$0xff] }
 0xc11   : > { %v16573_v36 = vld [vmem:[#allocation115_spill] sm:$0xff] }
 0xc12   : > { %v5637_v0 = vcombine.low %v5617_v62, %v5619_v51  ;;  %v16559_v62 = vld [vmem:[#allocation35_spill] sm:$0xff] }
 0xc13   : > { %v16572_v51 = vld [vmem:[#allocation111_spill] sm:$0xff] }
 0xc14   : > { %v5644_v7 = vrot.slane %v5637_v0, %v13570_v34  ;;  %v16574_v0 = vld [vmem:[#allocation59_spill] sm:$0xff] }
 0xc15   : > { %12645 = vmatpush3.bf16.xpose.msra.mxu0 %v16530_v32  ;;  %12717 = vmatpush3.bf16.xpose.msra.mxu1 %v16517_v54  ;;  %v16532_v54 = vld [vmem:[#allocation144_spill] sm:$0xff]  ;;  %v16577_v32 = vld [vmem:[#allocation46_spill] sm:$0xff] }
 0xc16   : > { %v5661_v4 = vcombine.low %v5644_v7, %v5652_v58  ;;  %12646 = vmatprep.subr.bf16.mxu0 %v16390_v39  ;;  %12718 = vmatprep.subr.bf16.mxu1 %v16390_v39  ;;  %v16575_v58 = vld [vmem:[#allocation44_spill] sm:$0xff]  ;;  %v16576_v7 = vld [vmem:[#allocation61_spill] sm:$0xff] }
 0xc18   : > { %v5668_v27 = vrot.slane %v5661_v4, %v13576_v49  ;;  %v16578_v4 = vld [vmem:[#allocation63_spill] sm:$0xff] }
 0xc1a   : > { %v5669_v26 = vcombine.low %v5660_v47, %v5668_v27  ;;  %v5670_v8 = vcombine.high %v5660_v47, %v5668_v27  ;;  %v16579_v47 = vld [vmem:[#allocation48_spill] sm:$0xff]  ;;  %v16580_v27 = vld [vmem:[#allocation65_spill] sm:$0xff] }
 0xc1d   : > { %12648 = vmatpush3.bf16.xpose.msra.mxu0 %v16531_v14  ;;  %12720 = vmatpush3.bf16.xpose.msra.mxu1 %v16518_v33  ;;  %v16583_v14 = vld [vmem:[#allocation52_spill] sm:$0xff] }
 0xc1e   : > { %12649 = vmatprep.subr.bf16.mxu0 %v16390_v39  ;;  %12721 = vmatprep.subr.bf16.mxu1 %v16390_v39 }
 0xc25   : > { %12651 = vmatpush3.bf16.xpose.msra.mxu0 %v16532_v54  ;;  %12723 = vmatpush3.bf16.xpose.msra.mxu1 %v16519_v16  ;;  %v16544_v16 = vld [vmem:[#allocation159_spill] sm:$0xff]  ;;  %v16584_v54 = vld [vmem:[#allocation69_spill] sm:$0xff] }
 0xc26   : > { %12652 = vmatprep.subr.bf16.mxu0 %v16390_v39  ;;  %12724 = vmatprep.subr.bf16.mxu1 %v16390_v39 }
 0xc2d   : > { %12654 = vmatpush3.bf16.xpose.msra.mxu0 %v16533_v63  ;;  %12726 = vmatpush3.bf16.xpose.msra.mxu1 %v16520_v30  ;;  %v16545_v30 = vld [vmem:[#allocation26_spill] sm:$0xff] }
 0xc2e   : > { %12655 = vmatprep.subr.bf16.mxu0 %v16390_v39  ;;  %12727 = vmatprep.subr.bf16.mxu1 %v16390_v39  ;;  %v16585_v63 = vld [vmem:[#allocation54_spill] sm:$0xff] }
 0xc35   : > { %12657 = vmatpush3.bf16.xpose.msra.mxu0 %v16534_v21  ;;  %12729 = vmatpush3.bf16.xpose.msra.mxu1 %v16521_v57  ;;  %v16586_v21 = vld [vmem:[#allocation71_spill] sm:$0xff] }
 0xc36   : > { %12682 = vmatprep.subr.bf16.mxu0 %v16390_v39  ;;  %12730 = vmatprep.subr.bf16.mxu1 %v16390_v39 }
 0xc3c   : > { %10758 = vmatmul.mubr.f32.vlgmr.msra.gmra.mrb[60].mxu0 %v16535_v25  ;;  %10863 = vmatmul.mubr.f32.vlgmr.msra.gmra.mrb[70].mxu1 %v16536_v1  ;;  %v16587_v25 = vld [vmem:[#allocation56_spill] sm:$0xff]  ;;  %v16588_v1 = vld [vmem:[#allocation73_spill] sm:$0xff] }
 0xc3d   : > { %12684 = vmatpush3.bf16.xpose.msra.mxu0 %v16537_v53  ;;  %12732 = vmatpush3.bf16.xpose.msra.mxu1 %v16538_v22  ;;  %v16589_v53 = vld [vmem:[#allocation58_spill] sm:$0xff] }
 0xc3e   : > { %12685 = vmatprep.subr.bf16.mxu0 %v16390_v39  ;;  %12733 = vmatprep.subr.bf16.mxu1 %v16390_v39  ;;  %v16590_v22 = vld [vmem:[#allocation130_spill] sm:$0xff] }
 0xc3f   : > { %10827 = vmatprep.mubr.msk.f32.mxu0 %vm13211_vm4, %v16144_v37  ;;  %10897 = vmatprep.mubr.msk.f32.mxu1 %vm13211_vm4, %v16144_v37 }
 0xc45   : > { %12687 = vmatpush3.bf16.xpose.msra.mxu0 %v16539_v38  ;;  %12735 = vmatpush3.bf16.xpose.msra.mxu1 %v16540_v19  ;;  %v16591_v38 = vld [vmem:[#allocation149_spill] sm:$0xff]  ;;  %v16592_v19 = vld [vmem:[#allocation75_spill] sm:$0xff] }
 0xc46   : > { %12688 = vmatprep.subr.bf16.mxu0 %v16390_v39  ;;  %12736 = vmatprep.subr.bf16.mxu1 %v16390_v39 }
 0xc4d   : > { %12690 = vmatpush3.bf16.xpose.msra.mxu0 %v16541_v52  ;;  %12738 = vmatpush3.bf16.xpose.msra.mxu1 %v16542_v41  ;;  %v16593_v52 = vld [vmem:[#allocation60_spill] sm:$0xff]  ;;  %v16594_v41 = vld [vmem:[#allocation79_spill] sm:$0xff] }
 0xc4e   : > { %12691 = vmatprep.subr.bf16.mxu0 %v16390_v39  ;;  %12739 = vmatprep.subr.bf16.mxu1 %v16390_v39 }
 0xc4f   : > { %v5609_v46 = vpop.f32.mrb[54].mxu0 }
 0xc50   : > { %v5671_v59 = vsub.f32 %v16543_v17, %v5609_v46  ;;  %v10549_v45 = vpop.f32.mrb[55].mxu0  ;;  %v16595_v46 = vld [vmem:[#allocation62_spill] sm:$0xff]  ;;  %v16596_v17 = vld [vmem:[#allocation81_spill] sm:$0xff] }
 0xc51   : > { %v16598_v45 = vld [vmem:[#allocation83_spill] sm:$0xff] }
 0xc52   : > { %v5678_v18 = vrot.slane %v5671_v59, %v13576_v49  ;;  %v16597_v59 = vld [vmem:[#allocation64_spill] sm:$0xff] }
 0xc54   : > { %v5679_v20 = vcombine.high %v5678_v18, %v16144_v37  ;;  %v15413_v33 = vpack.c.bf16 %v5678_v18, %v5669_v26  ;;  %v16581_v26 = vld [vmem:[#allocation50_spill] sm:$0xff] }
 0xc55   : > { %12693 = vmatpush3.bf16.xpose.msra.mxu0 %v16544_v16  ;;  %12741 = vmatpush3.bf16.xpose.msra.mxu1 %v16545_v30  ;;  %v16599_v18 = vld [vmem:[#allocation66_spill] sm:$0xff]  ;;  %v16601_v16 = vld [vmem:[#allocation68_spill] sm:$0xff]  ;;  %v16602_v30 = vld [vmem:[#allocation87_spill] sm:$0xff] }
 0xc56   : > { %v15417_v57 = vpack.c.bf16 %v5679_v20, %v5670_v8  ;;  %12694 = vmatprep.subr.bf16.mxu0 %v16390_v39  ;;  %12742 = vmatprep.subr.bf16.mxu1 %v16390_v39  ;;  %v16582_v8 = vld [vmem:[#allocation67_spill] sm:$0xff]  ;;  %v16600_v20 = vld [vmem:[#allocation85_spill] sm:$0xff] }
 0xc5d   : > { %12696 = vmatpush3.bf16.xpose.msra.mxu0 %v16546_v44  ;;  %12744 = vmatpush3.bf16.xpose.msra.mxu1 %v16547_v40  ;;  %v16603_v44 = vld [vmem:[#allocation70_spill] sm:$0xff]  ;;  %v16604_v40 = vld [vmem:[#allocation89_spill] sm:$0xff] }
 0xc5e   : > { %12697 = vmatprep.subr.bf16.mxu0 %v16390_v39  ;;  %12745 = vmatprep.subr.bf16.mxu1 %v16390_v39 }
 0xc65   : > { %12699 = vmatpush3.bf16.xpose.msra.mxu0 %v16548_v43  ;;  %12747 = vmatpush3.bf16.xpose.msra.mxu1 %v16549_v55  ;;  %v16605_v43 = vld [vmem:[#allocation72_spill] sm:$0xff]  ;;  %v16606_v55 = vld [vmem:[#allocation91_spill] sm:$0xff] }
 0xc66   : > { %12700 = vmatprep.subr.bf16.mxu0 %v16390_v39  ;;  %12748 = vmatprep.subr.bf16.mxu1 %v16390_v39 }
 0xc6d   : > { %12702 = vmatpush3.bf16.xpose.msra.mxu0 %v16550_v2  ;;  %12750 = vmatpush3.bf16.xpose.msra.mxu1 %v16551_v56  ;;  %v16607_v2 = vld [vmem:[#allocation74_spill] sm:$0xff]  ;;  %v16608_v56 = vld [vmem:[#allocation152_spill] sm:$0xff] }
 0xc6e   : > { %12703 = vmatprep.subr.bf16.mxu0 %v16390_v39  ;;  %12751 = vmatprep.subr.bf16.mxu1 %v16390_v39 }
 0xc75   : > { %12705 = vmatpush3.bf16.xpose.msra.mxu0 %v16552_v11  ;;  %12753 = vmatpush3.bf16.xpose.msra.mxu1 %v16553_v48  ;;  %v16609_v11 = vld [vmem:[#allocation170_spill] sm:$0xff]  ;;  %v16610_v48 = vld [vmem:[#allocation93_spill] sm:$0xff] }
 0xc76   : > { %12754 = vmatprep.subr.bf16.mxu0 %v16390_v39  ;;  %12778 = vmatprep.subr.bf16.mxu1 %v16390_v39 }
 0xc7c   : > { %10828 = vmatmul.mubr.f32.vlgmr.msra.gmra.mrb[62].mxu0 %v16554_v24  ;;  %10898 = vmatmul.mubr.f32.vlgmr.msra.gmra.mrb[62].mxu1 %v16555_v15  ;;  %v16611_v24 = vld [vmem:[#allocation76_spill] sm:$0xff]  ;;  %v16612_v15 = vld [vmem:[#allocation97_spill] sm:$0xff] }
 0xc7d   : > { %12756 = vmatpush3.bf16.xpose.msra.mxu0 %v16556_v6  ;;  %12780 = vmatpush3.bf16.xpose.msra.mxu1 %v16557_v42  ;;  %v16613_v6 = vld [vmem:[#allocation80_spill] sm:$0xff]  ;;  %v16614_v42 = vld [vmem:[#allocation99_spill] sm:$0xff] }
 0xc7e   : > { %12757 = vmatprep.subr.bf16.mxu0 %v16390_v39  ;;  %12781 = vmatprep.subr.bf16.mxu1 %v16390_v39 }
 0xc7f   : > { %10932 = vmatprep.mubr.msk.f32.mxu0 %vm13211_vm4, %v16144_v37  ;;  %10967 = vmatprep.mubr.msk.f32.mxu1 %vm13211_vm4, %v16144_v37 }
 0xc85   : > { %12759 = vmatpush3.bf16.xpose.msra.mxu0 %v16558_v29  ;;  %12783 = vmatpush3.bf16.xpose.msra.mxu1 %v16559_v62  ;;  %v16615_v29 = vld [vmem:[#allocation82_spill] sm:$0xff] }
 0xc86   : > { %12760 = vmatprep.subr.bf16.mxu0 %v16390_v39  ;;  %12784 = vmatprep.subr.bf16.mxu1 %v16390_v39 }
 0xc8d   : > { %12762 = vmatpush3.bf16.xpose.msra.mxu0 %v16560_v35  ;;  %12786 = vmatpush3.bf16.xpose.msra.mxu1 %v16561_v10  ;;  %v16616_v10 = vld [vmem:[#allocation101_spill] sm:$0xff] }
 0xc8e   : > { %12763 = vmatprep.subr.bf16.mxu0 %v16390_v39  ;;  %12787 = vmatprep.subr.bf16.mxu1 %v16390_v39 }
 0xc95   : > { %12765 = vmatpush3.bf16.xpose.msra.mxu0 %v16562_v60  ;;  %12789 = vmatpush3.bf16.xpose.msra.mxu1 %v16563_v50  ;;  %v16617_v60 = vld [vmem:[#allocation84_spill] sm:$0xff]  ;;  %v16618_v50 = vld [vmem:[#allocation103_spill] sm:$0xff] }
 0xc96   : > { %12766 = vmatprep.subr.bf16.mxu0 %v16390_v39  ;;  %12790 = vmatprep.subr.bf16.mxu1 %v16390_v39 }
 0xc9d   : > { %12768 = vmatpush3.bf16.xpose.msra.mxu0 %v16564_v13  ;;  %12792 = vmatpush3.bf16.xpose.msra.mxu1 %v16565_v3  ;;  %v16619_v13 = vld [vmem:[#allocation86_spill] sm:$0xff]  ;;  %v16620_v3 = vld [vmem:[#allocation105_spill] sm:$0xff] }
 0xc9e   : > { %12769 = vmatprep.subr.bf16.mxu0 %v16390_v39  ;;  %12793 = vmatprep.subr.bf16.mxu1 %v16390_v39 }
 0xca5   : > { %12771 = vmatpush3.bf16.xpose.msra.mxu0 %v16566_v5  ;;  %12795 = vmatpush3.bf16.xpose.msra.mxu1 %v16567_v61  ;;  %v16621_v5 = vld [vmem:[#allocation88_spill] sm:$0xff]  ;;  %v16622_v61 = vld [vmem:[#allocation107_spill] sm:$0xff] }
 0xca6   : > { %12772 = vmatprep.subr.bf16.mxu0 %v16390_v39  ;;  %12796 = vmatprep.subr.bf16.mxu1 %v16390_v39 }
 0xcad   : > { %12774 = vmatpush3.bf16.xpose.msra.mxu0 %v16568_v28  ;;  %12798 = vmatpush3.bf16.xpose.msra.mxu1 %v16569_v9  ;;  %v16623_v28 = vld [vmem:[#allocation90_spill] sm:$0xff]  ;;  %v16624_v9 = vld [vmem:[#allocation109_spill] sm:$0xff] }
 0xcae   : > { %12775 = vmatprep.subr.bf16.mxu0 %v16390_v39  ;;  %12799 = vmatprep.subr.bf16.mxu1 %v16390_v39 }
 0xcb5   : > { %12777 = vmatpush3.bf16.xpose.msra.mxu0 %v16570_v31  ;;  %12801 = vmatpush3.bf16.xpose.msra.mxu1 %v16571_v12  ;;  %v16625_v31 = vld [vmem:[#allocation92_spill] sm:$0xff] }
 0xcb6   : > { %12802 = vmatprep.subr.bf16.mxu0 %v16390_v39  ;;  %12826 = vmatprep.subr.bf16.mxu1 %v16390_v39 }
 0xcbc   : > { %10933 = vmatmul.mubr.f32.vlgmr.msra.gmra.mrb[56].mxu0 %v16572_v51  ;;  %10968 = vmatmul.mubr.f32.vlgmr.msra.gmra.mrb[64].mxu1 %v16573_v36  ;;  %v16627_v51 = vld [vmem:[#allocation31_spill] sm:$0xff] }
 0xcbd   : > { %12804 = vmatpush3.bf16.xpose.msra.mxu0 %v16574_v0  ;;  %12828 = vmatpush3.bf16.xpose.msra.mxu1 %v16575_v58 }
 0xcbe   : > { %12805 = vmatprep.subr.bf16.mxu0 %v16390_v39  ;;  %12829 = vmatprep.subr.bf16.mxu1 %v16390_v39 }
 0xcbf   : > { %11002 = vmatprep.mubr.msk.f32.mxu0 %vm13211_vm4, %v16144_v37  ;;  %11037 = vmatprep.mubr.msk.f32.mxu1 %vm13211_vm4, %v16144_v37 }
 0xcc5   : > { %12807 = vmatpush3.bf16.xpose.msra.mxu0 %v16576_v7  ;;  %12831 = vmatpush3.bf16.xpose.msra.mxu1 %v16577_v32 }
 0xcc6   : > { %12808 = vmatprep.subr.bf16.mxu0 %v16390_v39  ;;  %12832 = vmatprep.subr.bf16.mxu1 %v16390_v39 }
 0xccd   : > { %12810 = vmatpush3.bf16.xpose.msra.mxu0 %v16578_v4  ;;  %12834 = vmatpush3.bf16.xpose.msra.mxu1 %v16579_v47 }
 0xcce   : > { %12811 = vmatprep.subr.bf16.mxu0 %v16390_v39  ;;  %12835 = vmatprep.subr.bf16.mxu1 %v16390_v39 }
 0xcd5   : > { %12813 = vmatpush3.bf16.xpose.msra.mxu0 %v16580_v27  ;;  %12837 = vmatpush3.bf16.xpose.msra.mxu1 %v16581_v26 }
 0xcd6   : > { %12814 = vmatprep.subr.bf16.mxu0 %v16390_v39  ;;  %12838 = vmatprep.subr.bf16.mxu1 %v16390_v39 }
 0xcdd   : > { %12816 = vmatpush3.bf16.xpose.msra.mxu0 %v16582_v8  ;;  %12840 = vmatpush3.bf16.xpose.msra.mxu1 %v16583_v14  ;;  %v7415_v14 = vld [vmem:[%s15698_s9 + $0x18] sm:$0xff] }
 0xcde   : > { %12817 = vmatprep.subr.bf16.mxu0 %v16390_v39  ;;  %12841 = vmatprep.subr.bf16.mxu1 %v16390_v39 }
 0xce5   : > { %12819 = vmatpush3.bf16.xpose.msra.mxu0 %v16584_v54  ;;  %12843 = vmatpush3.bf16.xpose.msra.mxu1 %v16585_v63 }
 0xce6   : > { %12820 = vmatprep.subr.bf16.mxu0 %v16390_v39  ;;  %12844 = vmatprep.subr.bf16.mxu1 %v16390_v39 }
 0xced   : > { %12822 = vmatpush3.bf16.xpose.msra.mxu0 %v16586_v21  ;;  %12846 = vmatpush3.bf16.xpose.msra.mxu1 %v16587_v25 }
 0xcee   : > { %12823 = vmatprep.subr.bf16.mxu0 %v16390_v39  ;;  %12847 = vmatprep.subr.bf16.mxu1 %v16390_v39 }
 0xcf5   : > { %12825 = vmatpush3.bf16.xpose.msra.mxu0 %v16588_v1  ;;  %12849 = vmatpush3.bf16.xpose.msra.mxu1 %v16589_v53 }
 0xcf6   : > { %12850 = vmatprep.subr.bf16.mxu0 %v16390_v39  ;;  %12874 = vmatprep.subr.bf16.mxu1 %v16390_v39 }
 0xcfc   : > { %11003 = vmatmul.mubr.f32.vlgmr.msra.gmra.mrb[58].mxu0 %v16590_v22  ;;  %11038 = vmatmul.mubr.f32.vlgmr.msra.gmra.mrb[66].mxu1 %v16591_v38 }
 0xcfd   : > { %12852 = vmatpush3.bf16.xpose.msra.mxu0 %v16592_v19  ;;  %12876 = vmatpush3.bf16.xpose.msra.mxu1 %v16593_v52 }
 0xcfe   : > { %12853 = vmatprep.subr.bf16.mxu0 %v16390_v39  ;;  %12877 = vmatprep.subr.bf16.mxu1 %v16390_v39 }
 0xcff   : > { %11072 = vmatprep.mubr.msk.f32.mxu0 %vm13211_vm4, %v16144_v37  ;;  %11107 = vmatprep.mubr.msk.f32.mxu1 %vm13211_vm4, %v16144_v37 }
 0xd05   : > { %12855 = vmatpush3.bf16.xpose.msra.mxu0 %v16594_v41  ;;  %12879 = vmatpush3.bf16.xpose.msra.mxu1 %v16595_v46 }
 0xd06   : > { %12856 = vmatprep.subr.bf16.mxu0 %v16390_v39  ;;  %12880 = vmatprep.subr.bf16.mxu1 %v16390_v39 }
 0xd0d   : > { %12858 = vmatpush3.bf16.xpose.msra.mxu0 %v16596_v17  ;;  %12882 = vmatpush3.bf16.xpose.msra.mxu1 %v16597_v59 }
 0xd0e   : > { %12859 = vmatprep.subr.bf16.mxu0 %v16390_v39  ;;  %12883 = vmatprep.subr.bf16.mxu1 %v16390_v39 }
 0xd15   : > { %12861 = vmatpush3.bf16.xpose.msra.mxu0 %v16598_v45  ;;  %12885 = vmatpush3.bf16.xpose.msra.mxu1 %v16599_v18 }
 0xd16   : > { %12862 = vmatprep.subr.bf16.mxu0 %v16390_v39  ;;  %12886 = vmatprep.subr.bf16.mxu1 %v16390_v39 }
 0xd1d   : > { %12864 = vmatpush3.bf16.xpose.msra.mxu0 %v16600_v20  ;;  %12888 = vmatpush3.bf16.xpose.msra.mxu1 %v16601_v16 }
 0xd1e   : > { %12865 = vmatprep.subr.bf16.mxu0 %v16390_v39  ;;  %12889 = vmatprep.subr.bf16.mxu1 %v16390_v39 }
 0xd25   : > { %12867 = vmatpush3.bf16.xpose.msra.mxu0 %v16602_v30  ;;  %12891 = vmatpush3.bf16.xpose.msra.mxu1 %v16603_v44 }
 0xd26   : > { %12868 = vmatprep.subr.bf16.mxu0 %v16390_v39  ;;  %12892 = vmatprep.subr.bf16.mxu1 %v16390_v39 }
 0xd2d   : > { %12870 = vmatpush3.bf16.xpose.msra.mxu0 %v16604_v40  ;;  %12894 = vmatpush3.bf16.xpose.msra.mxu1 %v16605_v43 }
 0xd2e   : > { %12871 = vmatprep.subr.bf16.mxu0 %v16390_v39  ;;  %12895 = vmatprep.subr.bf16.mxu1 %v16390_v39 }
 0xd35   : > { %12873 = vmatpush3.bf16.xpose.msra.mxu0 %v16606_v55  ;;  %12897 = vmatpush3.bf16.xpose.msra.mxu1 %v16607_v2 }
 0xd36   : > { %12898 = vmatprep.subr.bf16.mxu0 %v16390_v39  ;;  %12922 = vmatprep.subr.bf16.mxu1 %v16390_v39 }
 0xd3c   : > { %11073 = vmatmul.mubr.f32.vlgmr.msra.gmra.mrb[60].mxu0 %v16608_v56  ;;  %11108 = vmatmul.mubr.f32.vlgmr.msra.gmra.mrb[68].mxu1 %v16609_v11  ;;  %v7183_v11 = vld [vmem:[%s15693_s4] sm:$0xf] }
 0xd3d   : > { %12900 = vmatpush3.bf16.xpose.msra.mxu0 %v16610_v48  ;;  %12924 = vmatpush3.bf16.xpose.msra.mxu1 %v16611_v24 }
 0xd3e   : > { %12901 = vmatprep.subr.bf16.mxu0 %v16390_v39  ;;  %12925 = vmatprep.subr.bf16.mxu1 %v16390_v39 }
 0xd3f   : > { %11142 = vmatprep.mubr.msk.f32.mxu0 %vm13211_vm4, %v16144_v37  ;;  %11177 = vmatprep.mubr.msk.f32.mxu1 %vm13211_vm4, %v16144_v37 }
 0xd40   : > { %7186 = vperm.xlu1 %13064, %v7183_v11  }
 0xd45   : > { %12903 = vmatpush3.bf16.xpose.msra.mxu0 %v16612_v15  ;;  %12927 = vmatpush3.bf16.xpose.msra.mxu1 %v16613_v6 }
 0xd46   : > { %12904 = vmatprep.subr.bf16.mxu0 %v16390_v39  ;;  %12928 = vmatprep.subr.bf16.mxu1 %v16390_v39 }
 0xd4d   : > { %12906 = vmatpush3.bf16.xpose.msra.mxu0 %v16614_v42  ;;  %12930 = vmatpush3.bf16.xpose.msra.mxu1 %v16615_v29 }
 0xd4e   : > { %12907 = vmatprep.subr.bf16.mxu0 %v16390_v39  ;;  %12931 = vmatprep.subr.bf16.mxu1 %v16390_v39 }
 0xd4f   : > { %v6376_v62 = vpop.f32.mrb[62].mxu1 }
 0xd50   : > { %v10899_v35 = vpop.f32.mrb[63].mxu1 }
 0xd55   : > { %12909 = vmatpush3.bf16.xpose.msra.mxu0 %v16616_v10  ;;  %12933 = vmatpush3.bf16.xpose.msra.mxu1 %v16617_v60  ;;  %v13074_v10 = vld [vmem:[#allocation2 + $0x18] sm:$0xff] }
 0xd56   : > { %12910 = vmatprep.subr.bf16.mxu0 %v16390_v39  ;;  %12934 = vmatprep.subr.bf16.mxu1 %v16390_v39 }
 0xd5d   : > { %12912 = vmatpush3.bf16.xpose.msra.mxu0 %v16618_v50  ;;  %12936 = vmatpush3.bf16.xpose.msra.mxu1 %v16619_v13  ;;  %v7182_v13 = vld [vmem:[%s15692_s3] sm:$0xf] }
 0xd5e   : > { %12913 = vmatprep.subr.bf16.mxu0 %v16390_v39  ;;  %12937 = vmatprep.subr.bf16.mxu1 %v16390_v39 }
 0xd65   : > { %12915 = vmatpush3.bf16.xpose.msra.mxu0 %v16620_v3  ;;  %12939 = vmatpush3.bf16.xpose.msra.mxu1 %v16621_v5 }
 0xd66   : > { %12916 = vmatprep.subr.bf16.mxu0 %v16390_v39  ;;  %12940 = vmatprep.subr.bf16.mxu1 %v16390_v39 }
 0xd6d   : > { %12918 = vmatpush3.bf16.xpose.msra.mxu0 %v16622_v61  ;;  %12942 = vmatpush3.bf16.xpose.msra.mxu1 %v16623_v28  ;;  %v16628_v61 = vld [vmem:[#allocation20_spill] sm:$0xff]  ;;  %v16629_v28 = vld [vmem:[#allocation22_spill] sm:$0xff] }
 0xd6e   : > { %12919 = vmatprep.subr.bf16.mxu0 %v16390_v39  ;;  %12943 = vmatprep.subr.bf16.mxu1 %v16390_v39 }
 0xd75   : > { %12921 = vmatpush3.bf16.xpose.msra.mxu0 %v16624_v9  ;;  %12945 = vmatpush3.bf16.xpose.msra.mxu1 %v16625_v31  ;;  %v469_v9 = vmul.f32 %v16629_v28, %v16628_v61 }
 0xd76   : > { %12948 = vmatprep.subr.msk.bf16.mxu0 %vm14658_vm6, %v15417_v57 }
 0xd7c   : > { %11143 = vmatmul.mubr.f32.vlgmr.msra.gmra.mrb[62].mxu0 %v16627_v51  ;;  %11178 = vmatmul.mubr.f32.vlgmr.msra.gmra.mrb[70].mxu1 %v15262_v23  ;;  %v16630_v51 = vld [vmem:[#allocation19_spill] sm:$0xff] }
 0xd7d   : > { %12951 = vmatpush1.bf16.msk.msra.mxu0 %vm14658_vm6, %v15413_v33  ;;  %7077 = vmatprep.mubr.f32.mxu0 %v16144_v37  ;;  %v7414_v33 = vld [vmem:[%s15698_s9 + $0x10] sm:$0xff] }
 0xd80   : > { %7418 = vmatmul.mubr.msk.f32.vlgmr.msra.gmra.mrb[64].mxu0 %vm3842_vm7, %v7414_v33 }
 0xd81   : > { %7081 = vmatprep.mubr.f32.mxu0 %v16144_v37 }
 0xd84   : > { %7419 = vmatmul.mubr.msk.f32.gmra.mrb[66].mxu0 %vm3842_vm7, %v7415_v14 }
 0xd85   : > { %7167 = vmatprep.mubr.f32.mxu0 %v16144_v37 }
 0xd8f   : > { %v6446_v36 = vpop.f32.mrb[56].mxu0  ;;  %v6516_v39 = vpop.f32.mrb[64].mxu1 }
 0xd90   : > { %v6940_v0 = vcombine.low %v6376_v62, %v6516_v39  ;;  %v10934_v58 = vpop.f32.mrb[57].mxu0  ;;  %v10969_v7 = vpop.f32.mrb[65].mxu1  ;;  %v13073_v62 = vld [vmem:[#allocation2 + $0x10] sm:$0xff] }
 0xd92   : > { %v6947_v26 = vrot.slane %v6940_v0, %v13570_v34 }
 0xdbf   : > { %v7187_v3 = vpop.permute.xlu1 %7186 }
 0xdcf   : > { %v6586_v32 = vpop.f32.mrb[58].mxu0  ;;  %v6656_v4 = vpop.f32.mrb[66].mxu1 }
 0xdd0   : > { %v6948_v47 = vcombine.low %v6446_v36, %v6586_v32  ;;  %v11004_v27 = vpop.f32.mrb[59].mxu0  ;;  %v11039_v57 = vpop.f32.mrb[67].mxu1  ;;  %v16631_v36 = vld [vmem:[#allocation21_spill] sm:$0xff] }
 0xdd1   : > { %v470_v39 = vmul.f32 %v16631_v36, %v16630_v51  ;;  %v16633_v57 = vld [vmem:[#allocation17_spill] sm:$0xff] }
 0xdd2   : > { %v6955_v23 = vrot.slane %v6948_v47, %v13570_v34  ;;  %v16632_v47 = vld [vmem:[#allocation18_spill] sm:$0xff] }
 0xdd4   : > { %v6972_v8 = vcombine.low %v6947_v26, %v6955_v23 }
 0xdd6   : > { %v6979_v45 = vrot.slane %v6972_v8, %v13576_v49 }
 0xe0f   : > { %v6726_v54 = vpop.f32.mrb[60].mxu0  ;;  %v6796_v63 = vpop.f32.mrb[68].mxu1 }
 0xe10   : > { %v6956_v21 = vcombine.low %v6656_v4, %v6796_v63  ;;  %v11074_v25 = vpop.f32.mrb[61].mxu0  ;;  %v11109_v1 = vpop.f32.mrb[69].mxu1 }
 0xe12   : > { %v6963_v41 = vrot.slane %v6956_v21, %v13570_v34 }
 0xe4f   : > { %v6866_v53 = vpop.f32.mrb[62].mxu0  ;;  %v6936_v22 = vpop.f32.mrb[70].mxu1 }
 0xe50   : > { %v6964_v38 = vcombine.low %v6726_v54, %v6866_v53  ;;  %v11144_v19 = vpop.f32.mrb[63].mxu0  ;;  %v11179_v52 = vpop.f32.mrb[71].mxu1  ;;  %v6996_v59 = vrot.slane %v6936_v22, %v13576_v49 }
 0xe52   : > { %v6971_v46 = vrot.slane %v6964_v38, %v13570_v34  ;;  %v6997_v30 = vcombine.high %v6996_v59, %v16144_v37  ;;  %v7420_v34 = vld [vmem:[%s15699_s10 + $0x10] sm:$0xff] }
 0xe53   : > { %v7079_v43 = vpop.f32.mrb[64].mxu0 }
 0xe54   : > { %v6980_v17 = vcombine.low %v6963_v41, %v6971_v46  ;;  %v7080_v55 = vpop.f32.mrb[65].mxu0 }
 0xe56   : > { %v6987_v18 = vrot.slane %v6980_v17, %v13576_v49  ;;  %v7421_v49 = vld [vmem:[%s15699_s10 + $0x18] sm:$0xff] }
 0xe57   : > { %v7083_v2 = vpop.f32.mrb[66].mxu0 }
 0xe58   : > { %v6988_v20 = vcombine.low %v6979_v45, %v6987_v18  ;;  %v6989_v16 = vcombine.high %v6979_v45, %v6987_v18  ;;  %v7085_v56 = vpop.f32.mrb[67].mxu0 }
 0xe5a   : > { %v12952_v44 = vpack.c.bf16 %v6997_v30, %v6989_v16  ;;  %v12955_v40 = vpack.c.bf16 %v6996_v59, %v6988_v20 }
 0xe5c   : > { %12954 = vmatprep.subr.msk.bf16.mxu0 %vm14658_vm6, %v12952_v44 }
 0xe5d   : > { %12957 = vmatpush1.bf16.msk.msra.mxu0 %vm14658_vm6, %v12955_v40 }
 0xe60   : > { %7424 = vmatmul.mubr.msk.f32.vlgmr.msra.gmra.mrb[68].mxu0 %vm3842_vm7, %v7420_v34 }
 0xe61   : > { %7171 = vmatprep.mubr.f32.mxu0 %v16144_v37 }
 0xe64   : > { %7425 = vmatmul.mubr.msk.f32.gmra.mrb[70].mxu0 %vm3842_vm7, %v7421_v49 }
 0xe65   : > { %7265 = vmatprep.mubr.f32.mxu0 %v16144_v37 }
 0xf33   : > { %v7169_v48 = vpop.f32.mrb[68].mxu0 }
 0xf34   : > { %v7170_v24 = vpop.f32.mrb[69].mxu0 }
 0xf37   : > { %v7173_v15 = vpop.f32.mrb[70].mxu0 }
 0xf38   : > { %v7178_v6 = vsub.f32 %v7083_v2, %v7173_v15  ;;  %v7175_v42 = vpop.f32.mrb[71].mxu0 }
 0xf39   : > { %v7179_v29 = vsub.f32 %v7085_v56, %v7175_v42 }
 0xf3a   : > { %v7180_v35 = vadd.f32 %v13073_v62, %v7178_v6 }
 0xf3b   : > { %v7181_v37 = vadd.f32 %v13074_v10, %v7179_v29 }
 0xf3c   : > { %v7191_v50 = vrot.slane %v7180_v35, 4 }
 0xf3d   : > { %v7192_v60 = vrot.slane %v7181_v37, 4 }
 0xf3f   : > { %7426 = vmatprep.subr.msk.mxu0 %vm419_vm0, %v7192_v60 }
 0xf40   : > { %7427 = vmatpush1.msk.msra.mxu0 %vm419_vm0, %v7191_v50 }
 0xf41   : > { %7428 = vmatmul.mubr.msk.f32.vlgmr.msra.gmra.mrb[72].mxu0 %vm7193_vm9, %v7182_v13 }
0x1014   : > { %v7267_v5 = vpop.f32.mrb[72].mxu0 }
0x1015   : > { %v7268_v31 = vadd.f32 %v7267_v5, %v7187_v3  ;;  %v7269_v12 = vpop.f32.mrb[73].mxu0 }
0x1016   : > { %v7270_v0 = vadd.f32 %v7269_v12, %v7187_v3 }
0x1017   : > { %v7272_v58 = vmax.f32 %v7268_v31, 0.0 }
0x1018   : > { %v7273_v7 = vmax.f32 %v7270_v0, 0.0 }
0x1019   : > { %v7274_v32 = vmul.f32 %v7272_v58, %v469_v9 }
0x101a   : > { %v7275_v4 = vmul.f32 %v7273_v7, %v470_v39 }
0x101b   : > { %v7276_v27 = vadd.f32 %v7274_v32, %v16632_v47 }
0x101c   : > { %v7277_v26 = vadd.f32 %v7275_v4, %v16633_v57 }
0x101e   : > { %v7280_v23 = vcombine.low %v7276_v27, %v7277_v26 }
0x1020   : > { %7282 = vst [vmem:[%s409_s26] sm:$0xff] %v7280_v23 }
0x1021   : > { %13144 = shalt.err (!%p13141_p11)
}
0x1022   : > { %s13145_s29 = scalar_lea.hbm %s15647_s14, 128  ;;  %s13149_s16 = scalar_lea.hbm %s15700_s11, 256 }
0x1023   : > { %p13146_p13 = scmp.ne.s32.totalorder %s15647_s14, %s13145_s29  ;;  %p13150_p6 = scmp.lt.u32.totalorder %s15647_s14, %s15700_s11 }
0x1024   : > { %p13151_p9 = scmp.lt.u32.totalorder %s13149_s16, %s13145_s29  ;;  %p13153_p12 = scmp.lt.u32.totalorder %s13145_s29, %s15647_s14 }
0x1025   : > { %p13147_p5 = pnand %p13146_p13, %p16634_p1 }
0x1026   : > { %p13152_p10 = por %p13151_p9, %p13150_p6 }
0x1027   : > { %p13148_p0 = pneg %p13147_p5 }
0x1028   : > { %p13154_p2 = por %p13153_p12, %p13152_p10 }
0x102a   : > { %p13155_p3 = pnand %p13154_p2, %p13148_p0 }
0x102c   : > { %13158 = shalt.err (!%p13155_p3)
}
0x102d   : > { %13002 = dma.vmem_to_hbm [thread:$0]  (%p16634_p1), %s15649_s24, 128, %s15647_s14, %s7284_s12  }
0x102e PF: > { %s16635_s26 = sld [smem:[#allocation12_spill]]  ;;  %s16636_s25 = sld [smem:[#allocation16_spill]] }
0x102f   : > { %p13019_p4 = scmp.ge.s32.totalorder %s13201_s20, 2 }
0x1034   : > { %s7310_s30 = sand.u32 1, %s16635_s26   ;;  %p16637_p7 = scmp.ne.s32.totalorder %s16636_s25, 0 }
0x1035   : > { %s7311_s17 = scalar_lea.sflag [#allocation5], %s7310_s30 }
0x1036   : > { %p13012_p8 = pnand %p13019_p4, %p16637_p7 }
0x1038   : > { %13184 = dma.done.wait (!%p13012_p8), %s7311_s17, 128  }
0x1039   : > { %13186 = vsyncadd (!%p13012_p8), %s7311_s17, 4294967168  ;;  %s16638_s20 = sld [smem:[#allocation14_spill]]  ;;  %s16639_s21 = sld [smem:[#allocation13_spill]] }
0x103a   : > { %s16640_s19 = sld [smem:[#allocation15_spill]]  ;;  %s16641_s17 = smov %s13193_s18 }
0x103f   : > { %p23_p11 = scmp.ge.s32.totalorder %s16638_s20, 4   ;;  %s16642_s18 = smov %s16639_s21 }
0x1041   :  { %25 = sbr.rel (!%p23_p11) target bundleno = 5 (0x5), region = 110 }
0x1048   :  { %7316 = vsyncpa [#allocation4], 1 }
0x1049   :  { %7318 = vsyncpa [#allocation4 + $0x1], 1 }
0x104a   :  { %7319 = vsyncpa [#allocation7], 1 }
0x104b   :  { %7320 = vsyncpa [#allocation5], 1 }
0x104c   :  { %7322 = vsyncpa [#allocation5 + $0x1], 1 }

</bundles_post_ra>
